<compile_context>
chip_gen: v6e
topology: v6e:2x2x1
jax: 0.10.0
libtpu: 0.0.40
codegen_flags: <defaults>
</compile_context>

<pallas_src>
import jax
import jax.numpy as jnp
from jax import lax
from jax.experimental import pallas as pl
from jax.experimental.pallas import tpu as pltpu

EMBED_DIM = 128
HIDDEN_DIM = 128
VOCAB_SIZE = 6          # config.type == 'DNA' / 'RNA'
VOCAB_PAD = 8           # gate-table rows padded to a sublane multiple
NUM_CLASSES = 2


def _sigmoid(x):
    # sigmoid(x) = 0.5*tanh(0.5*x) + 0.5 : one EUP op instead of exp + recip.
    return 0.5 * jnp.tanh(0.5 * x) + 0.5


def lstm_kernel(onehot_ref, len_ref, gtab_ref, whh_ref, rep_ref, gx_scr):
    """One batch tile: whole-sequence LSTM recurrence -> final hidden state."""
    Bt, H = rep_ref.shape
    T = gx_scr.shape[0] // Bt

    # (1) Off the serial path: every timestep's input-gate contribution with
    #     ONE batched MXU matmul.  gx[t*Bt + i] = onehot(token[i, t]) @ G,
    #     where G already folds the embedding, W_ih projection and both biases.
    gx_scr[...] = jnp.dot(onehot_ref[...], gtab_ref[...],
                          preferred_element_type=jnp.float32)     # [T*Bt, 4H]

    last_t = len_ref[...] - 1                                     # [Bt, 1] i32

    def step(t, carry):
        h, c, h_fin = carry                                       # [Bt, H] f32
        row = pl.multiple_of(t * Bt, Bt)
        # bf16 operands on the MXU (f32 accumulation); this matmul dominates
        # the latency-bound serial chain.  Gate math stays f32 for v5e's VPU.
        gates = gx_scr[pl.ds(row, Bt), :] + jnp.dot(
            h.astype(jnp.bfloat16), whh_ref[...],
            preferred_element_type=jnp.float32)                   # [Bt, 4H]
        i_g = _sigmoid(gates[:, 0:H])
        f_g = _sigmoid(gates[:, H:2 * H])
        g_g = jnp.tanh(gates[:, 2 * H:3 * H])
        o_g = _sigmoid(gates[:, 3 * H:4 * H])
        c_new = f_g * c + i_g * g_g
        h_new = o_g * jnp.tanh(c_new)
        # pack_padded_sequence semantics: h_n is the state at the last valid
        # timestep.  (h, c) update unconditionally (no selects on the carry
        # chain); the snapshot select below is off the serial dependency chain.
        h_fin = jnp.where(t == last_t, h_new, h_fin)
        return h_new, c_new, h_fin

    zeros = jnp.zeros((Bt, H), jnp.float32)
    # Fully unrolled: carries stay in vregs, scheduler overlaps adjacent steps.
    _, _, h_fin = lax.fori_loop(0, T, step, (zeros, zeros, zeros), unroll=True)

    rep_ref[...] = h_fin


def lstm_forward(tokens, params, *, batch_tile=8):
    """tokens: int32 [B, T]. Returns (logits [B, 2], representation [B, H])."""
    B, T = tokens.shape
    H = HIDDEN_DIM
    assert batch_tile % 8 == 0, "batch_tile must be a sublane multiple of 8"

    # ---- pad batch to a multiple of the batch tile (padded rows: length 0) ---
    Bp = ((B + batch_tile - 1) // batch_tile) * batch_tile
    if Bp != B:
        tokens = jnp.pad(tokens, ((0, Bp - B), (0, 0)))
    n_tiles = Bp // batch_tile
    Bt = batch_tile

    # ---- fold embedding + input projection + biases into a tiny gate table ---
    # gtab[v] = embedding[v] @ w_ih^T + b_ih + b_hh                 -> [V, 4H]
    gtab = (jnp.dot(params["embedding"], params["w_ih"].T,
                    precision=jax.lax.Precision.HIGHEST)
            + params["b_ih"] + params["b_hh"]).astype(jnp.float32)
    gtab = jnp.pad(gtab, ((0, VOCAB_PAD - VOCAB_SIZE), (0, 0)))     # [Vp, 4H]

    # One-hot token selectors, laid out per batch tile, time-major:
    #   onehot[g, t*Bt + i, v] = (tokens[g*Bt + i, t] == v)
    onehot = jax.nn.one_hot(tokens, VOCAB_PAD, dtype=jnp.float32)   # [Bp, T, Vp]
    onehot = (onehot.reshape(n_tiles, Bt, T, VOCAB_PAD)
                    .transpose(0, 2, 1, 3)
                    .reshape(n_tiles, T * Bt, VOCAB_PAD))

    # Per-sequence lengths (== count_len), as a lane-thin int vector.
    lengths = jnp.sum(tokens != 0, axis=1).astype(jnp.int32)[:, None]  # [Bp, 1]

    # Recurrence weights in bf16 (operand dtype for the serial-path matmul).
    whh_bf16 = params["w_hh"].T.astype(jnp.bfloat16)   # [H, 4H]

    rep = pl.pallas_call(
        lstm_kernel,
        out_shape=jax.ShapeDtypeStruct((Bp, H), jnp.float32),
        grid_spec=pltpu.PrefetchScalarGridSpec(
            num_scalar_prefetch=0,
            grid=(n_tiles,),
            in_specs=[
                pl.BlockSpec((pl.Squeezed(), T * Bt, VOCAB_PAD),
                             lambda b: (b, 0, 0)),
                pl.BlockSpec((Bt, 1), lambda b: (b, 0)),
                pl.BlockSpec((VOCAB_PAD, 4 * H), lambda b: (0, 0)),
                pl.BlockSpec((H, 4 * H), lambda b: (0, 0)),
            ],
            out_specs=pl.BlockSpec((Bt, H), lambda b: (b, 0)),
            scratch_shapes=[pltpu.VMEM((T * Bt, 4 * H), jnp.float32)]),
        compiler_params=pltpu.CompilerParams(
            dimension_semantics=("parallel",),      # batch tiles split across TCs
            vmem_limit_bytes=8 * 1024 * 1024),
    )(onehot, lengths, gtab, whh_bf16)

    rep = rep[:B]
    # Classification head in XLA: a 2-lane-wide kernel output would force
    # masked partial stores; keeping the kernel output lane-dense ([B, 128])
    # is the bigger layout win, and this matmul is trivial for XLA.
    logits = rep @ params["w_cls"].T + params["b_cls"]
    return logits, rep


def init_params(key):
    """Deterministic synthetic parameters matching the PyTorch module shapes."""
    k = jax.random.split(key, 7)
    scale = 1.0 / jnp.sqrt(HIDDEN_DIM)
    emb = jax.random.normal(k[0], (VOCAB_SIZE, EMBED_DIM), jnp.float32)
    emb = emb.at[0].set(0.0)                         # padding_idx=0

    def u(kk, shape):
        return jax.random.uniform(kk, shape, jnp.float32, -scale, scale)

    return dict(
        embedding=emb,
        w_ih=u(k[1], (4 * HIDDEN_DIM, EMBED_DIM)),   # gate order: i, f, g, o
        w_hh=u(k[2], (4 * HIDDEN_DIM, HIDDEN_DIM)),
        b_ih=u(k[3], (4 * HIDDEN_DIM,)),
        b_hh=u(k[4], (4 * HIDDEN_DIM,)),
        w_cls=u(k[5], (NUM_CLASSES, HIDDEN_DIM)),
        b_cls=u(k[6], (NUM_CLASSES,)),
    )


def ref_forward(tokens, params):
    """Pure-JAX f32 reference (same packed-LSTM semantics) for a sanity check."""
    x = params["embedding"][tokens]
    lengths = jnp.sum(tokens != 0, axis=1)
    B, T, _ = x.shape
    H = HIDDEN_DIM
    h = jnp.zeros((B, H), jnp.float32)
    c = jnp.zeros((B, H), jnp.float32)
    for t in range(T):
        gates = (x[:, t] @ params["w_ih"].T + h @ params["w_hh"].T
                 + params["b_ih"] + params["b_hh"])
        i = jax.nn.sigmoid(gates[:, :H])
        f = jax.nn.sigmoid(gates[:, H:2 * H])
        g = jnp.tanh(gates[:, 2 * H:3 * H])
        o = jax.nn.sigmoid(gates[:, 3 * H:])
        c_new = f * c + i * g
        h_new = o * jnp.tanh(c_new)
        m = (t < lengths).astype(jnp.float32)[:, None]
        h = m * h_new + (1.0 - m) * h
        c = m * c_new + (1.0 - m) * c
    out = h @ params["w_cls"].T + params["b_cls"]
    return out, h


if __name__ == "__main__":
    key = jax.random.PRNGKey(0)
    pkey, tkey = jax.random.split(key)
    params = init_params(pkey)

    # B=16 sequences of max_len=16 (two batch tiles -> both v7x TensorCores get
    # a "parallel" grid step), trailing zero padding, sorted by descending
    # length to match pack_padded_sequence requirements.
    B, T = 16, 16
    lengths = jnp.arange(T, 0, -1, dtype=jnp.int32)          # 16, 15, ..., 1
    raw = jax.random.randint(tkey, (B, T), 1, VOCAB_SIZE, dtype=jnp.int32)
    valid = jnp.arange(T)[None, :] < lengths[:, None]
    tokens = jnp.where(valid, raw, 0)

    out, rep = lstm_forward(tokens, params)
    jax.block_until_ready((out, rep))

    out_ref, rep_ref = ref_forward(tokens, params)
    # bf16 operands on the 16-step recurrence matmul -> tolerance relaxed vs
    # the pure-f32 reference.
    assert jnp.allclose(out, out_ref, rtol=2e-2, atol=2e-2)
    assert jnp.allclose(rep, rep_ref, rtol=2e-2, atol=2e-2)

    print("KERNEL_OK")
</pallas_src>

<mosaic_0001>
module attributes {stable_mosaic.version = 11 : i64} {
  func.func @lstm_kernel(%arg0: i32, %arg1: memref<1x128x8xf32, #tpu.memory_space<vmem>>, %arg2: memref<8x1xi32, #tpu.memory_space<vmem>>, %arg3: memref<8x512xf32, #tpu.memory_space<vmem>>, %arg4: memref<128x512xbf16, #tpu.memory_space<vmem>>, %arg5: memref<8x128xf32, #tpu.memory_space<vmem>>, %arg6: memref<128x512xf32, #tpu.memory_space<vmem>>) attributes {dimension_semantics = [#tpu.dimension_semantics<parallel>], iteration_bounds = array<i64: 2>, scalar_prefetch = 0 : i64, scratch_operands = 1 : i64, tpu.core_type = #tpu.core_type<tc>, window_params = [{transform_indices = @transform_0, window_bounds = array<i64: 1, 128, 8>}, {transform_indices = @transform_1, window_bounds = array<i64: 8, 1>}, {pipeline_mode = #tpu.pipeline_mode<synchronous>, transform_indices = @transform_2, window_bounds = array<i64: 8, 512>}, {pipeline_mode = #tpu.pipeline_mode<synchronous>, transform_indices = @transform_3, window_bounds = array<i64: 128, 512>}, {transform_indices = @transform_4, window_bounds = array<i64: 8, 128>}]} {
    %c0 = arith.constant 0 : index
    %c0_0 = arith.constant 0 : index
    %c0_1 = arith.constant 0 : index
    %0 = vector.load %arg1[%c0, %c0_0, %c0_1] : memref<1x128x8xf32, #tpu.memory_space<vmem>>, vector<1x128x8xf32>
    %1 = vector.shape_cast %0 : vector<1x128x8xf32> to vector<128x8xf32>
    %c0_2 = arith.constant 0 : index
    %c0_3 = arith.constant 0 : index
    %2 = vector.load %arg3[%c0_2, %c0_3] : memref<8x512xf32, #tpu.memory_space<vmem>>, vector<8x512xf32>
    %cst = arith.constant dense<0.000000e+00> : vector<128x512xf32>
    %3 = tpu.matmul %1, %2, %cst {dimension_numbers = #tpu.dot_dimension_numbers<[1], [0], [0], [1], [0, 0, 1, 1], [], []>} : vector<128x8xf32>, vector<8x512xf32>, vector<128x512xf32> -> vector<128x512xf32>
    %c0_4 = arith.constant 0 : index
    %c0_5 = arith.constant 0 : index
    %4 = vector.load %arg6[%c0_4, %c0_5] : memref<128x512xf32, #tpu.memory_space<vmem>>, vector<128x512xf32>
    tpu.vector_store %arg6[%c0_4, %c0_5], %3 {strides = array<i32>} : memref<128x512xf32, #tpu.memory_space<vmem>>, vector<128x512xf32>,
    %c0_6 = arith.constant 0 : index
    %c0_7 = arith.constant 0 : index
    %5 = vector.load %arg2[%c0_6, %c0_7] : memref<8x1xi32, #tpu.memory_space<vmem>>, vector<8x1xi32>
    %c1_i32 = arith.constant 1 : i32
    %6 = vector.broadcast %c1_i32 : i32 to vector<8x1xi32>
    %7 = arith.subi %5, %6 : vector<8x1xi32>
    %cst_8 = arith.constant 0.000000e+00 : f32
    %8 = vector.broadcast %cst_8 : f32 to vector<8x128xf32>
    %c0_i32 = arith.constant 0 : i32
    %c8_i32 = arith.constant 8 : i32
    %9 = arith.muli %c0_i32, %c8_i32 : i32
    %10 = tpu.assume_multiple %9, 8 : i32
    %11 = arith.index_cast %10 : i32 to index
    %c0_9 = arith.constant 0 : index
    %12 = vector.load %arg6[%11, %c0_9] : memref<128x512xf32, #tpu.memory_space<vmem>>, vector<8x512xf32>
    %13 = arith.truncf %8 : vector<8x128xf32> to vector<8x128xbf16>
    %c0_10 = arith.constant 0 : index
    %c0_11 = arith.constant 0 : index
    %14 = vector.load %arg4[%c0_10, %c0_11] : memref<128x512xbf16, #tpu.memory_space<vmem>>, vector<128x512xbf16>
    %cst_12 = arith.constant dense<0.000000e+00> : vector<8x512xf32>
    %15 = tpu.matmul %13, %14, %cst_12 {dimension_numbers = #tpu.dot_dimension_numbers<[1], [0], [0], [1], [0, 0, 1, 1], [], []>} : vector<8x128xbf16>, vector<128x512xbf16>, vector<8x512xf32> -> vector<8x512xf32>
    %16 = arith.addf %12, %15 : vector<8x512xf32>
    %17 = vector.extract_strided_slice %16 {offsets = [0, 0], sizes = [8, 128], strides = [1, 1]} : vector<8x512xf32> to vector<8x128xf32>
    %cst_13 = arith.constant 5.000000e-01 : f32
    %18 = vector.broadcast %cst_13 : f32 to vector<8x128xf32>
    %19 = arith.mulf %18, %17 : vector<8x128xf32>
    %20 = math.tanh %19 : vector<8x128xf32>
    %cst_14 = arith.constant 5.000000e-01 : f32
    %21 = vector.broadcast %cst_14 : f32 to vector<8x128xf32>
    %22 = arith.mulf %21, %20 : vector<8x128xf32>
    %cst_15 = arith.constant 5.000000e-01 : f32
    %23 = vector.broadcast %cst_15 : f32 to vector<8x128xf32>
    %24 = arith.addf %22, %23 : vector<8x128xf32>
    %25 = vector.extract_strided_slice %16 {offsets = [0, 128], sizes = [8, 128], strides = [1, 1]} : vector<8x512xf32> to vector<8x128xf32>
    %cst_16 = arith.constant 5.000000e-01 : f32
    %26 = vector.broadcast %cst_16 : f32 to vector<8x128xf32>
    %27 = arith.mulf %26, %25 : vector<8x128xf32>
    %28 = math.tanh %27 : vector<8x128xf32>
    %cst_17 = arith.constant 5.000000e-01 : f32
    %29 = vector.broadcast %cst_17 : f32 to vector<8x128xf32>
    %30 = arith.mulf %29, %28 : vector<8x128xf32>
    %cst_18 = arith.constant 5.000000e-01 : f32
    %31 = vector.broadcast %cst_18 : f32 to vector<8x128xf32>
    %32 = arith.addf %30, %31 : vector<8x128xf32>
    %33 = vector.extract_strided_slice %16 {offsets = [0, 256], sizes = [8, 128], strides = [1, 1]} : vector<8x512xf32> to vector<8x128xf32>
    %34 = math.tanh %33 : vector<8x128xf32>
    %35 = vector.extract_strided_slice %16 {offsets = [0, 384], sizes = [8, 128], strides = [1, 1]} : vector<8x512xf32> to vector<8x128xf32>
    %cst_19 = arith.constant 5.000000e-01 : f32
    %36 = vector.broadcast %cst_19 : f32 to vector<8x128xf32>
    %37 = arith.mulf %36, %35 : vector<8x128xf32>
    %38 = math.tanh %37 : vector<8x128xf32>
    %cst_20 = arith.constant 5.000000e-01 : f32
    %39 = vector.broadcast %cst_20 : f32 to vector<8x128xf32>
    %40 = arith.mulf %39, %38 : vector<8x128xf32>
    %cst_21 = arith.constant 5.000000e-01 : f32
    %41 = vector.broadcast %cst_21 : f32 to vector<8x128xf32>
    %42 = arith.addf %40, %41 : vector<8x128xf32>
    %43 = arith.mulf %32, %8 : vector<8x128xf32>
    %44 = arith.mulf %24, %34 : vector<8x128xf32>
    %45 = arith.addf %43, %44 : vector<8x128xf32>
    %46 = math.tanh %45 : vector<8x128xf32>
    %47 = arith.mulf %42, %46 : vector<8x128xf32>
    %48 = vector.broadcast %c0_i32 : i32 to vector<8x1xi32>
    %49 = arith.cmpi eq, %48, %7 : vector<8x1xi32>
    %50 = vector.shape_cast %49 : vector<8x1xi1> to vector<8x1xi1>
    %51 = vector.broadcast %50 : vector<8x1xi1> to vector<8x128xi1>
    %52 = arith.select %51, %47, %8 : vector<8x128xi1>, vector<8x128xf32>
    %c1_i32_22 = arith.constant 1 : i32
    %c8_i32_23 = arith.constant 8 : i32
    %53 = arith.muli %c1_i32_22, %c8_i32_23 : i32
    %54 = tpu.assume_multiple %53, 8 : i32
    %55 = arith.index_cast %54 : i32 to index
    %c0_24 = arith.constant 0 : index
    %56 = vector.load %arg6[%55, %c0_24] : memref<128x512xf32, #tpu.memory_space<vmem>>, vector<8x512xf32>
    %57 = arith.truncf %47 : vector<8x128xf32> to vector<8x128xbf16>
    %c0_25 = arith.constant 0 : index
    %c0_26 = arith.constant 0 : index
    %58 = vector.load %arg4[%c0_25, %c0_26] : memref<128x512xbf16, #tpu.memory_space<vmem>>, vector<128x512xbf16>
    %cst_27 = arith.constant dense<0.000000e+00> : vector<8x512xf32>
    %59 = tpu.matmul %57, %58, %cst_27 {dimension_numbers = #tpu.dot_dimension_numbers<[1], [0], [0], [1], [0, 0, 1, 1], [], []>} : vector<8x128xbf16>, vector<128x512xbf16>, vector<8x512xf32> -> vector<8x512xf32>
    %60 = arith.addf %56, %59 : vector<8x512xf32>
    %61 = vector.extract_strided_slice %60 {offsets = [0, 0], sizes = [8, 128], strides = [1, 1]} : vector<8x512xf32> to vector<8x128xf32>
    %cst_28 = arith.constant 5.000000e-01 : f32
    %62 = vector.broadcast %cst_28 : f32 to vector<8x128xf32>
    %63 = arith.mulf %62, %61 : vector<8x128xf32>
    %64 = math.tanh %63 : vector<8x128xf32>
    %cst_29 = arith.constant 5.000000e-01 : f32
    %65 = vector.broadcast %cst_29 : f32 to vector<8x128xf32>
    %66 = arith.mulf %65, %64 : vector<8x128xf32>
    %cst_30 = arith.constant 5.000000e-01 : f32
    %67 = vector.broadcast %cst_30 : f32 to vector<8x128xf32>
    %68 = arith.addf %66, %67 : vector<8x128xf32>
    %69 = vector.extract_strided_slice %60 {offsets = [0, 128], sizes = [8, 128], strides = [1, 1]} : vector<8x512xf32> to vector<8x128xf32>
    %cst_31 = arith.constant 5.000000e-01 : f32
    %70 = vector.broadcast %cst_31 : f32 to vector<8x128xf32>
    %71 = arith.mulf %70, %69 : vector<8x128xf32>
    %72 = math.tanh %71 : vector<8x128xf32>
    %cst_32 = arith.constant 5.000000e-01 : f32
    %73 = vector.broadcast %cst_32 : f32 to vector<8x128xf32>
    %74 = arith.mulf %73, %72 : vector<8x128xf32>
    %cst_33 = arith.constant 5.000000e-01 : f32
    %75 = vector.broadcast %cst_33 : f32 to vector<8x128xf32>
    %76 = arith.addf %74, %75 : vector<8x128xf32>
    %77 = vector.extract_strided_slice %60 {offsets = [0, 256], sizes = [8, 128], strides = [1, 1]} : vector<8x512xf32> to vector<8x128xf32>
    %78 = math.tanh %77 : vector<8x128xf32>
    %79 = vector.extract_strided_slice %60 {offsets = [0, 384], sizes = [8, 128], strides = [1, 1]} : vector<8x512xf32> to vector<8x128xf32>
    %cst_34 = arith.constant 5.000000e-01 : f32
    %80 = vector.broadcast %cst_34 : f32 to vector<8x128xf32>
    %81 = arith.mulf %80, %79 : vector<8x128xf32>
    %82 = math.tanh %81 : vector<8x128xf32>
    %cst_35 = arith.constant 5.000000e-01 : f32
    %83 = vector.broadcast %cst_35 : f32 to vector<8x128xf32>
    %84 = arith.mulf %83, %82 : vector<8x128xf32>
    %cst_36 = arith.constant 5.000000e-01 : f32
    %85 = vector.broadcast %cst_36 : f32 to vector<8x128xf32>
    %86 = arith.addf %84, %85 : vector<8x128xf32>
    %87 = arith.mulf %76, %45 : vector<8x128xf32>
    %88 = arith.mulf %68, %78 : vector<8x128xf32>
    %89 = arith.addf %87, %88 : vector<8x128xf32>
    %90 = math.tanh %89 : vector<8x128xf32>
    %91 = arith.mulf %86, %90 : vector<8x128xf32>
    %92 = vector.broadcast %c1_i32_22 : i32 to vector<8x1xi32>
    %93 = arith.cmpi eq, %92, %7 : vector<8x1xi32>
    %94 = vector.shape_cast %93 : vector<8x1xi1> to vector<8x1xi1>
    %95 = vector.broadcast %94 : vector<8x1xi1> to vector<8x128xi1>
    %96 = arith.select %95, %91, %52 : vector<8x128xi1>, vector<8x128xf32>
    %c2_i32 = arith.constant 2 : i32
    %c8_i32_37 = arith.constant 8 : i32
    %97 = arith.muli %c2_i32, %c8_i32_37 : i32
    %98 = tpu.assume_multiple %97, 8 : i32
    %99 = arith.index_cast %98 : i32 to index
    %c0_38 = arith.constant 0 : index
    %100 = vector.load %arg6[%99, %c0_38] : memref<128x512xf32, #tpu.memory_space<vmem>>, vector<8x512xf32>
    %101 = arith.truncf %91 : vector<8x128xf32> to vector<8x128xbf16>
    %c0_39 = arith.constant 0 : index
    %c0_40 = arith.constant 0 : index
    %102 = vector.load %arg4[%c0_39, %c0_40] : memref<128x512xbf16, #tpu.memory_space<vmem>>, vector<128x512xbf16>
    %cst_41 = arith.constant dense<0.000000e+00> : vector<8x512xf32>
    %103 = tpu.matmul %101, %102, %cst_41 {dimension_numbers = #tpu.dot_dimension_numbers<[1], [0], [0], [1], [0, 0, 1, 1], [], []>} : vector<8x128xbf16>, vector<128x512xbf16>, vector<8x512xf32> -> vector<8x512xf32>
    %104 = arith.addf %100, %103 : vector<8x512xf32>
    %105 = vector.extract_strided_slice %104 {offsets = [0, 0], sizes = [8, 128], strides = [1, 1]} : vector<8x512xf32> to vector<8x128xf32>
    %cst_42 = arith.constant 5.000000e-01 : f32
    %106 = vector.broadcast %cst_42 : f32 to vector<8x128xf32>
    %107 = arith.mulf %106, %105 : vector<8x128xf32>
    %108 = math.tanh %107 : vector<8x128xf32>
    %cst_43 = arith.constant 5.000000e-01 : f32
    %109 = vector.broadcast %cst_43 : f32 to vector<8x128xf32>
    %110 = arith.mulf %109, %108 : vector<8x128xf32>
    %cst_44 = arith.constant 5.000000e-01 : f32
    %111 = vector.broadcast %cst_44 : f32 to vector<8x128xf32>
    %112 = arith.addf %110, %111 : vector<8x128xf32>
    %113 = vector.extract_strided_slice %104 {offsets = [0, 128], sizes = [8, 128], strides = [1, 1]} : vector<8x512xf32> to vector<8x128xf32>
    %cst_45 = arith.constant 5.000000e-01 : f32
    %114 = vector.broadcast %cst_45 : f32 to vector<8x128xf32>
    %115 = arith.mulf %114, %113 : vector<8x128xf32>
    %116 = math.tanh %115 : vector<8x128xf32>
    %cst_46 = arith.constant 5.000000e-01 : f32
    %117 = vector.broadcast %cst_46 : f32 to vector<8x128xf32>
    %118 = arith.mulf %117, %116 : vector<8x128xf32>
    %cst_47 = arith.constant 5.000000e-01 : f32
    %119 = vector.broadcast %cst_47 : f32 to vector<8x128xf32>
    %120 = arith.addf %118, %119 : vector<8x128xf32>
    %121 = vector.extract_strided_slice %104 {offsets = [0, 256], sizes = [8, 128], strides = [1, 1]} : vector<8x512xf32> to vector<8x128xf32>
    %122 = math.tanh %121 : vector<8x128xf32>
    %123 = vector.extract_strided_slice %104 {offsets = [0, 384], sizes = [8, 128], strides = [1, 1]} : vector<8x512xf32> to vector<8x128xf32>
    %cst_48 = arith.constant 5.000000e-01 : f32
    %124 = vector.broadcast %cst_48 : f32 to vector<8x128xf32>
    %125 = arith.mulf %124, %123 : vector<8x128xf32>
    %126 = math.tanh %125 : vector<8x128xf32>
    %cst_49 = arith.constant 5.000000e-01 : f32
    %127 = vector.broadcast %cst_49 : f32 to vector<8x128xf32>
    %128 = arith.mulf %127, %126 : vector<8x128xf32>
    %cst_50 = arith.constant 5.000000e-01 : f32
    %129 = vector.broadcast %cst_50 : f32 to vector<8x128xf32>
    %130 = arith.addf %128, %129 : vector<8x128xf32>
    %131 = arith.mulf %120, %89 : vector<8x128xf32>
    %132 = arith.mulf %112, %122 : vector<8x128xf32>
    %133 = arith.addf %131, %132 : vector<8x128xf32>
    %134 = math.tanh %133 : vector<8x128xf32>
    %135 = arith.mulf %130, %134 : vector<8x128xf32>
    %136 = vector.broadcast %c2_i32 : i32 to vector<8x1xi32>
    %137 = arith.cmpi eq, %136, %7 : vector<8x1xi32>
    %138 = vector.shape_cast %137 : vector<8x1xi1> to vector<8x1xi1>
    %139 = vector.broadcast %138 : vector<8x1xi1> to vector<8x128xi1>
    %140 = arith.select %139, %135, %96 : vector<8x128xi1>, vector<8x128xf32>
    %c3_i32 = arith.constant 3 : i32
    %c8_i32_51 = arith.constant 8 : i32
    %141 = arith.muli %c3_i32, %c8_i32_51 : i32
    %142 = tpu.assume_multiple %141, 8 : i32
    %143 = arith.index_cast %142 : i32 to index
    %c0_52 = arith.constant 0 : index
    %144 = vector.load %arg6[%143, %c0_52] : memref<128x512xf32, #tpu.memory_space<vmem>>, vector<8x512xf32>
    %145 = arith.truncf %135 : vector<8x128xf32> to vector<8x128xbf16>
    %c0_53 = arith.constant 0 : index
    %c0_54 = arith.constant 0 : index
    %146 = vector.load %arg4[%c0_53, %c0_54] : memref<128x512xbf16, #tpu.memory_space<vmem>>, vector<128x512xbf16>
    %cst_55 = arith.constant dense<0.000000e+00> : vector<8x512xf32>
    %147 = tpu.matmul %145, %146, %cst_55 {dimension_numbers = #tpu.dot_dimension_numbers<[1], [0], [0], [1], [0, 0, 1, 1], [], []>} : vector<8x128xbf16>, vector<128x512xbf16>, vector<8x512xf32> -> vector<8x512xf32>
    %148 = arith.addf %144, %147 : vector<8x512xf32>
    %149 = vector.extract_strided_slice %148 {offsets = [0, 0], sizes = [8, 128], strides = [1, 1]} : vector<8x512xf32> to vector<8x128xf32>
    %cst_56 = arith.constant 5.000000e-01 : f32
    %150 = vector.broadcast %cst_56 : f32 to vector<8x128xf32>
    %151 = arith.mulf %150, %149 : vector<8x128xf32>
    %152 = math.tanh %151 : vector<8x128xf32>
    %cst_57 = arith.constant 5.000000e-01 : f32
    %153 = vector.broadcast %cst_57 : f32 to vector<8x128xf32>
    %154 = arith.mulf %153, %152 : vector<8x128xf32>
    %cst_58 = arith.constant 5.000000e-01 : f32
    %155 = vector.broadcast %cst_58 : f32 to vector<8x128xf32>
    %156 = arith.addf %154, %155 : vector<8x128xf32>
    %157 = vector.extract_strided_slice %148 {offsets = [0, 128], sizes = [8, 128], strides = [1, 1]} : vector<8x512xf32> to vector<8x128xf32>
    %cst_59 = arith.constant 5.000000e-01 : f32
    %158 = vector.broadcast %cst_59 : f32 to vector<8x128xf32>
    %159 = arith.mulf %158, %157 : vector<8x128xf32>
    %160 = math.tanh %159 : vector<8x128xf32>
    %cst_60 = arith.constant 5.000000e-01 : f32
    %161 = vector.broadcast %cst_60 : f32 to vector<8x128xf32>
    %162 = arith.mulf %161, %160 : vector<8x128xf32>
    %cst_61 = arith.constant 5.000000e-01 : f32
    %163 = vector.broadcast %cst_61 : f32 to vector<8x128xf32>
    %164 = arith.addf %162, %163 : vector<8x128xf32>
    %165 = vector.extract_strided_slice %148 {offsets = [0, 256], sizes = [8, 128], strides = [1, 1]} : vector<8x512xf32> to vector<8x128xf32>
    %166 = math.tanh %165 : vector<8x128xf32>
    %167 = vector.extract_strided_slice %148 {offsets = [0, 384], sizes = [8, 128], strides = [1, 1]} : vector<8x512xf32> to vector<8x128xf32>
    %cst_62 = arith.constant 5.000000e-01 : f32
    %168 = vector.broadcast %cst_62 : f32 to vector<8x128xf32>
    %169 = arith.mulf %168, %167 : vector<8x128xf32>
    %170 = math.tanh %169 : vector<8x128xf32>
    %cst_63 = arith.constant 5.000000e-01 : f32
    %171 = vector.broadcast %cst_63 : f32 to vector<8x128xf32>
    %172 = arith.mulf %171, %170 : vector<8x128xf32>
    %cst_64 = arith.constant 5.000000e-01 : f32
    %173 = vector.broadcast %cst_64 : f32 to vector<8x128xf32>
    %174 = arith.addf %172, %173 : vector<8x128xf32>
    %175 = arith.mulf %164, %133 : vector<8x128xf32>
    %176 = arith.mulf %156, %166 : vector<8x128xf32>
    %177 = arith.addf %175, %176 : vector<8x128xf32>
    %178 = math.tanh %177 : vector<8x128xf32>
    %179 = arith.mulf %174, %178 : vector<8x128xf32>
    %180 = vector.broadcast %c3_i32 : i32 to vector<8x1xi32>
    %181 = arith.cmpi eq, %180, %7 : vector<8x1xi32>
    %182 = vector.shape_cast %181 : vector<8x1xi1> to vector<8x1xi1>
    %183 = vector.broadcast %182 : vector<8x1xi1> to vector<8x128xi1>
    %184 = arith.select %183, %179, %140 : vector<8x128xi1>, vector<8x128xf32>
    %c4_i32 = arith.constant 4 : i32
    %c8_i32_65 = arith.constant 8 : i32
    %185 = arith.muli %c4_i32, %c8_i32_65 : i32
    %186 = tpu.assume_multiple %185, 8 : i32
    %187 = arith.index_cast %186 : i32 to index
    %c0_66 = arith.constant 0 : index
    %188 = vector.load %arg6[%187, %c0_66] : memref<128x512xf32, #tpu.memory_space<vmem>>, vector<8x512xf32>
    %189 = arith.truncf %179 : vector<8x128xf32> to vector<8x128xbf16>
    %c0_67 = arith.constant 0 : index
    %c0_68 = arith.constant 0 : index
    %190 = vector.load %arg4[%c0_67, %c0_68] : memref<128x512xbf16, #tpu.memory_space<vmem>>, vector<128x512xbf16>
    %cst_69 = arith.constant dense<0.000000e+00> : vector<8x512xf32>
    %191 = tpu.matmul %189, %190, %cst_69 {dimension_numbers = #tpu.dot_dimension_numbers<[1], [0], [0], [1], [0, 0, 1, 1], [], []>} : vector<8x128xbf16>, vector<128x512xbf16>, vector<8x512xf32> -> vector<8x512xf32>
    %192 = arith.addf %188, %191 : vector<8x512xf32>
    %193 = vector.extract_strided_slice %192 {offsets = [0, 0], sizes = [8, 128], strides = [1, 1]} : vector<8x512xf32> to vector<8x128xf32>
    %cst_70 = arith.constant 5.000000e-01 : f32
    %194 = vector.broadcast %cst_70 : f32 to vector<8x128xf32>
    %195 = arith.mulf %194, %193 : vector<8x128xf32>
    %196 = math.tanh %195 : vector<8x128xf32>
    %cst_71 = arith.constant 5.000000e-01 : f32
    %197 = vector.broadcast %cst_71 : f32 to vector<8x128xf32>
    %198 = arith.mulf %197, %196 : vector<8x128xf32>
    %cst_72 = arith.constant 5.000000e-01 : f32
    %199 = vector.broadcast %cst_72 : f32 to vector<8x128xf32>
    %200 = arith.addf %198, %199 : vector<8x128xf32>
    %201 = vector.extract_strided_slice %192 {offsets = [0, 128], sizes = [8, 128], strides = [1, 1]} : vector<8x512xf32> to vector<8x128xf32>
    %cst_73 = arith.constant 5.000000e-01 : f32
    %202 = vector.broadcast %cst_73 : f32 to vector<8x128xf32>
    %203 = arith.mulf %202, %201 : vector<8x128xf32>
    %204 = math.tanh %203 : vector<8x128xf32>
    %cst_74 = arith.constant 5.000000e-01 : f32
    %205 = vector.broadcast %cst_74 : f32 to vector<8x128xf32>
    %206 = arith.mulf %205, %204 : vector<8x128xf32>
    %cst_75 = arith.constant 5.000000e-01 : f32
    %207 = vector.broadcast %cst_75 : f32 to vector<8x128xf32>
    %208 = arith.addf %206, %207 : vector<8x128xf32>
    %209 = vector.extract_strided_slice %192 {offsets = [0, 256], sizes = [8, 128], strides = [1, 1]} : vector<8x512xf32> to vector<8x128xf32>
    %210 = math.tanh %209 : vector<8x128xf32>
    %211 = vector.extract_strided_slice %192 {offsets = [0, 384], sizes = [8, 128], strides = [1, 1]} : vector<8x512xf32> to vector<8x128xf32>
    %cst_76 = arith.constant 5.000000e-01 : f32
    %212 = vector.broadcast %cst_76 : f32 to vector<8x128xf32>
    %213 = arith.mulf %212, %211 : vector<8x128xf32>
    %214 = math.tanh %213 : vector<8x128xf32>
    %cst_77 = arith.constant 5.000000e-01 : f32
    %215 = vector.broadcast %cst_77 : f32 to vector<8x128xf32>
    %216 = arith.mulf %215, %214 : vector<8x128xf32>
    %cst_78 = arith.constant 5.000000e-01 : f32
    %217 = vector.broadcast %cst_78 : f32 to vector<8x128xf32>
    %218 = arith.addf %216, %217 : vector<8x128xf32>
    %219 = arith.mulf %208, %177 : vector<8x128xf32>
    %220 = arith.mulf %200, %210 : vector<8x128xf32>
    %221 = arith.addf %219, %220 : vector<8x128xf32>
    %222 = math.tanh %221 : vector<8x128xf32>
    %223 = arith.mulf %218, %222 : vector<8x128xf32>
    %224 = vector.broadcast %c4_i32 : i32 to vector<8x1xi32>
    %225 = arith.cmpi eq, %224, %7 : vector<8x1xi32>
    %226 = vector.shape_cast %225 : vector<8x1xi1> to vector<8x1xi1>
    %227 = vector.broadcast %226 : vector<8x1xi1> to vector<8x128xi1>
    %228 = arith.select %227, %223, %184 : vector<8x128xi1>, vector<8x128xf32>
    %c5_i32 = arith.constant 5 : i32
    %c8_i32_79 = arith.constant 8 : i32
    %229 = arith.muli %c5_i32, %c8_i32_79 : i32
    %230 = tpu.assume_multiple %229, 8 : i32
    %231 = arith.index_cast %230 : i32 to index
    %c0_80 = arith.constant 0 : index
    %232 = vector.load %arg6[%231, %c0_80] : memref<128x512xf32, #tpu.memory_space<vmem>>, vector<8x512xf32>
    %233 = arith.truncf %223 : vector<8x128xf32> to vector<8x128xbf16>
    %c0_81 = arith.constant 0 : index
    %c0_82 = arith.constant 0 : index
    %234 = vector.load %arg4[%c0_81, %c0_82] : memref<128x512xbf16, #tpu.memory_space<vmem>>, vector<128x512xbf16>
    %cst_83 = arith.constant dense<0.000000e+00> : vector<8x512xf32>
    %235 = tpu.matmul %233, %234, %cst_83 {dimension_numbers = #tpu.dot_dimension_numbers<[1], [0], [0], [1], [0, 0, 1, 1], [], []>} : vector<8x128xbf16>, vector<128x512xbf16>, vector<8x512xf32> -> vector<8x512xf32>
    %236 = arith.addf %232, %235 : vector<8x512xf32>
    %237 = vector.extract_strided_slice %236 {offsets = [0, 0], sizes = [8, 128], strides = [1, 1]} : vector<8x512xf32> to vector<8x128xf32>
    %cst_84 = arith.constant 5.000000e-01 : f32
    %238 = vector.broadcast %cst_84 : f32 to vector<8x128xf32>
    %239 = arith.mulf %238, %237 : vector<8x128xf32>
    %240 = math.tanh %239 : vector<8x128xf32>
    %cst_85 = arith.constant 5.000000e-01 : f32
    %241 = vector.broadcast %cst_85 : f32 to vector<8x128xf32>
    %242 = arith.mulf %241, %240 : vector<8x128xf32>
    %cst_86 = arith.constant 5.000000e-01 : f32
    %243 = vector.broadcast %cst_86 : f32 to vector<8x128xf32>
    %244 = arith.addf %242, %243 : vector<8x128xf32>
    %245 = vector.extract_strided_slice %236 {offsets = [0, 128], sizes = [8, 128], strides = [1, 1]} : vector<8x512xf32> to vector<8x128xf32>
    %cst_87 = arith.constant 5.000000e-01 : f32
    %246 = vector.broadcast %cst_87 : f32 to vector<8x128xf32>
    %247 = arith.mulf %246, %245 : vector<8x128xf32>
    %248 = math.tanh %247 : vector<8x128xf32>
    %cst_88 = arith.constant 5.000000e-01 : f32
    %249 = vector.broadcast %cst_88 : f32 to vector<8x128xf32>
    %250 = arith.mulf %249, %248 : vector<8x128xf32>
    %cst_89 = arith.constant 5.000000e-01 : f32
    %251 = vector.broadcast %cst_89 : f32 to vector<8x128xf32>
    %252 = arith.addf %250, %251 : vector<8x128xf32>
    %253 = vector.extract_strided_slice %236 {offsets = [0, 256], sizes = [8, 128], strides = [1, 1]} : vector<8x512xf32> to vector<8x128xf32>
    %254 = math.tanh %253 : vector<8x128xf32>
    %255 = vector.extract_strided_slice %236 {offsets = [0, 384], sizes = [8, 128], strides = [1, 1]} : vector<8x512xf32> to vector<8x128xf32>
    %cst_90 = arith.constant 5.000000e-01 : f32
    %256 = vector.broadcast %cst_90 : f32 to vector<8x128xf32>
    %257 = arith.mulf %256, %255 : vector<8x128xf32>
    %258 = math.tanh %257 : vector<8x128xf32>
    %cst_91 = arith.constant 5.000000e-01 : f32
    %259 = vector.broadcast %cst_91 : f32 to vector<8x128xf32>
    %260 = arith.mulf %259, %258 : vector<8x128xf32>
    %cst_92 = arith.constant 5.000000e-01 : f32
    %261 = vector.broadcast %cst_92 : f32 to vector<8x128xf32>
    %262 = arith.addf %260, %261 : vector<8x128xf32>
    %263 = arith.mulf %252, %221 : vector<8x128xf32>
    %264 = arith.mulf %244, %254 : vector<8x128xf32>
    %265 = arith.addf %263, %264 : vector<8x128xf32>
    %266 = math.tanh %265 : vector<8x128xf32>
    %267 = arith.mulf %262, %266 : vector<8x128xf32>
    %268 = vector.broadcast %c5_i32 : i32 to vector<8x1xi32>
    %269 = arith.cmpi eq, %268, %7 : vector<8x1xi32>
    %270 = vector.shape_cast %269 : vector<8x1xi1> to vector<8x1xi1>
    %271 = vector.broadcast %270 : vector<8x1xi1> to vector<8x128xi1>
    %272 = arith.select %271, %267, %228 : vector<8x128xi1>, vector<8x128xf32>
    %c6_i32 = arith.constant 6 : i32
    %c8_i32_93 = arith.constant 8 : i32
    %273 = arith.muli %c6_i32, %c8_i32_93 : i32
    %274 = tpu.assume_multiple %273, 8 : i32
    %275 = arith.index_cast %274 : i32 to index
    %c0_94 = arith.constant 0 : index
    %276 = vector.load %arg6[%275, %c0_94] : memref<128x512xf32, #tpu.memory_space<vmem>>, vector<8x512xf32>
    %277 = arith.truncf %267 : vector<8x128xf32> to vector<8x128xbf16>
    %c0_95 = arith.constant 0 : index
    %c0_96 = arith.constant 0 : index
    %278 = vector.load %arg4[%c0_95, %c0_96] : memref<128x512xbf16, #tpu.memory_space<vmem>>, vector<128x512xbf16>
    %cst_97 = arith.constant dense<0.000000e+00> : vector<8x512xf32>
    %279 = tpu.matmul %277, %278, %cst_97 {dimension_numbers = #tpu.dot_dimension_numbers<[1], [0], [0], [1], [0, 0, 1, 1], [], []>} : vector<8x128xbf16>, vector<128x512xbf16>, vector<8x512xf32> -> vector<8x512xf32>
    %280 = arith.addf %276, %279 : vector<8x512xf32>
    %281 = vector.extract_strided_slice %280 {offsets = [0, 0], sizes = [8, 128], strides = [1, 1]} : vector<8x512xf32> to vector<8x128xf32>
    %cst_98 = arith.constant 5.000000e-01 : f32
    %282 = vector.broadcast %cst_98 : f32 to vector<8x128xf32>
    %283 = arith.mulf %282, %281 : vector<8x128xf32>
    %284 = math.tanh %283 : vector<8x128xf32>
    %cst_99 = arith.constant 5.000000e-01 : f32
    %285 = vector.broadcast %cst_99 : f32 to vector<8x128xf32>
    %286 = arith.mulf %285, %284 : vector<8x128xf32>
    %cst_100 = arith.constant 5.000000e-01 : f32
    %287 = vector.broadcast %cst_100 : f32 to vector<8x128xf32>
    %288 = arith.addf %286, %287 : vector<8x128xf32>
    %289 = vector.extract_strided_slice %280 {offsets = [0, 128], sizes = [8, 128], strides = [1, 1]} : vector<8x512xf32> to vector<8x128xf32>
    %cst_101 = arith.constant 5.000000e-01 : f32
    %290 = vector.broadcast %cst_101 : f32 to vector<8x128xf32>
    %291 = arith.mulf %290, %289 : vector<8x128xf32>
    %292 = math.tanh %291 : vector<8x128xf32>
    %cst_102 = arith.constant 5.000000e-01 : f32
    %293 = vector.broadcast %cst_102 : f32 to vector<8x128xf32>
    %294 = arith.mulf %293, %292 : vector<8x128xf32>
    %cst_103 = arith.constant 5.000000e-01 : f32
    %295 = vector.broadcast %cst_103 : f32 to vector<8x128xf32>
    %296 = arith.addf %294, %295 : vector<8x128xf32>
    %297 = vector.extract_strided_slice %280 {offsets = [0, 256], sizes = [8, 128], strides = [1, 1]} : vector<8x512xf32> to vector<8x128xf32>
    %298 = math.tanh %297 : vector<8x128xf32>
    %299 = vector.extract_strided_slice %280 {offsets = [0, 384], sizes = [8, 128], strides = [1, 1]} : vector<8x512xf32> to vector<8x128xf32>
    %cst_104 = arith.constant 5.000000e-01 : f32
    %300 = vector.broadcast %cst_104 : f32 to vector<8x128xf32>
    %301 = arith.mulf %300, %299 : vector<8x128xf32>
    %302 = math.tanh %301 : vector<8x128xf32>
    %cst_105 = arith.constant 5.000000e-01 : f32
    %303 = vector.broadcast %cst_105 : f32 to vector<8x128xf32>
    %304 = arith.mulf %303, %302 : vector<8x128xf32>
    %cst_106 = arith.constant 5.000000e-01 : f32
    %305 = vector.broadcast %cst_106 : f32 to vector<8x128xf32>
    %306 = arith.addf %304, %305 : vector<8x128xf32>
    %307 = arith.mulf %296, %265 : vector<8x128xf32>
    %308 = arith.mulf %288, %298 : vector<8x128xf32>
    %309 = arith.addf %307, %308 : vector<8x128xf32>
    %310 = math.tanh %309 : vector<8x128xf32>
    %311 = arith.mulf %306, %310 : vector<8x128xf32>
    %312 = vector.broadcast %c6_i32 : i32 to vector<8x1xi32>
    %313 = arith.cmpi eq, %312, %7 : vector<8x1xi32>
    %314 = vector.shape_cast %313 : vector<8x1xi1> to vector<8x1xi1>
    %315 = vector.broadcast %314 : vector<8x1xi1> to vector<8x128xi1>
    %316 = arith.select %315, %311, %272 : vector<8x128xi1>, vector<8x128xf32>
    %c7_i32 = arith.constant 7 : i32
    %c8_i32_107 = arith.constant 8 : i32
    %317 = arith.muli %c7_i32, %c8_i32_107 : i32
    %318 = tpu.assume_multiple %317, 8 : i32
    %319 = arith.index_cast %318 : i32 to index
    %c0_108 = arith.constant 0 : index
    %320 = vector.load %arg6[%319, %c0_108] : memref<128x512xf32, #tpu.memory_space<vmem>>, vector<8x512xf32>
    %321 = arith.truncf %311 : vector<8x128xf32> to vector<8x128xbf16>
    %c0_109 = arith.constant 0 : index
    %c0_110 = arith.constant 0 : index
    %322 = vector.load %arg4[%c0_109, %c0_110] : memref<128x512xbf16, #tpu.memory_space<vmem>>, vector<128x512xbf16>
    %cst_111 = arith.constant dense<0.000000e+00> : vector<8x512xf32>
    %323 = tpu.matmul %321, %322, %cst_111 {dimension_numbers = #tpu.dot_dimension_numbers<[1], [0], [0], [1], [0, 0, 1, 1], [], []>} : vector<8x128xbf16>, vector<128x512xbf16>, vector<8x512xf32> -> vector<8x512xf32>
    %324 = arith.addf %320, %323 : vector<8x512xf32>
    %325 = vector.extract_strided_slice %324 {offsets = [0, 0], sizes = [8, 128], strides = [1, 1]} : vector<8x512xf32> to vector<8x128xf32>
    %cst_112 = arith.constant 5.000000e-01 : f32
    %326 = vector.broadcast %cst_112 : f32 to vector<8x128xf32>
    %327 = arith.mulf %326, %325 : vector<8x128xf32>
    %328 = math.tanh %327 : vector<8x128xf32>
    %cst_113 = arith.constant 5.000000e-01 : f32
    %329 = vector.broadcast %cst_113 : f32 to vector<8x128xf32>
    %330 = arith.mulf %329, %328 : vector<8x128xf32>
    %cst_114 = arith.constant 5.000000e-01 : f32
    %331 = vector.broadcast %cst_114 : f32 to vector<8x128xf32>
    %332 = arith.addf %330, %331 : vector<8x128xf32>
    %333 = vector.extract_strided_slice %324 {offsets = [0, 128], sizes = [8, 128], strides = [1, 1]} : vector<8x512xf32> to vector<8x128xf32>
    %cst_115 = arith.constant 5.000000e-01 : f32
    %334 = vector.broadcast %cst_115 : f32 to vector<8x128xf32>
    %335 = arith.mulf %334, %333 : vector<8x128xf32>
    %336 = math.tanh %335 : vector<8x128xf32>
    %cst_116 = arith.constant 5.000000e-01 : f32
    %337 = vector.broadcast %cst_116 : f32 to vector<8x128xf32>
    %338 = arith.mulf %337, %336 : vector<8x128xf32>
    %cst_117 = arith.constant 5.000000e-01 : f32
    %339 = vector.broadcast %cst_117 : f32 to vector<8x128xf32>
    %340 = arith.addf %338, %339 : vector<8x128xf32>
    %341 = vector.extract_strided_slice %324 {offsets = [0, 256], sizes = [8, 128], strides = [1, 1]} : vector<8x512xf32> to vector<8x128xf32>
    %342 = math.tanh %341 : vector<8x128xf32>
    %343 = vector.extract_strided_slice %324 {offsets = [0, 384], sizes = [8, 128], strides = [1, 1]} : vector<8x512xf32> to vector<8x128xf32>
    %cst_118 = arith.constant 5.000000e-01 : f32
    %344 = vector.broadcast %cst_118 : f32 to vector<8x128xf32>
    %345 = arith.mulf %344, %343 : vector<8x128xf32>
    %346 = math.tanh %345 : vector<8x128xf32>
    %cst_119 = arith.constant 5.000000e-01 : f32
    %347 = vector.broadcast %cst_119 : f32 to vector<8x128xf32>
    %348 = arith.mulf %347, %346 : vector<8x128xf32>
    %cst_120 = arith.constant 5.000000e-01 : f32
    %349 = vector.broadcast %cst_120 : f32 to vector<8x128xf32>
    %350 = arith.addf %348, %349 : vector<8x128xf32>
    %351 = arith.mulf %340, %309 : vector<8x128xf32>
    %352 = arith.mulf %332, %342 : vector<8x128xf32>
    %353 = arith.addf %351, %352 : vector<8x128xf32>
    %354 = math.tanh %353 : vector<8x128xf32>
    %355 = arith.mulf %350, %354 : vector<8x128xf32>
    %356 = vector.broadcast %c7_i32 : i32 to vector<8x1xi32>
    %357 = arith.cmpi eq, %356, %7 : vector<8x1xi32>
    %358 = vector.shape_cast %357 : vector<8x1xi1> to vector<8x1xi1>
    %359 = vector.broadcast %358 : vector<8x1xi1> to vector<8x128xi1>
    %360 = arith.select %359, %355, %316 : vector<8x128xi1>, vector<8x128xf32>
    %c8_i32_121 = arith.constant 8 : i32
    %c8_i32_122 = arith.constant 8 : i32
    %361 = arith.muli %c8_i32_121, %c8_i32_122 : i32
    %362 = tpu.assume_multiple %361, 8 : i32
    %363 = arith.index_cast %362 : i32 to index
    %c0_123 = arith.constant 0 : index
    %364 = vector.load %arg6[%363, %c0_123] : memref<128x512xf32, #tpu.memory_space<vmem>>, vector<8x512xf32>
    %365 = arith.truncf %355 : vector<8x128xf32> to vector<8x128xbf16>
    %c0_124 = arith.constant 0 : index
    %c0_125 = arith.constant 0 : index
    %366 = vector.load %arg4[%c0_124, %c0_125] : memref<128x512xbf16, #tpu.memory_space<vmem>>, vector<128x512xbf16>
    %cst_126 = arith.constant dense<0.000000e+00> : vector<8x512xf32>
    %367 = tpu.matmul %365, %366, %cst_126 {dimension_numbers = #tpu.dot_dimension_numbers<[1], [0], [0], [1], [0, 0, 1, 1], [], []>} : vector<8x128xbf16>, vector<128x512xbf16>, vector<8x512xf32> -> vector<8x512xf32>
    %368 = arith.addf %364, %367 : vector<8x512xf32>
    %369 = vector.extract_strided_slice %368 {offsets = [0, 0], sizes = [8, 128], strides = [1, 1]} : vector<8x512xf32> to vector<8x128xf32>
    %cst_127 = arith.constant 5.000000e-01 : f32
    %370 = vector.broadcast %cst_127 : f32 to vector<8x128xf32>
    %371 = arith.mulf %370, %369 : vector<8x128xf32>
    %372 = math.tanh %371 : vector<8x128xf32>
    %cst_128 = arith.constant 5.000000e-01 : f32
    %373 = vector.broadcast %cst_128 : f32 to vector<8x128xf32>
    %374 = arith.mulf %373, %372 : vector<8x128xf32>
    %cst_129 = arith.constant 5.000000e-01 : f32
    %375 = vector.broadcast %cst_129 : f32 to vector<8x128xf32>
    %376 = arith.addf %374, %375 : vector<8x128xf32>
    %377 = vector.extract_strided_slice %368 {offsets = [0, 128], sizes = [8, 128], strides = [1, 1]} : vector<8x512xf32> to vector<8x128xf32>
    %cst_130 = arith.constant 5.000000e-01 : f32
    %378 = vector.broadcast %cst_130 : f32 to vector<8x128xf32>
    %379 = arith.mulf %378, %377 : vector<8x128xf32>
    %380 = math.tanh %379 : vector<8x128xf32>
    %cst_131 = arith.constant 5.000000e-01 : f32
    %381 = vector.broadcast %cst_131 : f32 to vector<8x128xf32>
    %382 = arith.mulf %381, %380 : vector<8x128xf32>
    %cst_132 = arith.constant 5.000000e-01 : f32
    %383 = vector.broadcast %cst_132 : f32 to vector<8x128xf32>
    %384 = arith.addf %382, %383 : vector<8x128xf32>
    %385 = vector.extract_strided_slice %368 {offsets = [0, 256], sizes = [8, 128], strides = [1, 1]} : vector<8x512xf32> to vector<8x128xf32>
    %386 = math.tanh %385 : vector<8x128xf32>
    %387 = vector.extract_strided_slice %368 {offsets = [0, 384], sizes = [8, 128], strides = [1, 1]} : vector<8x512xf32> to vector<8x128xf32>
    %cst_133 = arith.constant 5.000000e-01 : f32
    %388 = vector.broadcast %cst_133 : f32 to vector<8x128xf32>
    %389 = arith.mulf %388, %387 : vector<8x128xf32>
    %390 = math.tanh %389 : vector<8x128xf32>
    %cst_134 = arith.constant 5.000000e-01 : f32
    %391 = vector.broadcast %cst_134 : f32 to vector<8x128xf32>
    %392 = arith.mulf %391, %390 : vector<8x128xf32>
    %cst_135 = arith.constant 5.000000e-01 : f32
    %393 = vector.broadcast %cst_135 : f32 to vector<8x128xf32>
    %394 = arith.addf %392, %393 : vector<8x128xf32>
    %395 = arith.mulf %384, %353 : vector<8x128xf32>
    %396 = arith.mulf %376, %386 : vector<8x128xf32>
    %397 = arith.addf %395, %396 : vector<8x128xf32>
    %398 = math.tanh %397 : vector<8x128xf32>
    %399 = arith.mulf %394, %398 : vector<8x128xf32>
    %400 = vector.broadcast %c8_i32_121 : i32 to vector<8x1xi32>
    %401 = arith.cmpi eq, %400, %7 : vector<8x1xi32>
    %402 = vector.shape_cast %401 : vector<8x1xi1> to vector<8x1xi1>
    %403 = vector.broadcast %402 : vector<8x1xi1> to vector<8x128xi1>
    %404 = arith.select %403, %399, %360 : vector<8x128xi1>, vector<8x128xf32>
    %c9_i32 = arith.constant 9 : i32
    %c8_i32_136 = arith.constant 8 : i32
    %405 = arith.muli %c9_i32, %c8_i32_136 : i32
    %406 = tpu.assume_multiple %405, 8 : i32
    %407 = arith.index_cast %406 : i32 to index
    %c0_137 = arith.constant 0 : index
    %408 = vector.load %arg6[%407, %c0_137] : memref<128x512xf32, #tpu.memory_space<vmem>>, vector<8x512xf32>
    %409 = arith.truncf %399 : vector<8x128xf32> to vector<8x128xbf16>
    %c0_138 = arith.constant 0 : index
    %c0_139 = arith.constant 0 : index
    %410 = vector.load %arg4[%c0_138, %c0_139] : memref<128x512xbf16, #tpu.memory_space<vmem>>, vector<128x512xbf16>
    %cst_140 = arith.constant dense<0.000000e+00> : vector<8x512xf32>
    %411 = tpu.matmul %409, %410, %cst_140 {dimension_numbers = #tpu.dot_dimension_numbers<[1], [0], [0], [1], [0, 0, 1, 1], [], []>} : vector<8x128xbf16>, vector<128x512xbf16>, vector<8x512xf32> -> vector<8x512xf32>
    %412 = arith.addf %408, %411 : vector<8x512xf32>
    %413 = vector.extract_strided_slice %412 {offsets = [0, 0], sizes = [8, 128], strides = [1, 1]} : vector<8x512xf32> to vector<8x128xf32>
    %cst_141 = arith.constant 5.000000e-01 : f32
    %414 = vector.broadcast %cst_141 : f32 to vector<8x128xf32>
    %415 = arith.mulf %414, %413 : vector<8x128xf32>
    %416 = math.tanh %415 : vector<8x128xf32>
    %cst_142 = arith.constant 5.000000e-01 : f32
    %417 = vector.broadcast %cst_142 : f32 to vector<8x128xf32>
    %418 = arith.mulf %417, %416 : vector<8x128xf32>
    %cst_143 = arith.constant 5.000000e-01 : f32
    %419 = vector.broadcast %cst_143 : f32 to vector<8x128xf32>
    %420 = arith.addf %418, %419 : vector<8x128xf32>
    %421 = vector.extract_strided_slice %412 {offsets = [0, 128], sizes = [8, 128], strides = [1, 1]} : vector<8x512xf32> to vector<8x128xf32>
    %cst_144 = arith.constant 5.000000e-01 : f32
    %422 = vector.broadcast %cst_144 : f32 to vector<8x128xf32>
    %423 = arith.mulf %422, %421 : vector<8x128xf32>
    %424 = math.tanh %423 : vector<8x128xf32>
    %cst_145 = arith.constant 5.000000e-01 : f32
    %425 = vector.broadcast %cst_145 : f32 to vector<8x128xf32>
    %426 = arith.mulf %425, %424 : vector<8x128xf32>
    %cst_146 = arith.constant 5.000000e-01 : f32
    %427 = vector.broadcast %cst_146 : f32 to vector<8x128xf32>
    %428 = arith.addf %426, %427 : vector<8x128xf32>
    %429 = vector.extract_strided_slice %412 {offsets = [0, 256], sizes = [8, 128], strides = [1, 1]} : vector<8x512xf32> to vector<8x128xf32>
    %430 = math.tanh %429 : vector<8x128xf32>
    %431 = vector.extract_strided_slice %412 {offsets = [0, 384], sizes = [8, 128], strides = [1, 1]} : vector<8x512xf32> to vector<8x128xf32>
    %cst_147 = arith.constant 5.000000e-01 : f32
    %432 = vector.broadcast %cst_147 : f32 to vector<8x128xf32>
    %433 = arith.mulf %432, %431 : vector<8x128xf32>
    %434 = math.tanh %433 : vector<8x128xf32>
    %cst_148 = arith.constant 5.000000e-01 : f32
    %435 = vector.broadcast %cst_148 : f32 to vector<8x128xf32>
    %436 = arith.mulf %435, %434 : vector<8x128xf32>
    %cst_149 = arith.constant 5.000000e-01 : f32
    %437 = vector.broadcast %cst_149 : f32 to vector<8x128xf32>
    %438 = arith.addf %436, %437 : vector<8x128xf32>
    %439 = arith.mulf %428, %397 : vector<8x128xf32>
    %440 = arith.mulf %420, %430 : vector<8x128xf32>
    %441 = arith.addf %439, %440 : vector<8x128xf32>
    %442 = math.tanh %441 : vector<8x128xf32>
    %443 = arith.mulf %438, %442 : vector<8x128xf32>
    %444 = vector.broadcast %c9_i32 : i32 to vector<8x1xi32>
    %445 = arith.cmpi eq, %444, %7 : vector<8x1xi32>
    %446 = vector.shape_cast %445 : vector<8x1xi1> to vector<8x1xi1>
    %447 = vector.broadcast %446 : vector<8x1xi1> to vector<8x128xi1>
    %448 = arith.select %447, %443, %404 : vector<8x128xi1>, vector<8x128xf32>
    %c10_i32 = arith.constant 10 : i32
    %c8_i32_150 = arith.constant 8 : i32
    %449 = arith.muli %c10_i32, %c8_i32_150 : i32
    %450 = tpu.assume_multiple %449, 8 : i32
    %451 = arith.index_cast %450 : i32 to index
    %c0_151 = arith.constant 0 : index
    %452 = vector.load %arg6[%451, %c0_151] : memref<128x512xf32, #tpu.memory_space<vmem>>, vector<8x512xf32>
    %453 = arith.truncf %443 : vector<8x128xf32> to vector<8x128xbf16>
    %c0_152 = arith.constant 0 : index
    %c0_153 = arith.constant 0 : index
    %454 = vector.load %arg4[%c0_152, %c0_153] : memref<128x512xbf16, #tpu.memory_space<vmem>>, vector<128x512xbf16>
    %cst_154 = arith.constant dense<0.000000e+00> : vector<8x512xf32>
    %455 = tpu.matmul %453, %454, %cst_154 {dimension_numbers = #tpu.dot_dimension_numbers<[1], [0], [0], [1], [0, 0, 1, 1], [], []>} : vector<8x128xbf16>, vector<128x512xbf16>, vector<8x512xf32> -> vector<8x512xf32>
    %456 = arith.addf %452, %455 : vector<8x512xf32>
    %457 = vector.extract_strided_slice %456 {offsets = [0, 0], sizes = [8, 128], strides = [1, 1]} : vector<8x512xf32> to vector<8x128xf32>
    %cst_155 = arith.constant 5.000000e-01 : f32
    %458 = vector.broadcast %cst_155 : f32 to vector<8x128xf32>
    %459 = arith.mulf %458, %457 : vector<8x128xf32>
    %460 = math.tanh %459 : vector<8x128xf32>
    %cst_156 = arith.constant 5.000000e-01 : f32
    %461 = vector.broadcast %cst_156 : f32 to vector<8x128xf32>
    %462 = arith.mulf %461, %460 : vector<8x128xf32>
    %cst_157 = arith.constant 5.000000e-01 : f32
    %463 = vector.broadcast %cst_157 : f32 to vector<8x128xf32>
    %464 = arith.addf %462, %463 : vector<8x128xf32>
    %465 = vector.extract_strided_slice %456 {offsets = [0, 128], sizes = [8, 128], strides = [1, 1]} : vector<8x512xf32> to vector<8x128xf32>
    %cst_158 = arith.constant 5.000000e-01 : f32
    %466 = vector.broadcast %cst_158 : f32 to vector<8x128xf32>
    %467 = arith.mulf %466, %465 : vector<8x128xf32>
    %468 = math.tanh %467 : vector<8x128xf32>
    %cst_159 = arith.constant 5.000000e-01 : f32
    %469 = vector.broadcast %cst_159 : f32 to vector<8x128xf32>
    %470 = arith.mulf %469, %468 : vector<8x128xf32>
    %cst_160 = arith.constant 5.000000e-01 : f32
    %471 = vector.broadcast %cst_160 : f32 to vector<8x128xf32>
    %472 = arith.addf %470, %471 : vector<8x128xf32>
    %473 = vector.extract_strided_slice %456 {offsets = [0, 256], sizes = [8, 128], strides = [1, 1]} : vector<8x512xf32> to vector<8x128xf32>
    %474 = math.tanh %473 : vector<8x128xf32>
    %475 = vector.extract_strided_slice %456 {offsets = [0, 384], sizes = [8, 128], strides = [1, 1]} : vector<8x512xf32> to vector<8x128xf32>
    %cst_161 = arith.constant 5.000000e-01 : f32
    %476 = vector.broadcast %cst_161 : f32 to vector<8x128xf32>
    %477 = arith.mulf %476, %475 : vector<8x128xf32>
    %478 = math.tanh %477 : vector<8x128xf32>
    %cst_162 = arith.constant 5.000000e-01 : f32
    %479 = vector.broadcast %cst_162 : f32 to vector<8x128xf32>
    %480 = arith.mulf %479, %478 : vector<8x128xf32>
    %cst_163 = arith.constant 5.000000e-01 : f32
    %481 = vector.broadcast %cst_163 : f32 to vector<8x128xf32>
    %482 = arith.addf %480, %481 : vector<8x128xf32>
    %483 = arith.mulf %472, %441 : vector<8x128xf32>
    %484 = arith.mulf %464, %474 : vector<8x128xf32>
    %485 = arith.addf %483, %484 : vector<8x128xf32>
    %486 = math.tanh %485 : vector<8x128xf32>
    %487 = arith.mulf %482, %486 : vector<8x128xf32>
    %488 = vector.broadcast %c10_i32 : i32 to vector<8x1xi32>
    %489 = arith.cmpi eq, %488, %7 : vector<8x1xi32>
    %490 = vector.shape_cast %489 : vector<8x1xi1> to vector<8x1xi1>
    %491 = vector.broadcast %490 : vector<8x1xi1> to vector<8x128xi1>
    %492 = arith.select %491, %487, %448 : vector<8x128xi1>, vector<8x128xf32>
    %c11_i32 = arith.constant 11 : i32
    %c8_i32_164 = arith.constant 8 : i32
    %493 = arith.muli %c11_i32, %c8_i32_164 : i32
    %494 = tpu.assume_multiple %493, 8 : i32
    %495 = arith.index_cast %494 : i32 to index
    %c0_165 = arith.constant 0 : index
    %496 = vector.load %arg6[%495, %c0_165] : memref<128x512xf32, #tpu.memory_space<vmem>>, vector<8x512xf32>
    %497 = arith.truncf %487 : vector<8x128xf32> to vector<8x128xbf16>
    %c0_166 = arith.constant 0 : index
    %c0_167 = arith.constant 0 : index
    %498 = vector.load %arg4[%c0_166, %c0_167] : memref<128x512xbf16, #tpu.memory_space<vmem>>, vector<128x512xbf16>
    %cst_168 = arith.constant dense<0.000000e+00> : vector<8x512xf32>
    %499 = tpu.matmul %497, %498, %cst_168 {dimension_numbers = #tpu.dot_dimension_numbers<[1], [0], [0], [1], [0, 0, 1, 1], [], []>} : vector<8x128xbf16>, vector<128x512xbf16>, vector<8x512xf32> -> vector<8x512xf32>
    %500 = arith.addf %496, %499 : vector<8x512xf32>
    %501 = vector.extract_strided_slice %500 {offsets = [0, 0], sizes = [8, 128], strides = [1, 1]} : vector<8x512xf32> to vector<8x128xf32>
    %cst_169 = arith.constant 5.000000e-01 : f32
    %502 = vector.broadcast %cst_169 : f32 to vector<8x128xf32>
    %503 = arith.mulf %502, %501 : vector<8x128xf32>
    %504 = math.tanh %503 : vector<8x128xf32>
    %cst_170 = arith.constant 5.000000e-01 : f32
    %505 = vector.broadcast %cst_170 : f32 to vector<8x128xf32>
    %506 = arith.mulf %505, %504 : vector<8x128xf32>
    %cst_171 = arith.constant 5.000000e-01 : f32
    %507 = vector.broadcast %cst_171 : f32 to vector<8x128xf32>
    %508 = arith.addf %506, %507 : vector<8x128xf32>
    %509 = vector.extract_strided_slice %500 {offsets = [0, 128], sizes = [8, 128], strides = [1, 1]} : vector<8x512xf32> to vector<8x128xf32>
    %cst_172 = arith.constant 5.000000e-01 : f32
    %510 = vector.broadcast %cst_172 : f32 to vector<8x128xf32>
    %511 = arith.mulf %510, %509 : vector<8x128xf32>
    %512 = math.tanh %511 : vector<8x128xf32>
    %cst_173 = arith.constant 5.000000e-01 : f32
    %513 = vector.broadcast %cst_173 : f32 to vector<8x128xf32>
    %514 = arith.mulf %513, %512 : vector<8x128xf32>
    %cst_174 = arith.constant 5.000000e-01 : f32
    %515 = vector.broadcast %cst_174 : f32 to vector<8x128xf32>
    %516 = arith.addf %514, %515 : vector<8x128xf32>
    %517 = vector.extract_strided_slice %500 {offsets = [0, 256], sizes = [8, 128], strides = [1, 1]} : vector<8x512xf32> to vector<8x128xf32>
    %518 = math.tanh %517 : vector<8x128xf32>
    %519 = vector.extract_strided_slice %500 {offsets = [0, 384], sizes = [8, 128], strides = [1, 1]} : vector<8x512xf32> to vector<8x128xf32>
    %cst_175 = arith.constant 5.000000e-01 : f32
    %520 = vector.broadcast %cst_175 : f32 to vector<8x128xf32>
    %521 = arith.mulf %520, %519 : vector<8x128xf32>
    %522 = math.tanh %521 : vector<8x128xf32>
    %cst_176 = arith.constant 5.000000e-01 : f32
    %523 = vector.broadcast %cst_176 : f32 to vector<8x128xf32>
    %524 = arith.mulf %523, %522 : vector<8x128xf32>
    %cst_177 = arith.constant 5.000000e-01 : f32
    %525 = vector.broadcast %cst_177 : f32 to vector<8x128xf32>
    %526 = arith.addf %524, %525 : vector<8x128xf32>
    %527 = arith.mulf %516, %485 : vector<8x128xf32>
    %528 = arith.mulf %508, %518 : vector<8x128xf32>
    %529 = arith.addf %527, %528 : vector<8x128xf32>
    %530 = math.tanh %529 : vector<8x128xf32>
    %531 = arith.mulf %526, %530 : vector<8x128xf32>
    %532 = vector.broadcast %c11_i32 : i32 to vector<8x1xi32>
    %533 = arith.cmpi eq, %532, %7 : vector<8x1xi32>
    %534 = vector.shape_cast %533 : vector<8x1xi1> to vector<8x1xi1>
    %535 = vector.broadcast %534 : vector<8x1xi1> to vector<8x128xi1>
    %536 = arith.select %535, %531, %492 : vector<8x128xi1>, vector<8x128xf32>
    %c12_i32 = arith.constant 12 : i32
    %c8_i32_178 = arith.constant 8 : i32
    %537 = arith.muli %c12_i32, %c8_i32_178 : i32
    %538 = tpu.assume_multiple %537, 8 : i32
    %539 = arith.index_cast %538 : i32 to index
    %c0_179 = arith.constant 0 : index
    %540 = vector.load %arg6[%539, %c0_179] : memref<128x512xf32, #tpu.memory_space<vmem>>, vector<8x512xf32>
    %541 = arith.truncf %531 : vector<8x128xf32> to vector<8x128xbf16>
    %c0_180 = arith.constant 0 : index
    %c0_181 = arith.constant 0 : index
    %542 = vector.load %arg4[%c0_180, %c0_181] : memref<128x512xbf16, #tpu.memory_space<vmem>>, vector<128x512xbf16>
    %cst_182 = arith.constant dense<0.000000e+00> : vector<8x512xf32>
    %543 = tpu.matmul %541, %542, %cst_182 {dimension_numbers = #tpu.dot_dimension_numbers<[1], [0], [0], [1], [0, 0, 1, 1], [], []>} : vector<8x128xbf16>, vector<128x512xbf16>, vector<8x512xf32> -> vector<8x512xf32>
    %544 = arith.addf %540, %543 : vector<8x512xf32>
    %545 = vector.extract_strided_slice %544 {offsets = [0, 0], sizes = [8, 128], strides = [1, 1]} : vector<8x512xf32> to vector<8x128xf32>
    %cst_183 = arith.constant 5.000000e-01 : f32
    %546 = vector.broadcast %cst_183 : f32 to vector<8x128xf32>
    %547 = arith.mulf %546, %545 : vector<8x128xf32>
    %548 = math.tanh %547 : vector<8x128xf32>
    %cst_184 = arith.constant 5.000000e-01 : f32
    %549 = vector.broadcast %cst_184 : f32 to vector<8x128xf32>
    %550 = arith.mulf %549, %548 : vector<8x128xf32>
    %cst_185 = arith.constant 5.000000e-01 : f32
    %551 = vector.broadcast %cst_185 : f32 to vector<8x128xf32>
    %552 = arith.addf %550, %551 : vector<8x128xf32>
    %553 = vector.extract_strided_slice %544 {offsets = [0, 128], sizes = [8, 128], strides = [1, 1]} : vector<8x512xf32> to vector<8x128xf32>
    %cst_186 = arith.constant 5.000000e-01 : f32
    %554 = vector.broadcast %cst_186 : f32 to vector<8x128xf32>
    %555 = arith.mulf %554, %553 : vector<8x128xf32>
    %556 = math.tanh %555 : vector<8x128xf32>
    %cst_187 = arith.constant 5.000000e-01 : f32
    %557 = vector.broadcast %cst_187 : f32 to vector<8x128xf32>
    %558 = arith.mulf %557, %556 : vector<8x128xf32>
    %cst_188 = arith.constant 5.000000e-01 : f32
    %559 = vector.broadcast %cst_188 : f32 to vector<8x128xf32>
    %560 = arith.addf %558, %559 : vector<8x128xf32>
    %561 = vector.extract_strided_slice %544 {offsets = [0, 256], sizes = [8, 128], strides = [1, 1]} : vector<8x512xf32> to vector<8x128xf32>
    %562 = math.tanh %561 : vector<8x128xf32>
    %563 = vector.extract_strided_slice %544 {offsets = [0, 384], sizes = [8, 128], strides = [1, 1]} : vector<8x512xf32> to vector<8x128xf32>
    %cst_189 = arith.constant 5.000000e-01 : f32
    %564 = vector.broadcast %cst_189 : f32 to vector<8x128xf32>
    %565 = arith.mulf %564, %563 : vector<8x128xf32>
    %566 = math.tanh %565 : vector<8x128xf32>
    %cst_190 = arith.constant 5.000000e-01 : f32
    %567 = vector.broadcast %cst_190 : f32 to vector<8x128xf32>
    %568 = arith.mulf %567, %566 : vector<8x128xf32>
    %cst_191 = arith.constant 5.000000e-01 : f32
    %569 = vector.broadcast %cst_191 : f32 to vector<8x128xf32>
    %570 = arith.addf %568, %569 : vector<8x128xf32>
    %571 = arith.mulf %560, %529 : vector<8x128xf32>
    %572 = arith.mulf %552, %562 : vector<8x128xf32>
    %573 = arith.addf %571, %572 : vector<8x128xf32>
    %574 = math.tanh %573 : vector<8x128xf32>
    %575 = arith.mulf %570, %574 : vector<8x128xf32>
    %576 = vector.broadcast %c12_i32 : i32 to vector<8x1xi32>
    %577 = arith.cmpi eq, %576, %7 : vector<8x1xi32>
    %578 = vector.shape_cast %577 : vector<8x1xi1> to vector<8x1xi1>
    %579 = vector.broadcast %578 : vector<8x1xi1> to vector<8x128xi1>
    %580 = arith.select %579, %575, %536 : vector<8x128xi1>, vector<8x128xf32>
    %c13_i32 = arith.constant 13 : i32
    %c8_i32_192 = arith.constant 8 : i32
    %581 = arith.muli %c13_i32, %c8_i32_192 : i32
    %582 = tpu.assume_multiple %581, 8 : i32
    %583 = arith.index_cast %582 : i32 to index
    %c0_193 = arith.constant 0 : index
    %584 = vector.load %arg6[%583, %c0_193] : memref<128x512xf32, #tpu.memory_space<vmem>>, vector<8x512xf32>
    %585 = arith.truncf %575 : vector<8x128xf32> to vector<8x128xbf16>
    %c0_194 = arith.constant 0 : index
    %c0_195 = arith.constant 0 : index
    %586 = vector.load %arg4[%c0_194, %c0_195] : memref<128x512xbf16, #tpu.memory_space<vmem>>, vector<128x512xbf16>
    %cst_196 = arith.constant dense<0.000000e+00> : vector<8x512xf32>
    %587 = tpu.matmul %585, %586, %cst_196 {dimension_numbers = #tpu.dot_dimension_numbers<[1], [0], [0], [1], [0, 0, 1, 1], [], []>} : vector<8x128xbf16>, vector<128x512xbf16>, vector<8x512xf32> -> vector<8x512xf32>
    %588 = arith.addf %584, %587 : vector<8x512xf32>
    %589 = vector.extract_strided_slice %588 {offsets = [0, 0], sizes = [8, 128], strides = [1, 1]} : vector<8x512xf32> to vector<8x128xf32>
    %cst_197 = arith.constant 5.000000e-01 : f32
    %590 = vector.broadcast %cst_197 : f32 to vector<8x128xf32>
    %591 = arith.mulf %590, %589 : vector<8x128xf32>
    %592 = math.tanh %591 : vector<8x128xf32>
    %cst_198 = arith.constant 5.000000e-01 : f32
    %593 = vector.broadcast %cst_198 : f32 to vector<8x128xf32>
    %594 = arith.mulf %593, %592 : vector<8x128xf32>
    %cst_199 = arith.constant 5.000000e-01 : f32
    %595 = vector.broadcast %cst_199 : f32 to vector<8x128xf32>
    %596 = arith.addf %594, %595 : vector<8x128xf32>
    %597 = vector.extract_strided_slice %588 {offsets = [0, 128], sizes = [8, 128], strides = [1, 1]} : vector<8x512xf32> to vector<8x128xf32>
    %cst_200 = arith.constant 5.000000e-01 : f32
    %598 = vector.broadcast %cst_200 : f32 to vector<8x128xf32>
    %599 = arith.mulf %598, %597 : vector<8x128xf32>
    %600 = math.tanh %599 : vector<8x128xf32>
    %cst_201 = arith.constant 5.000000e-01 : f32
    %601 = vector.broadcast %cst_201 : f32 to vector<8x128xf32>
    %602 = arith.mulf %601, %600 : vector<8x128xf32>
    %cst_202 = arith.constant 5.000000e-01 : f32
    %603 = vector.broadcast %cst_202 : f32 to vector<8x128xf32>
    %604 = arith.addf %602, %603 : vector<8x128xf32>
    %605 = vector.extract_strided_slice %588 {offsets = [0, 256], sizes = [8, 128], strides = [1, 1]} : vector<8x512xf32> to vector<8x128xf32>
    %606 = math.tanh %605 : vector<8x128xf32>
    %607 = vector.extract_strided_slice %588 {offsets = [0, 384], sizes = [8, 128], strides = [1, 1]} : vector<8x512xf32> to vector<8x128xf32>
    %cst_203 = arith.constant 5.000000e-01 : f32
    %608 = vector.broadcast %cst_203 : f32 to vector<8x128xf32>
    %609 = arith.mulf %608, %607 : vector<8x128xf32>
    %610 = math.tanh %609 : vector<8x128xf32>
    %cst_204 = arith.constant 5.000000e-01 : f32
    %611 = vector.broadcast %cst_204 : f32 to vector<8x128xf32>
    %612 = arith.mulf %611, %610 : vector<8x128xf32>
    %cst_205 = arith.constant 5.000000e-01 : f32
    %613 = vector.broadcast %cst_205 : f32 to vector<8x128xf32>
    %614 = arith.addf %612, %613 : vector<8x128xf32>
    %615 = arith.mulf %604, %573 : vector<8x128xf32>
    %616 = arith.mulf %596, %606 : vector<8x128xf32>
    %617 = arith.addf %615, %616 : vector<8x128xf32>
    %618 = math.tanh %617 : vector<8x128xf32>
    %619 = arith.mulf %614, %618 : vector<8x128xf32>
    %620 = vector.broadcast %c13_i32 : i32 to vector<8x1xi32>
    %621 = arith.cmpi eq, %620, %7 : vector<8x1xi32>
    %622 = vector.shape_cast %621 : vector<8x1xi1> to vector<8x1xi1>
    %623 = vector.broadcast %622 : vector<8x1xi1> to vector<8x128xi1>
    %624 = arith.select %623, %619, %580 : vector<8x128xi1>, vector<8x128xf32>
    %c14_i32 = arith.constant 14 : i32
    %c8_i32_206 = arith.constant 8 : i32
    %625 = arith.muli %c14_i32, %c8_i32_206 : i32
    %626 = tpu.assume_multiple %625, 8 : i32
    %627 = arith.index_cast %626 : i32 to index
    %c0_207 = arith.constant 0 : index
    %628 = vector.load %arg6[%627, %c0_207] : memref<128x512xf32, #tpu.memory_space<vmem>>, vector<8x512xf32>
    %629 = arith.truncf %619 : vector<8x128xf32> to vector<8x128xbf16>
    %c0_208 = arith.constant 0 : index
    %c0_209 = arith.constant 0 : index
    %630 = vector.load %arg4[%c0_208, %c0_209] : memref<128x512xbf16, #tpu.memory_space<vmem>>, vector<128x512xbf16>
    %cst_210 = arith.constant dense<0.000000e+00> : vector<8x512xf32>
    %631 = tpu.matmul %629, %630, %cst_210 {dimension_numbers = #tpu.dot_dimension_numbers<[1], [0], [0], [1], [0, 0, 1, 1], [], []>} : vector<8x128xbf16>, vector<128x512xbf16>, vector<8x512xf32> -> vector<8x512xf32>
    %632 = arith.addf %628, %631 : vector<8x512xf32>
    %633 = vector.extract_strided_slice %632 {offsets = [0, 0], sizes = [8, 128], strides = [1, 1]} : vector<8x512xf32> to vector<8x128xf32>
    %cst_211 = arith.constant 5.000000e-01 : f32
    %634 = vector.broadcast %cst_211 : f32 to vector<8x128xf32>
    %635 = arith.mulf %634, %633 : vector<8x128xf32>
    %636 = math.tanh %635 : vector<8x128xf32>
    %cst_212 = arith.constant 5.000000e-01 : f32
    %637 = vector.broadcast %cst_212 : f32 to vector<8x128xf32>
    %638 = arith.mulf %637, %636 : vector<8x128xf32>
    %cst_213 = arith.constant 5.000000e-01 : f32
    %639 = vector.broadcast %cst_213 : f32 to vector<8x128xf32>
    %640 = arith.addf %638, %639 : vector<8x128xf32>
    %641 = vector.extract_strided_slice %632 {offsets = [0, 128], sizes = [8, 128], strides = [1, 1]} : vector<8x512xf32> to vector<8x128xf32>
    %cst_214 = arith.constant 5.000000e-01 : f32
    %642 = vector.broadcast %cst_214 : f32 to vector<8x128xf32>
    %643 = arith.mulf %642, %641 : vector<8x128xf32>
    %644 = math.tanh %643 : vector<8x128xf32>
    %cst_215 = arith.constant 5.000000e-01 : f32
    %645 = vector.broadcast %cst_215 : f32 to vector<8x128xf32>
    %646 = arith.mulf %645, %644 : vector<8x128xf32>
    %cst_216 = arith.constant 5.000000e-01 : f32
    %647 = vector.broadcast %cst_216 : f32 to vector<8x128xf32>
    %648 = arith.addf %646, %647 : vector<8x128xf32>
    %649 = vector.extract_strided_slice %632 {offsets = [0, 256], sizes = [8, 128], strides = [1, 1]} : vector<8x512xf32> to vector<8x128xf32>
    %650 = math.tanh %649 : vector<8x128xf32>
    %651 = vector.extract_strided_slice %632 {offsets = [0, 384], sizes = [8, 128], strides = [1, 1]} : vector<8x512xf32> to vector<8x128xf32>
    %cst_217 = arith.constant 5.000000e-01 : f32
    %652 = vector.broadcast %cst_217 : f32 to vector<8x128xf32>
    %653 = arith.mulf %652, %651 : vector<8x128xf32>
    %654 = math.tanh %653 : vector<8x128xf32>
    %cst_218 = arith.constant 5.000000e-01 : f32
    %655 = vector.broadcast %cst_218 : f32 to vector<8x128xf32>
    %656 = arith.mulf %655, %654 : vector<8x128xf32>
    %cst_219 = arith.constant 5.000000e-01 : f32
    %657 = vector.broadcast %cst_219 : f32 to vector<8x128xf32>
    %658 = arith.addf %656, %657 : vector<8x128xf32>
    %659 = arith.mulf %648, %617 : vector<8x128xf32>
    %660 = arith.mulf %640, %650 : vector<8x128xf32>
    %661 = arith.addf %659, %660 : vector<8x128xf32>
    %662 = math.tanh %661 : vector<8x128xf32>
    %663 = arith.mulf %658, %662 : vector<8x128xf32>
    %664 = vector.broadcast %c14_i32 : i32 to vector<8x1xi32>
    %665 = arith.cmpi eq, %664, %7 : vector<8x1xi32>
    %666 = vector.shape_cast %665 : vector<8x1xi1> to vector<8x1xi1>
    %667 = vector.broadcast %666 : vector<8x1xi1> to vector<8x128xi1>
    %668 = arith.select %667, %663, %624 : vector<8x128xi1>, vector<8x128xf32>
    %c15_i32 = arith.constant 15 : i32
    %c8_i32_220 = arith.constant 8 : i32
    %669 = arith.muli %c15_i32, %c8_i32_220 : i32
    %670 = tpu.assume_multiple %669, 8 : i32
    %671 = arith.index_cast %670 : i32 to index
    %c0_221 = arith.constant 0 : index
    %672 = vector.load %arg6[%671, %c0_221] : memref<128x512xf32, #tpu.memory_space<vmem>>, vector<8x512xf32>
    %673 = arith.truncf %663 : vector<8x128xf32> to vector<8x128xbf16>
    %c0_222 = arith.constant 0 : index
    %c0_223 = arith.constant 0 : index
    %674 = vector.load %arg4[%c0_222, %c0_223] : memref<128x512xbf16, #tpu.memory_space<vmem>>, vector<128x512xbf16>
    %cst_224 = arith.constant dense<0.000000e+00> : vector<8x512xf32>
    %675 = tpu.matmul %673, %674, %cst_224 {dimension_numbers = #tpu.dot_dimension_numbers<[1], [0], [0], [1], [0, 0, 1, 1], [], []>} : vector<8x128xbf16>, vector<128x512xbf16>, vector<8x512xf32> -> vector<8x512xf32>
    %676 = arith.addf %672, %675 : vector<8x512xf32>
    %677 = vector.extract_strided_slice %676 {offsets = [0, 0], sizes = [8, 128], strides = [1, 1]} : vector<8x512xf32> to vector<8x128xf32>
    %cst_225 = arith.constant 5.000000e-01 : f32
    %678 = vector.broadcast %cst_225 : f32 to vector<8x128xf32>
    %679 = arith.mulf %678, %677 : vector<8x128xf32>
    %680 = math.tanh %679 : vector<8x128xf32>
    %cst_226 = arith.constant 5.000000e-01 : f32
    %681 = vector.broadcast %cst_226 : f32 to vector<8x128xf32>
    %682 = arith.mulf %681, %680 : vector<8x128xf32>
    %cst_227 = arith.constant 5.000000e-01 : f32
    %683 = vector.broadcast %cst_227 : f32 to vector<8x128xf32>
    %684 = arith.addf %682, %683 : vector<8x128xf32>
    %685 = vector.extract_strided_slice %676 {offsets = [0, 128], sizes = [8, 128], strides = [1, 1]} : vector<8x512xf32> to vector<8x128xf32>
    %cst_228 = arith.constant 5.000000e-01 : f32
    %686 = vector.broadcast %cst_228 : f32 to vector<8x128xf32>
    %687 = arith.mulf %686, %685 : vector<8x128xf32>
    %688 = math.tanh %687 : vector<8x128xf32>
    %cst_229 = arith.constant 5.000000e-01 : f32
    %689 = vector.broadcast %cst_229 : f32 to vector<8x128xf32>
    %690 = arith.mulf %689, %688 : vector<8x128xf32>
    %cst_230 = arith.constant 5.000000e-01 : f32
    %691 = vector.broadcast %cst_230 : f32 to vector<8x128xf32>
    %692 = arith.addf %690, %691 : vector<8x128xf32>
    %693 = vector.extract_strided_slice %676 {offsets = [0, 256], sizes = [8, 128], strides = [1, 1]} : vector<8x512xf32> to vector<8x128xf32>
    %694 = math.tanh %693 : vector<8x128xf32>
    %695 = vector.extract_strided_slice %676 {offsets = [0, 384], sizes = [8, 128], strides = [1, 1]} : vector<8x512xf32> to vector<8x128xf32>
    %cst_231 = arith.constant 5.000000e-01 : f32
    %696 = vector.broadcast %cst_231 : f32 to vector<8x128xf32>
    %697 = arith.mulf %696, %695 : vector<8x128xf32>
    %698 = math.tanh %697 : vector<8x128xf32>
    %cst_232 = arith.constant 5.000000e-01 : f32
    %699 = vector.broadcast %cst_232 : f32 to vector<8x128xf32>
    %700 = arith.mulf %699, %698 : vector<8x128xf32>
    %cst_233 = arith.constant 5.000000e-01 : f32
    %701 = vector.broadcast %cst_233 : f32 to vector<8x128xf32>
    %702 = arith.addf %700, %701 : vector<8x128xf32>
    %703 = arith.mulf %692, %661 : vector<8x128xf32>
    %704 = arith.mulf %684, %694 : vector<8x128xf32>
    %705 = arith.addf %703, %704 : vector<8x128xf32>
    %706 = math.tanh %705 : vector<8x128xf32>
    %707 = arith.mulf %702, %706 : vector<8x128xf32>
    %708 = vector.broadcast %c15_i32 : i32 to vector<8x1xi32>
    %709 = arith.cmpi eq, %708, %7 : vector<8x1xi32>
    %710 = vector.shape_cast %709 : vector<8x1xi1> to vector<8x1xi1>
    %711 = vector.broadcast %710 : vector<8x1xi1> to vector<8x128xi1>
    %712 = arith.select %711, %707, %668 : vector<8x128xi1>, vector<8x128xf32>
    %c16_i32 = arith.constant 16 : i32
    %c0_234 = arith.constant 0 : index
    %c0_235 = arith.constant 0 : index
    %713 = vector.load %arg5[%c0_234, %c0_235] : memref<8x128xf32, #tpu.memory_space<vmem>>, vector<8x128xf32>
    tpu.vector_store %arg5[%c0_234, %c0_235], %712 {strides = array<i32>} : memref<8x128xf32, #tpu.memory_space<vmem>>, vector<8x128xf32>,
    return
  }
  func.func @transform_0(%arg0: i32) -> (i32, i32, i32) {
    %c0_i32 = arith.constant 0 : i32
    %c0_i32_0 = arith.constant 0 : i32
    %c0_i32_1 = arith.constant 0 : i32
    return %arg0, %c0_i32, %c0_i32_0 : i32, i32, i32
  }
  func.func @transform_1(%arg0: i32) -> (i32, i32) {
    %c0_i32 = arith.constant 0 : i32
    %c0_i32_0 = arith.constant 0 : i32
    return %arg0, %c0_i32 : i32, i32
  }
  func.func @transform_2(%arg0: i32) -> (i32, i32) {
    %c0_i32 = arith.constant 0 : i32
    %c0_i32_0 = arith.constant 0 : i32
    %c0_i32_1 = arith.constant 0 : i32
    return %c0_i32, %c0_i32_0 : i32, i32
  }
  func.func @transform_3(%arg0: i32) -> (i32, i32) {
    %c0_i32 = arith.constant 0 : i32
    %c0_i32_0 = arith.constant 0 : i32
    %c0_i32_1 = arith.constant 0 : i32
    return %c0_i32, %c0_i32_0 : i32, i32
  }
  func.func @transform_4(%arg0: i32) -> (i32, i32) {
    %c0_i32 = arith.constant 0 : i32
    %c0_i32_0 = arith.constant 0 : i32
    return %arg0, %c0_i32 : i32, i32
  }
}

</mosaic_0001>

<bundles_post_ra>
// kernel: tpu_custom_call.1
= control target key start
LH: loop header
LB: loop body
LE: loop exit
PB: predicated region body
PF: predicated region fallthrough
CT: control target
= control target key end

     0   :  { %9 = vsyncpa [#allocation4], 0  ;;  %s4898_s0 = inlined_call_operand.vmem [shape: f32[2,128,8], index: 0, kind: input, shape index: {}]   ;;  %s4899_s1 = inlined_call_operand.vmem [shape: s32[16,1], index: 1, kind: input, shape index: {}]   ;;  %s4900_s2 = inlined_call_operand.vmem [shape: f32[8,512], index: 2, kind: input, shape index: {}]   ;;  %s4901_s3 = inlined_call_operand.vmem [shape: bf16[128,512], index: 3, kind: input, shape index: {}]   ;;  %s4902_s4 = inlined_call_operand.hbm [shape: f32[16,128], index: 4, kind: output, shape index: {}]  }
   0x1   :  { %11 = vsyncpa [#allocation4 + $0x1], 0  ;;  %s3350_s15 = smov 0   ;;  %s3352_s16 = smov 0  }
   0x2   :  { %s3354_s17 = smov 0   ;;  %s3356_s18 = smov 0  }
   0x3 LB: > { %s3371_s19 = sadd.s32 4294967295, %s3320_s18   ;;  %s2867_s20 = sadd.s32 4294967294, %s3320_s18   ;;  %s3320_s18 = sphi %s3356_s18, %s5011_s18   ;;  %s3316_s17 = sphi %s3354_s17, %s5010_s17   ;;  %s3312_s16 = sphi %s3352_s16, %s5009_s16   ;;  %s3308_s15 = sphi %s3350_s15, %s5008_s15  }
   0x4   : > { %s3375_s21 = sadd.s32 1, %s3320_s18   ;;  %s118_s22 = sadd.s32 1, %s3316_s17 }
   0x5   : > { %s115_s23 = ssub.s32 %s3320_s18, %s3375_s21  ;;  %p128_p0 = scmp.ne.s32.totalorder %s3316_s17, %s3312_s16 }
   0x6   : > { %p116_p1 = scmp.eq.s32.totalorder %s115_s23, 0  ;;  %p129_p2 = scmp.eq.s32.totalorder %s3371_s19, 1 }
   0x7   : > { %p134_p3 = scmp.ne.s32.totalorder %s3312_s16, %s3308_s15  ;;  %p135_p4 = scmp.eq.s32.totalorder %s2867_s20, 1 }
   0x8   : > { %s3386_s24 = scalar_select %p116_p1, %s3316_s17, %s118_s22  }
   0x9   : > { %p3388_p5 = por %p129_p2, %p128_p0  ;;  %p3392_p6 = por %p135_p4, %p134_p3 }
   0xa   : > { %p2870_p7 = scmp.ge.s32.totalorder %s3320_s18, 1  ;;  %p174_p8 = scmp.lt.s32.totalorder %s3320_s18, 3 }
   0xc   : > { %p175_p9 = pnand %p2870_p7, %p174_p8 }
   0xe   : > { %178 = sbr.rel (%p175_p9) target bundleno = 3926 (0xf56), region = 36 }
  0x13   : > { %v231_v0 = vld [vmem:[%s4900_s2 + $0x8] sm:$0xff]  ;;  %v230_v1 = vld [vmem:[%s4900_s2] sm:$0xff]  ;;  %v233_v2 = vld [vmem:[%s4900_s2 + $0x18] sm:$0xff]  ;;  %p204_p10 = scmp.lt.s32.totalorder %s3371_s19, 1  ;;  %v3322_v4 = vmov 0.0   ;;  %vm234_vm0 = vcmask 64512  }
  0x14   : > { %313 = vmatprep.subr.mxu0 %v231_v0  ;;  %474 = vmatprep.subr.mxu1 %v233_v2  ;;  %v232_v3 = vld [vmem:[%s4900_s2 + $0x10] sm:$0xff]  ;;  %v3431_v7 = vld [vmem:[%s4901_s3 + $0xec] ss:$16 sps:$4 sm:$0xff]   ;;  %v4903_v8 = vmov 0   ;;  %v3450_v11 = vld [vmem:[%s4901_s3 + $0xe8] ss:$16 sps:$4 sm:$0xff]  }
  0x15   : > { %314 = vmatpush1.msra.mxu0 %v230_v1  ;;  %347 = vmatprep.mubr.f32.mxu0 %v3322_v4  ;;  %v3415_v5 = vld [vmem:[%s4901_s3 + $0xe4] ss:$16 sps:$4 sm:$0xff]   ;;  %s3418_s11 = scalar_select %p204_p10, %s3371_s19, 1  ;;  %v3424_v6 = vld [vmem:[%s4901_s3 + $0xe0] ss:$16 sps:$4 sm:$0xff]  }
  0x16   : > { %475 = vmatpush1.msra.mxu1 %v232_v3  ;;  %508 = vmatprep.mubr.f32.mxu1 %v3322_v4  ;;  %v3442_v9 = vld [vmem:[%s4901_s3 + $0xc4] ss:$16 sps:$4 sm:$0xff]   ;;  %v3462_v13 = vld [vmem:[%s4901_s3 + $0xc0] ss:$16 sps:$4 sm:$0xff]   ;;  %v3472_v15 = vld [vmem:[%s4901_s3 + $0xcc] ss:$16 sps:$4 sm:$0xff]  }
  0x17   : > { %870 = vmatprep.subr.bf16.mxu0 %v3415_v5  ;;  %s2944_s14 = sshll.u32 %s3418_s11, 7  ;;  %2986 = vset.pattern.permute.xlu0 %v4903_v8  ;;  %v3467_v14 = vld [vmem:[%s4901_s3 + $0xa4] ss:$16 sps:$4 sm:$0xff]   ;;  %v3478_v16 = vld [vmem:[%s4901_s3 + $0xc8] ss:$16 sps:$4 sm:$0xff]   ;;  %s2874_s13 = sshll.u32 %s3418_s11, 3 }
  0x18   : > { %s3437_s28 = scalar_lea.vmem %s4898_s0, %s2944_s14  ;;  %2987 = vset.pattern.permute.xlu1 %v4903_v8  ;;  %911 = vmatprep.subr.bf16.mxu1 %v3431_v7  ;;  %v3488_v18 = vld [vmem:[%s4901_s3 + $0xa0] ss:$16 sps:$4 sm:$0xff]   ;;  %v3495_v19 = vld [vmem:[%s4901_s3 + $0x84] ss:$16 sps:$4 sm:$0xff]   ;;  %v3500_v20 = vld [vmem:[%s4901_s3 + $0xac] ss:$16 sps:$4 sm:$0xff]   ;;  %s212_s29 = scalar_lea.vmem %s4899_s1, %s2874_s13 }
  0x19   : > { %v214_v10 = vld [vmem:[%s3437_s28] sm:$0xff]  ;;  %v215_v12 = vld [vmem:[%s3437_s28 + $0x8] sm:$0xff]  ;;  %v216_v17 = vld [vmem:[%s3437_s28 + $0x10] sm:$0xff]  ;;  %s201_s10 = sand.u32 1, %s3312_s16   ;;  %s2941_s13 = sshll.u32 %s3371_s19, 7 }
  0x1a   : > { %2875 = vmatmul.mubr.msk.f32.vlgmr.msra.gmra.mxu0 %vm234_vm0, %v214_v10  ;;  %2891 = vmatmul.mubr.msk.f32.vlgmr.msra.gmra.mxu1 %vm234_vm0, %v214_v10  ;;  %v3507_v21 = vld [vmem:[%s4901_s3 + $0xa8] ss:$16 sps:$4 sm:$0xff]   ;;  %v3517_v23 = vld [vmem:[%s4901_s3 + $0x80] ss:$16 sps:$4 sm:$0xff]   ;;  %v3522_v24 = vld [vmem:[%s4901_s3 + $0x64] ss:$16 sps:$4 sm:$0xff]   ;;  %s4863_s11 = scalar_lea.hbm %s4902_s4, %s2941_s13 }
  0x1b   : > { %871 = vmatpush1.bf16.msra.mxu0 %v3424_v6  ;;  %353 = vmatprep.mubr.f32.mxu0 %v3322_v4  ;;  %v217_v22 = vld [vmem:[%s3437_s28 + $0x18] sm:$0xff]  ;;  %v218_v27 = vld [vmem:[%s3437_s28 + $0x20] sm:$0xff]  ;;  %v219_v33 = vld [vmem:[%s3437_s28 + $0x28] sm:$0xff]  ;;  %s2871_s12 = sshll.u32 %s201_s10, 3  ;;  %s3324_s19 = smov [#allocation3]  }
  0x1c   : > { %514 = vmatprep.mubr.f32.mxu1 %v3322_v4  ;;  %872 = vmatprep.subr.bf16.mxu0 %v3442_v9  ;;  %v3530_v25 = vld [vmem:[%s4901_s3 + $0x8c] ss:$16 sps:$4 sm:$0xff]   ;;  %v3537_v26 = vld [vmem:[%s4901_s3 + $0x88] ss:$16 sps:$4 sm:$0xff]   ;;  %v3550_v28 = vld [vmem:[%s4901_s3 + $0x60] ss:$16 sps:$4 sm:$0xff]  }
  0x1d   : > { %912 = vmatpush1.bf16.msra.mxu1 %v3450_v11  ;;  %v3557_v29 = vld [vmem:[%s4901_s3 + $0x6c] ss:$16 sps:$4 sm:$0xff]   ;;  %v3564_v30 = vld [vmem:[%s4901_s3 + $0x44] ss:$16 sps:$4 sm:$0xff]   ;;  %v3569_v31 = vld [vmem:[%s4901_s3 + $0x68] ss:$16 sps:$4 sm:$0xff]  }
  0x1e   : > { %2876 = vmatmul.mubr.msk.f32.gmra.mxu0 %vm234_vm0, %v215_v12  ;;  %2892 = vmatmul.mubr.msk.f32.gmra.mxu1 %vm234_vm0, %v215_v12  ;;  %v669_v32 = vld [vmem:[%s212_s29] sm:$0xff]  ;;  %v3586_v35 = vld [vmem:[%s4901_s3 + $0x4c] ss:$16 sps:$4 sm:$0xff]   ;;  %v3598_v37 = vld [vmem:[%s4901_s3 + $0x48] ss:$16 sps:$4 sm:$0xff]   ;;  %s203_s14 = scalar_lea.vmem [#allocation3], %s2871_s12 }
  0x1f   : > { %359 = vmatprep.mubr.f32.mxu0 %v3322_v4  ;;  %520 = vmatprep.mubr.f32.mxu1 %v3322_v4  ;;  %v3581_v34 = vld [vmem:[%s4901_s3 + $0x40] ss:$16 sps:$4 sm:$0xff]   ;;  %v3593_v36 = vld [vmem:[%s4901_s3 + $0x24] ss:$16 sps:$4 sm:$0xff]   ;;  %v3602_v38 = vadd.s32 4294967295, %v669_v32  ;;  %v221_v44 = vld [vmem:[%s3437_s28 + $0x38] sm:$0xff] }
  0x20   : > { %873 = vmatpush1.bf16.msra.mxu0 %v3462_v13  ;;  %913 = vmatprep.subr.bf16.mxu1 %v3472_v15  ;;  %v220_v39 = vld [vmem:[%s3437_s28 + $0x30] sm:$0xff]  ;;  %v3617_v41 = vld [vmem:[%s4901_s3 + $0x2c] ss:$16 sps:$4 sm:$0xff]   ;;  %v3629_v43 = vld [vmem:[%s4901_s3 + $0x28] ss:$16 sps:$4 sm:$0xff]   ;;  %s2781_s20 = sshll.u32 %s203_s14, 4  ;;  %s2782_s20 = int_to_ptr.vmem [resolvable:$true] %s2781_s20 }
  0x21   : > { %874 = vmatprep.subr.bf16.mxu0 %v3467_v14  ;;  %914 = vmatpush1.bf16.msra.mxu1 %v3478_v16  ;;  %v3612_v40 = vld [vmem:[%s4901_s3 + $0x20] ss:$16 sps:$4 sm:$0xff]   ;;  %v3624_v42 = vld [vmem:[%s4901_s3 + $0x4] ss:$16 sps:$4 sm:$0xff]   ;;  %vm974_vm1 = vcmp.eq.s32.totalorder %v3602_v38, 0  ;;  %v223_v50 = vld [vmem:[%s3437_s28 + $0x48] sm:$0xff] }
  0x22   : > { %2877 = vmatmul.mubr.msk.f32.gmra.mxu0 %vm234_vm0, %v216_v17  ;;  %2893 = vmatmul.mubr.msk.f32.gmra.mxu1 %vm234_vm0, %v216_v17  ;;  %v3642_v45 = vld [vmem:[%s4901_s3] ss:$16 sps:$4 sm:$0xff]   ;;  %v3647_v46 = vld [vmem:[%s4901_s3 + $0xc] ss:$16 sps:$4 sm:$0xff]   ;;  %v3654_v47 = vld [vmem:[%s4901_s3 + $0x8] ss:$16 sps:$4 sm:$0xff]  }
  0x23   : > { %365 = vmatprep.mubr.f32.mxu0 %v3322_v4  ;;  %526 = vmatprep.mubr.f32.mxu1 %v3322_v4  ;;  %v975_v48 = vsel %vm974_vm1, 1, %v4903_v8  ;;  %v222_v49 = vld [vmem:[%s3437_s28 + $0x40] sm:$0xff]  ;;  %v224_v51 = vld [vmem:[%s3437_s28 + $0x50] sm:$0xff]  ;;  %v225_v52 = vld [vmem:[%s3437_s28 + $0x58] sm:$0xff]  ;;  %vm1093_vm2 = vcmp.eq.s32.totalorder %v3602_v38, 1  ;;  %vm1212_vm3 = vcmp.eq.s32.totalorder %v3602_v38, 2 }
  0x24   : > { %875 = vmatpush1.bf16.msra.mxu0 %v3488_v18  ;;  %915 = vmatprep.subr.bf16.mxu1 %v3500_v20  ;;  %v226_v53 = vld [vmem:[%s3437_s28 + $0x60] sm:$0xff]  ;;  %v227_v54 = vld [vmem:[%s3437_s28 + $0x68] sm:$0xff]  ;;  %v228_v55 = vld [vmem:[%s3437_s28 + $0x70] sm:$0xff]  ;;  %v1094_v57 = vsel %vm1093_vm2, 1, %v4903_v8  ;;  %vm1331_vm6 = vcmp.eq.s32.totalorder %v3602_v38, 3  ;;  %vm1450_vm8 = vcmp.eq.s32.totalorder %v3602_v38, 4 }
  0x25   : > { %876 = vmatprep.subr.bf16.mxu0 %v3495_v19  ;;  %916 = vmatpush1.bf16.msra.mxu1 %v3507_v21  ;;  %v229_v56 = vld [vmem:[%s3437_s28 + $0x78] sm:$0xff]  ;;  %vm1569_vm10 = vcmp.eq.s32.totalorder %v3602_v38, 5  ;;  %vm1688_vm12 = vcmp.eq.s32.totalorder %v3602_v38, 6  ;;  %vm1807_vm14 = vcmp.eq.s32.totalorder %v3602_v38, 7  ;;  %vm2045_vm2 = vcmp.eq.s32.totalorder %v3602_v38, 9  ;;  %s2768_s28 = scalar_lea.sflag [#allocation4], %s201_s10 }
  0x26   : > { %2878 = vmatmul.mubr.msk.f32.gmra.mxu0 %vm234_vm0, %v217_v22  ;;  %2894 = vmatmul.mubr.msk.f32.gmra.mxu1 %vm234_vm0, %v217_v22  ;;  %s3260_s27 = scalar_lea.vmem %s2782_s20, 128  ;;  %s3264_s29 = sshll.u32 %s3324_s19, 4  ;;  %s3265_s29 = int_to_ptr.vmem [resolvable:$false] %s3264_s29 }
  0x27   : > { %371 = vmatprep.mubr.f32.mxu0 %v3322_v4  ;;  %532 = vmatprep.mubr.f32.mxu1 %v3322_v4  ;;  %p3261_p11 = scmp.ne.s32.totalorder %s2782_s20, %s3260_s27  ;;  %s3266_s30 = scalar_lea.vmem %s3265_s29, 256 }
  0x28   : > { %877 = vmatpush1.bf16.msra.mxu0 %v3517_v23  ;;  %917 = vmatprep.subr.bf16.mxu1 %v3530_v25  ;;  %p3267_p0 = scmp.lt.s32.totalorder %s2782_s20, %s3265_s29  ;;  %p3268_p1 = scmp.lt.s32.totalorder %s3266_s30, %s3260_s27 }
  0x29   : > { %878 = vmatprep.subr.bf16.mxu0 %v3522_v24  ;;  %918 = vmatpush1.bf16.msra.mxu1 %v3537_v26  ;;  %p3262_p12 = pnand %p3261_p11, %p3388_p5 }
  0x2a   : > { %2879 = vmatmul.mubr.msk.f32.gmra.mxu0 %vm234_vm0, %v218_v27  ;;  %2895 = vmatmul.mubr.msk.f32.gmra.mxu1 %vm234_vm0, %v218_v27  ;;  %p3269_p2 = por %p3268_p1, %p3267_p0 }
  0x2b   : > { %377 = vmatprep.mubr.f32.mxu0 %v3322_v4  ;;  %538 = vmatprep.mubr.f32.mxu1 %v3322_v4  ;;  %p3263_p13 = pneg %p3262_p12 }
  0x2c   : > { %879 = vmatpush1.bf16.msra.mxu0 %v3550_v28  ;;  %919 = vmatprep.subr.bf16.mxu1 %v3557_v29 }
  0x2d   : > { %880 = vmatprep.subr.bf16.mxu0 %v3564_v30  ;;  %920 = vmatpush1.bf16.msra.mxu1 %v3569_v31  ;;  %p3270_p3 = pnand %p3269_p2, %p3263_p13 }
  0x2e   : > { %2880 = vmatmul.mubr.msk.f32.gmra.mxu0 %vm234_vm0, %v219_v33  ;;  %2896 = vmatmul.mubr.msk.f32.gmra.mxu1 %vm234_vm0, %v219_v33 }
  0x2f   : > { %383 = vmatprep.mubr.f32.mxu0 %v3322_v4  ;;  %544 = vmatprep.mubr.f32.mxu1 %v3322_v4 }
  0x30   : > { %881 = vmatpush1.bf16.msra.mxu0 %v3581_v34  ;;  %921 = vmatprep.subr.bf16.mxu1 %v3586_v35 }
  0x31   : > { %882 = vmatprep.subr.bf16.mxu0 %v3593_v36  ;;  %922 = vmatpush1.bf16.msra.mxu1 %v3598_v37 }
  0x32   : > { %2881 = vmatmul.mubr.msk.f32.gmra.mxu0 %vm234_vm0, %v220_v39  ;;  %2897 = vmatmul.mubr.msk.f32.gmra.mxu1 %vm234_vm0, %v220_v39 }
  0x33   : > { %389 = vmatprep.mubr.f32.mxu0 %v3322_v4  ;;  %550 = vmatprep.mubr.f32.mxu1 %v3322_v4 }
  0x34   : > { %883 = vmatpush1.bf16.msra.mxu0 %v3612_v40  ;;  %923 = vmatprep.subr.bf16.mxu1 %v3617_v41 }
  0x35   : > { %884 = vmatprep.subr.bf16.mxu0 %v3624_v42  ;;  %924 = vmatpush1.bf16.msra.mxu1 %v3629_v43 }
  0x36   : > { %2882 = vmatmul.mubr.msk.f32.gmra.mxu0 %vm234_vm0, %v221_v44  ;;  %2898 = vmatmul.mubr.msk.f32.gmra.mxu1 %vm234_vm0, %v221_v44 }
  0x37   : > { %395 = vmatprep.mubr.f32.mxu0 %v3322_v4  ;;  %556 = vmatprep.mubr.f32.mxu1 %v3322_v4 }
  0x38   : > { %885 = vmatpush1.bf16.msra.mxu0 %v3642_v45  ;;  %925 = vmatprep.subr.bf16.mxu1 %v3647_v46 }
  0x39   : > { %926 = vmatpush1.bf16.msra.mxu1 %v3654_v47  ;;  %977 = vperm.xlu0 %2986, %v975_v48  }
  0x3a   : > { %2883 = vmatmul.mubr.msk.f32.gmra.mxu0 %vm234_vm0, %v222_v49  ;;  %2899 = vmatmul.mubr.msk.f32.gmra.mxu1 %vm234_vm0, %v222_v49 }
  0x3b   : > { %401 = vmatprep.mubr.f32.mxu0 %v3322_v4  ;;  %562 = vmatprep.mubr.f32.mxu1 %v3322_v4 }
  0x3c   : > { %989 = vmatprep.subr.bf16.mxu0 %v3415_v5  ;;  %1030 = vmatprep.subr.bf16.mxu1 %v3431_v7 }
  0x3d   : > { %1096 = vperm.xlu0 %2986, %v1094_v57  }
  0x3e   : > { %2884 = vmatmul.mubr.msk.f32.gmra.mxu0 %vm234_vm0, %v223_v50  ;;  %2900 = vmatmul.mubr.msk.f32.gmra.mxu1 %vm234_vm0, %v223_v50 }
  0x3f   : > { %407 = vmatprep.mubr.f32.mxu0 %v3322_v4  ;;  %568 = vmatprep.mubr.f32.mxu1 %v3322_v4 }
  0x42   : > { %2885 = vmatmul.mubr.msk.f32.gmra.mxu0 %vm234_vm0, %v224_v51  ;;  %2901 = vmatmul.mubr.msk.f32.gmra.mxu1 %vm234_vm0, %v224_v51 }
  0x43   : > { %413 = vmatprep.mubr.f32.mxu0 %v3322_v4  ;;  %574 = vmatprep.mubr.f32.mxu1 %v3322_v4 }
  0x46   : > { %2886 = vmatmul.mubr.msk.f32.gmra.mxu0 %vm234_vm0, %v225_v52  ;;  %2902 = vmatmul.mubr.msk.f32.gmra.mxu1 %vm234_vm0, %v225_v52 }
  0x47   : > { %419 = vmatprep.mubr.f32.mxu0 %v3322_v4  ;;  %580 = vmatprep.mubr.f32.mxu1 %v3322_v4 }
  0x4a   : > { %2887 = vmatmul.mubr.msk.f32.gmra.mxu0 %vm234_vm0, %v226_v53  ;;  %2903 = vmatmul.mubr.msk.f32.gmra.mxu1 %vm234_vm0, %v226_v53 }
  0x4b   : > { %425 = vmatprep.mubr.f32.mxu0 %v3322_v4  ;;  %586 = vmatprep.mubr.f32.mxu1 %v3322_v4 }
  0x4e   : > { %2888 = vmatmul.mubr.msk.f32.gmra.mxu0 %vm234_vm0, %v227_v54  ;;  %2904 = vmatmul.mubr.msk.f32.gmra.mxu1 %vm234_vm0, %v227_v54 }
  0x4f   : > { %431 = vmatprep.mubr.f32.mxu0 %v3322_v4  ;;  %592 = vmatprep.mubr.f32.mxu1 %v3322_v4 }
  0x52   : > { %2889 = vmatmul.mubr.msk.f32.gmra.mxu0 %vm234_vm0, %v228_v55  ;;  %2905 = vmatmul.mubr.msk.f32.gmra.mxu1 %vm234_vm0, %v228_v55 }
  0x53   : > { %437 = vmatprep.mubr.f32.mxu0 %v3322_v4  ;;  %598 = vmatprep.mubr.f32.mxu1 %v3322_v4 }
  0x56   : > { %2890 = vmatmul.mubr.msk.f32.gmra.mxu0 %vm234_vm0, %v229_v56  ;;  %2906 = vmatmul.mubr.msk.f32.gmra.mxu1 %vm234_vm0, %v229_v56  ;;  %vm1926_vm0 = vcmp.eq.s32.totalorder %v3602_v38, 8 }
  0x57   : > { %902 = vmatprep.mubr.bf16.mxu0 %v4903_v8  ;;  %943 = vmatprep.mubr.bf16.mxu1 %v4903_v8 }
  0x5a   : > { %903 = vmatmul.mubr.bf16.vlgmr.msra.gmra.mxu0 %v4903_v8  ;;  %944 = vmatmul.mubr.bf16.vlgmr.msra.gmra.mxu1 %v4903_v8 }
  0x5b   : > { %990 = vmatpush1.bf16.msra.mxu0 %v3424_v6  ;;  %1031 = vmatpush1.bf16.msra.mxu1 %v3450_v11 }
  0x5c   : > { %991 = vmatprep.subr.bf16.mxu0 %v3442_v9  ;;  %1032 = vmatprep.subr.bf16.mxu1 %v3472_v15 }
  0x5d   : > { %1021 = vmatprep.mubr.bf16.mxu0 %v4903_v8  ;;  %1062 = vmatprep.mubr.bf16.mxu1 %v4903_v8 }
  0x5f   : > { %992 = vmatpush1.bf16.msra.mxu0 %v3462_v13  ;;  %1033 = vmatpush1.bf16.msra.mxu1 %v3478_v16 }
  0x60   : > { %993 = vmatprep.subr.bf16.mxu0 %v3467_v14  ;;  %1034 = vmatprep.subr.bf16.mxu1 %v3500_v20 }
  0x63   : > { %994 = vmatpush1.bf16.msra.mxu0 %v3488_v18  ;;  %1035 = vmatpush1.bf16.msra.mxu1 %v3507_v21 }
  0x64   : > { %995 = vmatprep.subr.bf16.mxu0 %v3495_v19  ;;  %1036 = vmatprep.subr.bf16.mxu1 %v3530_v25 }
  0x67   : > { %996 = vmatpush1.bf16.msra.mxu0 %v3517_v23  ;;  %1037 = vmatpush1.bf16.msra.mxu1 %v3537_v26 }
  0x68   : > { %997 = vmatprep.subr.bf16.mxu0 %v3522_v24  ;;  %1038 = vmatprep.subr.bf16.mxu1 %v3557_v29 }
  0x6b   : > { %998 = vmatpush1.bf16.msra.mxu0 %v3550_v28  ;;  %1039 = vmatpush1.bf16.msra.mxu1 %v3569_v31 }
  0x6c   : > { %999 = vmatprep.subr.bf16.mxu0 %v3564_v30  ;;  %1040 = vmatprep.subr.bf16.mxu1 %v3586_v35 }
  0x6f   : > { %1000 = vmatpush1.bf16.msra.mxu0 %v3581_v34  ;;  %1041 = vmatpush1.bf16.msra.mxu1 %v3598_v37 }
  0x70   : > { %1001 = vmatprep.subr.bf16.mxu0 %v3593_v36  ;;  %1042 = vmatprep.subr.bf16.mxu1 %v3617_v41 }
  0x73   : > { %1002 = vmatpush1.bf16.msra.mxu0 %v3612_v40  ;;  %1043 = vmatpush1.bf16.msra.mxu1 %v3629_v43 }
  0x74   : > { %1003 = vmatprep.subr.bf16.mxu0 %v3624_v42  ;;  %1044 = vmatprep.subr.bf16.mxu1 %v3647_v46 }
  0x77   : > { %1004 = vmatpush1.bf16.msra.mxu0 %v3642_v45  ;;  %1045 = vmatpush1.bf16.msra.mxu1 %v3654_v47 }
  0x78   : > { %1108 = vmatprep.subr.bf16.mxu0 %v3415_v5  ;;  %1149 = vmatprep.subr.bf16.mxu1 %v3431_v7 }
  0xda   : > { %v3744_v58 = vpop.f32.mrf.mxu0  ;;  %v3746_v59 = vpop.f32.mrf.mxu1 }
  0xdc   : > { %v3748_v60 = vpop.f32.mrf.mxu0  ;;  %v3750_v61 = vpop.f32.mrf.mxu1 }
  0xde   : > { %v3752_v62 = vpop.f32.mrf.mxu0  ;;  %v3754_v63 = vpop.f32.mrf.mxu1 }
  0xe0   : > { %v3756_v0 = vpop.f32.mrf.mxu0  ;;  %v3758_v1 = vpop.f32.mrf.mxu1 }
  0xe2   : > { %v3760_v2 = vpop.f32.mrf.mxu0  ;;  %v3762_v3 = vpop.f32.mrf.mxu1 }
  0xe4   : > { %v3764_v4 = vpop.f32.mrf.mxu0  ;;  %v3766_v10 = vpop.f32.mrf.mxu1 }
  0xe6   : > { %v3768_v12 = vpop.f32.mrf.mxu0  ;;  %v3770_v17 = vpop.f32.mrf.mxu1 }
  0xe7   : > { %4907 = vst [vmem:[#allocation6_spill] sm:$0xff] %v3770_v17 }
  0xe8   : > { %v3772_v22 = vpop.f32.mrf.mxu0  ;;  %v3774_v27 = vpop.f32.mrf.mxu1 }
  0xe9   : > { %4908 = vst [vmem:[#allocation7_spill] sm:$0xff] %v3774_v27 }
  0xea   : > { %v3776_v32 = vpop.f32.mrf.mxu0  ;;  %v3778_v33 = vpop.f32.mrf.mxu1 }
  0xeb   : > { %4909 = vst [vmem:[#allocation8_spill] sm:$0xff] %v3776_v32  ;;  %4910 = vst [vmem:[#allocation9_spill] sm:$0xff] %v3778_v33 }
  0xec   : > { %v3780_v39 = vpop.f32.mrf.mxu0  ;;  %v3782_v44 = vpop.f32.mrf.mxu1 }
  0xed   : > { %4911 = vst [vmem:[#allocation10_spill] sm:$0xff] %v3780_v39  ;;  %4912 = vst [vmem:[#allocation11_spill] sm:$0xff] %v3782_v44 }
  0xee   : > { %v3784_v48 = vpop.f32.mrf.mxu0  ;;  %v3786_v49 = vpop.f32.mrf.mxu1 }
  0xef   : > { %4913 = vst [vmem:[#allocation12_spill] sm:$0xff] %v3784_v48  ;;  %4914 = vst [vmem:[#allocation13_spill] sm:$0xff] %v3786_v49 }
  0xf0   : > { %v3788_v50 = vpop.f32.mrf.mxu0  ;;  %v3790_v51 = vpop.f32.mrf.mxu1 }
  0xf1   : > { %4915 = vst [vmem:[#allocation14_spill] sm:$0xff] %v3788_v50  ;;  %4916 = vst [vmem:[#allocation15_spill] sm:$0xff] %v3790_v51 }
  0xf2   : > { %v3792_v52 = vpop.f32.mrf.mxu0  ;;  %v3794_v53 = vpop.f32.mrf.mxu1 }
  0xf3   : > { %4917 = vst [vmem:[#allocation16_spill] sm:$0xff] %v3792_v52  ;;  %4918 = vst [vmem:[#allocation17_spill] sm:$0xff] %v3794_v53 }
  0xf4   : > { %v3796_v54 = vpop.f32.mrf.mxu0  ;;  %v3798_v55 = vpop.f32.mrf.mxu1 }
  0xf5   : > { %4919 = vst [vmem:[#allocation18_spill] sm:$0xff] %v3796_v54  ;;  %4920 = vst [vmem:[#allocation19_spill] sm:$0xff] %v3798_v55 }
  0xf6   : > { %v3800_v56 = vpop.f32.mrf.mxu0  ;;  %v3802_v57 = vpop.f32.mrf.mxu1 }
  0xf7   : > { %4921 = vst [vmem:[#allocation20_spill] sm:$0xff] %v3800_v56  ;;  %4922 = vst [vmem:[#allocation21_spill] sm:$0xff] %v3802_v57 }
  0xf8   : > { %v3804_v8 = vpop.f32.mrf.mxu0  ;;  %v3806_v48 = vpop.f32.mrf.mxu1 }
  0xf9   : > { %4923 = vst [vmem:[#allocation22_spill] sm:$0xff] %v3804_v8  ;;  %4924 = vst [vmem:[#allocation23_spill] sm:$0xff] %v3806_v48 }
  0xfa   : > { %v3808_v49 = vpop.f32.mrf.mxu0  ;;  %v3810_v50 = vpop.f32.mrf.mxu1 }
  0xfb   : > { %4925 = vst [vmem:[#allocation24_spill] sm:$0xff] %v3808_v49  ;;  %4926 = vst [vmem:[#allocation25_spill] sm:$0xff] %v3810_v50 }
  0xfc   : > { %v3812_v51 = vpop.f32.mrf.mxu0  ;;  %v3814_v52 = vpop.f32.mrf.mxu1 }
  0xfd   : > { %4927 = vst [vmem:[#allocation26_spill] sm:$0xff] %v3812_v51  ;;  %4928 = vst [vmem:[#allocation27_spill] sm:$0xff] %v3814_v52 }
  0xfe   : > { %v3816_v53 = vpop.f32.mrf.mxu0  ;;  %v3818_v54 = vpop.f32.mrf.mxu1 }
  0xff   : > { %4929 = vst [vmem:[#allocation28_spill] sm:$0xff] %v3816_v53  ;;  %4930 = vst [vmem:[#allocation29_spill] sm:$0xff] %v3818_v54 }
 0x100   : > { %v3820_v55 = vpop.f32.mrf.mxu0  ;;  %v3822_v56 = vpop.f32.mrf.mxu1 }
 0x101   : > { %4931 = vst [vmem:[#allocation30_spill] sm:$0xff] %v3820_v55  ;;  %4932 = vst [vmem:[#allocation31_spill] sm:$0xff] %v3822_v56 }
 0x102   : > { %v3824_v57 = vpop.f32.mrf.mxu0  ;;  %v3826_v8 = vpop.f32.mrf.mxu1 }
 0x103   : > { %4933 = vst [vmem:[#allocation32_spill] sm:$0xff] %v3824_v57  ;;  %4934 = vst [vmem:[#allocation33_spill] sm:$0xff] %v3826_v8 }
 0x104   : > { %v3828_v48 = vpop.f32.mrf.mxu0  ;;  %v3830_v49 = vpop.f32.mrf.mxu1 }
 0x105   : > { %4935 = vst [vmem:[#allocation34_spill] sm:$0xff] %v3828_v48  ;;  %4936 = vst [vmem:[#allocation35_spill] sm:$0xff] %v3830_v49 }
 0x106   : > { %v3832_v50 = vpop.f32.mrf.mxu0  ;;  %v3834_v51 = vpop.f32.mrf.mxu1 }
 0x107   : > { %4937 = vst [vmem:[#allocation36_spill] sm:$0xff] %v3832_v50  ;;  %4938 = vst [vmem:[#allocation37_spill] sm:$0xff] %v3834_v51 }
 0x108   : > { %v3836_v52 = vpop.f32.mrf.mxu0  ;;  %v3838_v53 = vpop.f32.mrf.mxu1 }
 0x109   : > { %4939 = vst [vmem:[#allocation38_spill] sm:$0xff] %v3836_v52  ;;  %4940 = vst [vmem:[#allocation39_spill] sm:$0xff] %v3838_v53 }
 0x10a   : > { %v3840_v54 = vpop.f32.mrf.mxu0  ;;  %v3842_v55 = vpop.f32.mrf.mxu1 }
 0x10b   : > { %4941 = vst [vmem:[#allocation40_spill] sm:$0xff] %v3840_v54  ;;  %4942 = vst [vmem:[#allocation41_spill] sm:$0xff] %v3842_v55 }
 0x10c   : > { %v3844_v56 = vpop.f32.mrf.mxu0  ;;  %v3846_v57 = vpop.f32.mrf.mxu1 }
 0x10d   : > { %4943 = vst [vmem:[#allocation42_spill] sm:$0xff] %v3844_v56  ;;  %4944 = vst [vmem:[#allocation43_spill] sm:$0xff] %v3846_v57 }
 0x10e   : > { %v3848_v8 = vpop.f32.mrf.mxu0  ;;  %v3850_v48 = vpop.f32.mrf.mxu1 }
 0x10f   : > { %4945 = vst [vmem:[#allocation44_spill] sm:$0xff] %v3848_v8  ;;  %4946 = vst [vmem:[#allocation45_spill] sm:$0xff] %v3850_v48 }
 0x110   : > { %v3852_v49 = vpop.f32.mrf.mxu0  ;;  %v3854_v50 = vpop.f32.mrf.mxu1 }
 0x111   : > { %4947 = vst [vmem:[#allocation46_spill] sm:$0xff] %v3852_v49  ;;  %4948 = vst [vmem:[#allocation47_spill] sm:$0xff] %v3854_v50 }
 0x112   : > { %v3856_v51 = vpop.f32.mrf.mxu0  ;;  %v3858_v52 = vpop.f32.mrf.mxu1 }
 0x113   : > { %4949 = vst [vmem:[#allocation48_spill] sm:$0xff] %v3856_v51  ;;  %4950 = vst [vmem:[#allocation49_spill] sm:$0xff] %v3858_v52 }
 0x114   : > { %v3860_v53 = vpop.f32.mrf.mxu0  ;;  %v3862_v54 = vpop.f32.mrf.mxu1 }
 0x115   : > { %4951 = vst [vmem:[#allocation50_spill] sm:$0xff] %v3860_v53  ;;  %4952 = vst [vmem:[#allocation51_spill] sm:$0xff] %v3862_v54 }
 0x116   : > { %v3864_v55 = vpop.f32.mrf.mxu0  ;;  %v3866_v56 = vpop.f32.mrf.mxu1 }
 0x117   : > { %4953 = vst [vmem:[#allocation52_spill] sm:$0xff] %v3864_v55  ;;  %4954 = vst [vmem:[#allocation53_spill] sm:$0xff] %v3866_v56 }
 0x118   : > { %v3868_v57 = vpop.f32.mrf.mxu0  ;;  %v3870_v8 = vpop.f32.mrf.mxu1 }
 0x119   : > { %4955 = vst [vmem:[#allocation54_spill] sm:$0xff] %v3868_v57  ;;  %4956 = vst [vmem:[#allocation55_spill] sm:$0xff] %v3870_v8 }
 0x11a   : > { %v904_v48 = vpop.f32.mrf.mxu0  ;;  %v945_v49 = vpop.f32.mrf.mxu1 }
 0x11b   : > { %v952_v50 = vadd.f32 %v904_v48, %v3744_v58  ;;  %v954_v55 = vadd.f32 %v945_v49, %v3746_v59 }
 0x11c   : > { %v906_v44 = vpop.f32.mrf.mxu0  ;;  %v947_v51 = vpop.f32.mrf.mxu1 }
 0x11d   : > { %v956_v33 = vmul.f32 0.5, %v952_v50  ;;  %v953_v52 = vadd.f32 %v906_v44, %v3748_v60  ;;  %v955_v8 = vadd.f32 %v947_v51, %v3750_v61 }
 0x11e   : > { %v908_v53 = vpop.f32.mrf.mxu0  ;;  %v949_v39 = vpop.f32.mrf.mxu1 }
 0x11f   : > { %3036 = vtanh.f32 %v956_v33  ;;  %v960_v54 = vmul.f32 0.5, %v953_v52  ;;  %v965_v57 = vmul.f32 0.5, %v955_v8 }
 0x120   : > { %v909_v56 = vpop.f32.mrf.mxu0  ;;  %v950_v32 = vpop.f32.mrf.mxu1 }
 0x121   : > { %3038 = vtanh.f32 %v960_v54 }
 0x122   : > { %3040 = vtanh.f32 %v954_v55 }
 0x123   : > { %3042 = vtanh.f32 %v965_v57 }
 0x12c   : > { %v3037_v27 = vpop.eup %3036 }
 0x12d   : > { %v958_v58 = vmul.f32 0.5, %v3037_v27 }
 0x12e   : > { %v3039_v48 = vpop.eup %3038 }
 0x12f   : > { %v959_v17 = vadd.f32 0.5, %v958_v58  ;;  %v962_v50 = vmul.f32 0.5, %v3039_v48  ;;  %v3041_v60 = vpop.eup %3040 }
 0x130   : > { %v3043_v59 = vpop.eup %3042 }
 0x131   : > { %v963_v44 = vadd.f32 0.5, %v962_v50  ;;  %v970_v39 = vmul.f32 %v3041_v60, %v959_v17  ;;  %v967_v32 = vmul.f32 0.5, %v3043_v59  ;;  %v4957_v17 = vmov 0  }
 0x132   : > { %v1213_v27 = vsel %vm1212_vm3, 1, %v4957_v17 }
 0x133   : > { %v969_v33 = vmul.f32 0.0, %v963_v44  ;;  %v968_v49 = vadd.f32 0.5, %v967_v32  ;;  %1215 = vperm.xlu1 %2987, %v1213_v27  }
 0x135   : > { %v3876_v53 = vadd.f32 %v970_v39, %v969_v33 }
 0x137   : > { %3044 = vtanh.f32 %v3876_v53 }
 0x144   : > { %v3045_v52 = vpop.eup %3044 }
 0x145   : > { %v3879_v61 = vmul.f32 %v3045_v52, %v968_v49 }
 0x147   : > { %v988_v8 = vpack.c.bf16 %v3879_v61, %v3879_v61 }
 0x149   : > { %1022 = vmatmul.mubr.bf16.vlgmr.msra.gmra.mxu0 %v988_v8  ;;  %1063 = vmatmul.mubr.bf16.vlgmr.msra.gmra.mxu1 %v988_v8 }
 0x14a   : > { %1109 = vmatpush1.bf16.msra.mxu0 %v3424_v6  ;;  %1150 = vmatpush1.bf16.msra.mxu1 %v3450_v11 }
 0x14b   : > { %1110 = vmatprep.subr.bf16.mxu0 %v3442_v9  ;;  %1151 = vmatprep.subr.bf16.mxu1 %v3472_v15 }
 0x14c   : > { %1140 = vmatprep.mubr.bf16.mxu0 %v4957_v17  ;;  %1181 = vmatprep.mubr.bf16.mxu1 %v4957_v17 }
 0x14e   : > { %1111 = vmatpush1.bf16.msra.mxu0 %v3462_v13  ;;  %1152 = vmatpush1.bf16.msra.mxu1 %v3478_v16 }
 0x14f   : > { %1112 = vmatprep.subr.bf16.mxu0 %v3467_v14  ;;  %1153 = vmatprep.subr.bf16.mxu1 %v3500_v20 }
 0x152   : > { %1113 = vmatpush1.bf16.msra.mxu0 %v3488_v18  ;;  %1154 = vmatpush1.bf16.msra.mxu1 %v3507_v21 }
 0x153   : > { %1114 = vmatprep.subr.bf16.mxu0 %v3495_v19  ;;  %1155 = vmatprep.subr.bf16.mxu1 %v3530_v25 }
 0x156   : > { %1115 = vmatpush1.bf16.msra.mxu0 %v3517_v23  ;;  %1156 = vmatpush1.bf16.msra.mxu1 %v3537_v26 }
 0x157   : > { %1116 = vmatprep.subr.bf16.mxu0 %v3522_v24  ;;  %1157 = vmatprep.subr.bf16.mxu1 %v3557_v29 }
 0x15a   : > { %1117 = vmatpush1.bf16.msra.mxu0 %v3550_v28  ;;  %1158 = vmatpush1.bf16.msra.mxu1 %v3569_v31 }
 0x15b   : > { %1118 = vmatprep.subr.bf16.mxu0 %v3564_v30  ;;  %1159 = vmatprep.subr.bf16.mxu1 %v3586_v35 }
 0x15e   : > { %1119 = vmatpush1.bf16.msra.mxu0 %v3581_v34  ;;  %1160 = vmatpush1.bf16.msra.mxu1 %v3598_v37 }
 0x15f   : > { %1120 = vmatprep.subr.bf16.mxu0 %v3593_v36  ;;  %1161 = vmatprep.subr.bf16.mxu1 %v3617_v41 }
 0x162   : > { %1121 = vmatpush1.bf16.msra.mxu0 %v3612_v40  ;;  %1162 = vmatpush1.bf16.msra.mxu1 %v3629_v43 }
 0x163   : > { %1122 = vmatprep.subr.bf16.mxu0 %v3624_v42  ;;  %1163 = vmatprep.subr.bf16.mxu1 %v3647_v46 }
 0x166   : > { %1123 = vmatpush1.bf16.msra.mxu0 %v3642_v45  ;;  %1164 = vmatpush1.bf16.msra.mxu1 %v3654_v47 }
 0x167   : > { %1227 = vmatprep.subr.bf16.mxu0 %v3415_v5  ;;  %1268 = vmatprep.subr.bf16.mxu1 %v3431_v7 }
 0x209   : > { %v1023_v51 = vpop.f32.mrf.mxu0  ;;  %v1064_v54 = vpop.f32.mrf.mxu1 }
 0x20a   : > { %v1071_v55 = vadd.f32 %v1023_v51, %v3752_v62  ;;  %v1073_v59 = vadd.f32 %v1064_v54, %v3754_v63  ;;  %v978_v54 = vpop.permute.xlu0 %977 }
 0x20b   : > { %v1025_v56 = vpop.f32.mrf.mxu0  ;;  %v1066_v57 = vpop.f32.mrf.mxu1  ;;  %vm979_vm4 = vcmp.eq.s32.totalorder %v978_v54, 1 }
 0x20c   : > { %v1075_v58 = vmul.f32 0.5, %v1071_v55  ;;  %v1072_v48 = vadd.f32 %v1025_v56, %v3756_v0  ;;  %v1074_v32 = vadd.f32 %v1066_v57, %v3758_v1 }
 0x20d   : > { %v1027_v50 = vpop.f32.mrf.mxu0  ;;  %v1068_v60 = vpop.f32.mrf.mxu1 }
 0x20e   : > { %3046 = vtanh.f32 %v1075_v58  ;;  %v1079_v44 = vmul.f32 0.5, %v1072_v48  ;;  %v1084_v49 = vmul.f32 0.5, %v1074_v32  ;;  %v1097_v1 = vpop.permute.xlu0 %1096 }
 0x20f   : > { %v1028_v39 = vpop.f32.mrf.mxu0  ;;  %v1069_v33 = vpop.f32.mrf.mxu1  ;;  %vm1098_vm5 = vcmp.eq.s32.totalorder %v1097_v1, 1 }
 0x210   : > { %3048 = vtanh.f32 %v1079_v44  ;;  %v980_v39 = vsel %vm979_vm4, %v3879_v61, 0.0  ;;  %vm2164_vm4 = vcmp.eq.s32.totalorder %v3602_v38, 10 }
 0x211   : > { %3050 = vtanh.f32 %v1073_v59 }
 0x212   : > { %3052 = vtanh.f32 %v1084_v49 }
 0x21b   : > { %v3047_v52 = vpop.eup %3046 }
 0x21c   : > { %v1077_v62 = vmul.f32 0.5, %v3047_v52 }
 0x21d   : > { %v3049_v8 = vpop.eup %3048 }
 0x21e   : > { %v1078_v27 = vadd.f32 0.5, %v1077_v62  ;;  %v1081_v51 = vmul.f32 0.5, %v3049_v8  ;;  %v3051_v55 = vpop.eup %3050 }
 0x21f   : > { %v3053_v63 = vpop.eup %3052 }
 0x220   : > { %v1082_v0 = vadd.f32 0.5, %v1081_v51  ;;  %v1089_v58 = vmul.f32 %v3051_v55, %v1078_v27  ;;  %v1086_v50 = vmul.f32 0.5, %v3053_v63 }
 0x222   : > { %v1088_v56 = vmul.f32 %v1082_v0, %v3876_v53  ;;  %v1087_v57 = vadd.f32 0.5, %v1086_v50  ;;  %v1332_v53 = vsel %vm1331_vm6, 1, %v4957_v17  ;;  %vm2283_vm6 = vcmp.eq.s32.totalorder %v3602_v38, 11 }
 0x223   : > { %1334 = vperm.xlu1 %2987, %v1332_v53  }
 0x224   : > { %v3924_v48 = vadd.f32 %v1089_v58, %v1088_v56 }
 0x226   : > { %3054 = vtanh.f32 %v3924_v48 }
 0x233   : > { %v3055_v60 = vpop.eup %3054 }
 0x234   : > { %v1092_v44 = vmul.f32 %v3055_v60, %v1087_v57 }
 0x236   : > { %v3928_v33 = vsel %vm1098_vm5, %v1092_v44, %v980_v39  ;;  %v1107_v59 = vpack.c.bf16 %v1092_v44, %v1092_v44 }
 0x238   : > { %1141 = vmatmul.mubr.bf16.vlgmr.msra.gmra.mxu0 %v1107_v59  ;;  %1182 = vmatmul.mubr.bf16.vlgmr.msra.gmra.mxu1 %v1107_v59 }
 0x239   : > { %1228 = vmatpush1.bf16.msra.mxu0 %v3424_v6  ;;  %1269 = vmatpush1.bf16.msra.mxu1 %v3450_v11 }
 0x23a   : > { %1229 = vmatprep.subr.bf16.mxu0 %v3442_v9  ;;  %1270 = vmatprep.subr.bf16.mxu1 %v3472_v15 }
 0x23b   : > { %1259 = vmatprep.mubr.bf16.mxu0 %v4957_v17  ;;  %1300 = vmatprep.mubr.bf16.mxu1 %v4957_v17 }
 0x23d   : > { %1230 = vmatpush1.bf16.msra.mxu0 %v3462_v13  ;;  %1271 = vmatpush1.bf16.msra.mxu1 %v3478_v16 }
 0x23e   : > { %1231 = vmatprep.subr.bf16.mxu0 %v3467_v14  ;;  %1272 = vmatprep.subr.bf16.mxu1 %v3500_v20 }
 0x241   : > { %1232 = vmatpush1.bf16.msra.mxu0 %v3488_v18  ;;  %1273 = vmatpush1.bf16.msra.mxu1 %v3507_v21 }
 0x242   : > { %1233 = vmatprep.subr.bf16.mxu0 %v3495_v19  ;;  %1274 = vmatprep.subr.bf16.mxu1 %v3530_v25 }
 0x245   : > { %1234 = vmatpush1.bf16.msra.mxu0 %v3517_v23  ;;  %1275 = vmatpush1.bf16.msra.mxu1 %v3537_v26 }
 0x246   : > { %1235 = vmatprep.subr.bf16.mxu0 %v3522_v24  ;;  %1276 = vmatprep.subr.bf16.mxu1 %v3557_v29 }
 0x249   : > { %1236 = vmatpush1.bf16.msra.mxu0 %v3550_v28  ;;  %1277 = vmatpush1.bf16.msra.mxu1 %v3569_v31 }
 0x24a   : > { %1237 = vmatprep.subr.bf16.mxu0 %v3564_v30  ;;  %1278 = vmatprep.subr.bf16.mxu1 %v3586_v35 }
 0x24d   : > { %1238 = vmatpush1.bf16.msra.mxu0 %v3581_v34  ;;  %1279 = vmatpush1.bf16.msra.mxu1 %v3598_v37 }
 0x24e   : > { %1239 = vmatprep.subr.bf16.mxu0 %v3593_v36  ;;  %1280 = vmatprep.subr.bf16.mxu1 %v3617_v41 }
 0x251   : > { %1240 = vmatpush1.bf16.msra.mxu0 %v3612_v40  ;;  %1281 = vmatpush1.bf16.msra.mxu1 %v3629_v43 }
 0x252   : > { %1241 = vmatprep.subr.bf16.mxu0 %v3624_v42  ;;  %1282 = vmatprep.subr.bf16.mxu1 %v3647_v46 }
 0x255   : > { %1242 = vmatpush1.bf16.msra.mxu0 %v3642_v45  ;;  %1283 = vmatpush1.bf16.msra.mxu1 %v3654_v47 }
 0x256   : > { %1346 = vmatprep.subr.bf16.mxu0 %v3415_v5  ;;  %1387 = vmatprep.subr.bf16.mxu1 %v3431_v7 }
 0x2f8   : > { %v1142_v61 = vpop.f32.mrf.mxu0  ;;  %v1183_v32 = vpop.f32.mrf.mxu1 }
 0x2f9   : > { %v1190_v49 = vadd.f32 %v1142_v61, %v3760_v2  ;;  %v1192_v56 = vadd.f32 %v1183_v32, %v3762_v3  ;;  %v1216_v61 = vpop.permute.xlu1 %1215 }
 0x2fa   : > { %v1144_v52 = vpop.f32.mrf.mxu0  ;;  %v1185_v62 = vpop.f32.mrf.mxu1  ;;  %vm1217_vm7 = vcmp.eq.s32.totalorder %v1216_v61, 1  ;;  %v4055_v61 = vld [vmem:[%s4901_s3 + $0xcc] ss:$16 sps:$4 sm:$0xff]  }
 0x2fb   : > { %v1194_v8 = vmul.f32 0.5, %v1190_v49  ;;  %v1191_v27 = vadd.f32 %v1144_v52, %v3764_v4  ;;  %v1193_v58 = vadd.f32 %v1185_v62, %v3766_v10 }
 0x2fc   : > { %v1146_v51 = vpop.f32.mrf.mxu0  ;;  %v1187_v0 = vpop.f32.mrf.mxu1 }
 0x2fd   : > { %3056 = vtanh.f32 %v1194_v8  ;;  %v1198_v5 = vmul.f32 0.5, %v1191_v27  ;;  %v1203_v63 = vmul.f32 0.5, %v1193_v58  ;;  %v4959_v8 = vld [vmem:[#allocation7_spill] sm:$0xff] }
 0x2fe   : > { %v1147_v55 = vpop.f32.mrf.mxu0  ;;  %v1188_v7 = vpop.f32.mrf.mxu1 }
 0x2ff   : > { %3058 = vtanh.f32 %v1198_v5 }
 0x300   : > { %3060 = vtanh.f32 %v1192_v56 }
 0x301   : > { %3062 = vtanh.f32 %v1203_v63 }
 0x30a   : > { %v3057_v54 = vpop.eup %3056 }
 0x30b   : > { %v1196_v2 = vmul.f32 0.5, %v3057_v54 }
 0x30c   : > { %v3059_v50 = vpop.eup %3058 }
 0x30d   : > { %v1197_v1 = vadd.f32 0.5, %v1196_v2  ;;  %v1200_v57 = vmul.f32 0.5, %v3059_v50  ;;  %v3061_v60 = vpop.eup %3060 }
 0x30e   : > { %v3063_v3 = vpop.eup %3062 }
 0x30f   : > { %v1201_v4 = vadd.f32 0.5, %v1200_v57  ;;  %v1208_v39 = vmul.f32 %v3061_v60, %v1197_v1  ;;  %v1205_v53 = vmul.f32 0.5, %v3063_v3  ;;  %v1335_v1 = vpop.permute.xlu1 %1334  ;;  %v4043_v3 = vld [vmem:[%s4901_s3 + $0xe8] ss:$16 sps:$4 sm:$0xff]  }
 0x310   : > { %vm1336_vm9 = vcmp.eq.s32.totalorder %v1335_v1, 1  ;;  %v4182_v1 = vld [vmem:[%s4901_s3 + $0x60] ss:$16 sps:$4 sm:$0xff]  }
 0x311   : > { %v1207_v44 = vmul.f32 %v1201_v4, %v3924_v48  ;;  %v1206_v10 = vadd.f32 0.5, %v1205_v53  ;;  %v4958_v48 = vld [vmem:[#allocation6_spill] sm:$0xff] }
 0x312   : > { %v4049_v53 = vld [vmem:[%s4901_s3 + $0xc4] ss:$16 sps:$4 sm:$0xff]  }
 0x313   : > { %v3971_v59 = vadd.f32 %v1208_v39, %v1207_v44 }
 0x315   : > { %3064 = vtanh.f32 %v3971_v59 }
 0x322   : > { %v3065_v32 = vpop.eup %3064 }
 0x323   : > { %v1211_v49 = vmul.f32 %v3065_v32, %v1206_v10  ;;  %v4063_v10 = vld [vmem:[%s4901_s3 + $0xc0] ss:$16 sps:$4 sm:$0xff]   ;;  %v4069_v32 = vld [vmem:[%s4901_s3 + $0xc8] ss:$16 sps:$4 sm:$0xff]  }
 0x325   : > { %v3975_v52 = vsel %vm1217_vm7, %v1211_v49, %v3928_v33  ;;  %v1226_v62 = vpack.c.bf16 %v1211_v49, %v1211_v49  ;;  %v4075_v49 = vld [vmem:[%s4901_s3 + $0xa4] ss:$16 sps:$4 sm:$0xff]  }
 0x327   : > { %1260 = vmatmul.mubr.bf16.vlgmr.msra.gmra.mxu0 %v1226_v62  ;;  %1301 = vmatmul.mubr.bf16.vlgmr.msra.gmra.mxu1 %v1226_v62  ;;  %v4087_v62 = vld [vmem:[%s4901_s3 + $0xa0] ss:$16 sps:$4 sm:$0xff]  }
 0x328   : > { %1347 = vmatpush1.bf16.msra.mxu0 %v3424_v6  ;;  %1388 = vmatpush1.bf16.msra.mxu1 %v3450_v11  ;;  %v4012_v6 = vld [vmem:[%s4901_s3 + $0xe4] ss:$16 sps:$4 sm:$0xff]   ;;  %v1451_v11 = vsel %vm1450_vm8, 1, %v4957_v17  ;;  %vm2402_vm8 = vcmp.eq.s32.totalorder %v3602_v38, 12 }
 0x329   : > { %1348 = vmatprep.subr.bf16.mxu0 %v3442_v9  ;;  %1389 = vmatprep.subr.bf16.mxu1 %v3472_v15  ;;  %v4018_v9 = vld [vmem:[%s4901_s3 + $0xec] ss:$16 sps:$4 sm:$0xff]  }
 0x32a   : > { %1378 = vmatprep.mubr.bf16.mxu0 %v4957_v17  ;;  %1419 = vmatprep.mubr.bf16.mxu1 %v4957_v17 }
 0x32b   : > { %1453 = vperm.xlu0 %2986, %v1451_v11   ;;  %v4093_v11 = vld [vmem:[%s4901_s3 + $0xa8] ss:$16 sps:$4 sm:$0xff]  }
 0x32c   : > { %1349 = vmatpush1.bf16.msra.mxu0 %v3462_v13  ;;  %1390 = vmatpush1.bf16.msra.mxu1 %v3478_v16 }
 0x32d   : > { %1350 = vmatprep.subr.bf16.mxu0 %v3467_v14  ;;  %1391 = vmatprep.subr.bf16.mxu1 %v3500_v20 }
 0x330   : > { %1351 = vmatpush1.bf16.msra.mxu0 %v3488_v18  ;;  %1392 = vmatpush1.bf16.msra.mxu1 %v3507_v21 }
 0x331   : > { %1352 = vmatprep.subr.bf16.mxu0 %v3495_v19  ;;  %1393 = vmatprep.subr.bf16.mxu1 %v3530_v25 }
 0x334   : > { %1353 = vmatpush1.bf16.msra.mxu0 %v3517_v23  ;;  %1394 = vmatpush1.bf16.msra.mxu1 %v3537_v26 }
 0x335   : > { %1354 = vmatprep.subr.bf16.mxu0 %v3522_v24  ;;  %1395 = vmatprep.subr.bf16.mxu1 %v3557_v29 }
 0x338   : > { %1355 = vmatpush1.bf16.msra.mxu0 %v3550_v28  ;;  %1396 = vmatpush1.bf16.msra.mxu1 %v3569_v31 }
 0x339   : > { %1356 = vmatprep.subr.bf16.mxu0 %v3564_v30  ;;  %1397 = vmatprep.subr.bf16.mxu1 %v3586_v35 }
 0x33c   : > { %1357 = vmatpush1.bf16.msra.mxu0 %v3581_v34  ;;  %1398 = vmatpush1.bf16.msra.mxu1 %v3598_v37 }
 0x33d   : > { %1358 = vmatprep.subr.bf16.mxu0 %v3593_v36  ;;  %1399 = vmatprep.subr.bf16.mxu1 %v3617_v41 }
 0x340   : > { %1359 = vmatpush1.bf16.msra.mxu0 %v3612_v40  ;;  %1400 = vmatpush1.bf16.msra.mxu1 %v3629_v43 }
 0x341   : > { %1360 = vmatprep.subr.bf16.mxu0 %v3624_v42  ;;  %1401 = vmatprep.subr.bf16.mxu1 %v3647_v46 }
 0x344   : > { %1361 = vmatpush1.bf16.msra.mxu0 %v3642_v45  ;;  %1402 = vmatpush1.bf16.msra.mxu1 %v3654_v47 }
 0x345   : > { %1465 = vmatprep.subr.bf16.mxu0 %v4012_v6  ;;  %1506 = vmatprep.subr.bf16.mxu1 %v4018_v9 }
 0x3e7   : > { %v1261_v13 = vpop.f32.mrf.mxu0  ;;  %v1302_v14 = vpop.f32.mrf.mxu1 }
 0x3e8   : > { %v1309_v15 = vadd.f32 %v1261_v13, %v3768_v12  ;;  %v1311_v33 = vadd.f32 %v1302_v14, %v4958_v48  ;;  %v4099_v13 = vld [vmem:[%s4901_s3 + $0x84] ss:$16 sps:$4 sm:$0xff]   ;;  %v4105_v14 = vld [vmem:[%s4901_s3 + $0x8c] ss:$16 sps:$4 sm:$0xff]  }
 0x3e9   : > { %v1263_v16 = vpop.f32.mrf.mxu0  ;;  %v1304_v18 = vpop.f32.mrf.mxu1 }
 0x3ea   : > { %v1313_v19 = vmul.f32 0.5, %v1309_v15  ;;  %v1310_v20 = vadd.f32 %v1263_v16, %v3772_v22  ;;  %v1312_v27 = vadd.f32 %v1304_v18, %v4959_v8  ;;  %v4111_v15 = vld [vmem:[%s4901_s3 + $0x80] ss:$16 sps:$4 sm:$0xff]   ;;  %v4117_v16 = vld [vmem:[%s4901_s3 + $0x88] ss:$16 sps:$4 sm:$0xff]  }
 0x3eb   : > { %v1265_v21 = vpop.f32.mrf.mxu0  ;;  %v1306_v23 = vpop.f32.mrf.mxu1  ;;  %v4123_v18 = vld [vmem:[%s4901_s3 + $0x64] ss:$16 sps:$4 sm:$0xff]  }
 0x3ec   : > { %3066 = vtanh.f32 %v1313_v19  ;;  %v1317_v24 = vmul.f32 0.5, %v1310_v20  ;;  %v1322_v51 = vmul.f32 0.5, %v1312_v27  ;;  %v4962_v19 = vld [vmem:[#allocation9_spill] sm:$0xff]  ;;  %v4963_v21 = vld [vmem:[#allocation11_spill] sm:$0xff] }
 0x3ed   : > { %v1266_v25 = vpop.f32.mrf.mxu0  ;;  %v1307_v26 = vpop.f32.mrf.mxu1 }
 0x3ee   : > { %3068 = vtanh.f32 %v1317_v24 }
 0x3ef   : > { %3070 = vtanh.f32 %v1311_v33 }
 0x3f0   : > { %3072 = vtanh.f32 %v1322_v51 }
 0x3f9   : > { %v3067_v0 = vpop.eup %3066 }
 0x3fa   : > { %v1315_v12 = vmul.f32 0.5, %v3067_v0 }
 0x3fb   : > { %v3069_v5 = vpop.eup %3068 }
 0x3fc   : > { %v1316_v55 = vadd.f32 0.5, %v1315_v12  ;;  %v1319_v7 = vmul.f32 0.5, %v3069_v5  ;;  %v3071_v56 = vpop.eup %3070 }
 0x3fd   : > { %v3073_v2 = vpop.eup %3072 }
 0x3fe   : > { %v1320_v22 = vadd.f32 0.5, %v1319_v7  ;;  %v1327_v63 = vmul.f32 %v3071_v56, %v1316_v55  ;;  %v1324_v50 = vmul.f32 0.5, %v3073_v2 }
 0x400   : > { %v1326_v58 = vmul.f32 %v1320_v22, %v3971_v59  ;;  %v1325_v57 = vadd.f32 0.5, %v1324_v50  ;;  %v4037_v59 = vld [vmem:[%s4901_s3 + $0xe0] ss:$16 sps:$4 sm:$0xff]   ;;  %v1454_v22 = vpop.permute.xlu0 %1453 }
 0x401   : > { %vm1455_vm11 = vcmp.eq.s32.totalorder %v1454_v22, 1 }
 0x402   : > { %v4028_v54 = vadd.f32 %v1327_v63, %v1326_v58 }
 0x404   : > { %3074 = vtanh.f32 %v4028_v54 }
 0x411   : > { %v3075_v4 = vpop.eup %3074 }
 0x412   : > { %v1330_v60 = vmul.f32 %v3075_v4, %v1325_v57  ;;  %v4188_v57 = vld [vmem:[%s4901_s3 + $0x68] ss:$16 sps:$4 sm:$0xff]   ;;  %v4194_v4 = vld [vmem:[%s4901_s3 + $0x44] ss:$16 sps:$4 sm:$0xff]  }
 0x414   : > { %v4032_v44 = vsel %vm1336_vm9, %v1330_v60, %v3975_v52  ;;  %v1345_v39 = vpack.c.bf16 %v1330_v60, %v1330_v60  ;;  %v4081_v52 = vld [vmem:[%s4901_s3 + $0xac] ss:$16 sps:$4 sm:$0xff]  }
 0x415   : > { %v4200_v60 = vld [vmem:[%s4901_s3 + $0x4c] ss:$16 sps:$4 sm:$0xff]  }
 0x416   : > { %1379 = vmatmul.mubr.bf16.vlgmr.msra.gmra.mxu0 %v1345_v39  ;;  %1420 = vmatmul.mubr.bf16.vlgmr.msra.gmra.mxu1 %v1345_v39  ;;  %v4212_v39 = vld [vmem:[%s4901_s3 + $0x48] ss:$16 sps:$4 sm:$0xff]  }
 0x417   : > { %1466 = vmatpush1.bf16.msra.mxu0 %v4037_v59  ;;  %1507 = vmatpush1.bf16.msra.mxu1 %v4043_v3 }
 0x418   : > { %1467 = vmatprep.subr.bf16.mxu0 %v4049_v53  ;;  %1508 = vmatprep.subr.bf16.mxu1 %v4055_v61 }
 0x419   : > { %1497 = vmatprep.mubr.bf16.mxu0 %v4957_v17  ;;  %1538 = vmatprep.mubr.bf16.mxu1 %v4957_v17 }
 0x41b   : > { %1468 = vmatpush1.bf16.msra.mxu0 %v4063_v10  ;;  %1509 = vmatpush1.bf16.msra.mxu1 %v4069_v32 }
 0x41c   : > { %1469 = vmatprep.subr.bf16.mxu0 %v4075_v49  ;;  %1510 = vmatprep.subr.bf16.mxu1 %v4081_v52 }
 0x41f   : > { %1470 = vmatpush1.bf16.msra.mxu0 %v4087_v62  ;;  %1511 = vmatpush1.bf16.msra.mxu1 %v4093_v11 }
 0x420   : > { %1471 = vmatprep.subr.bf16.mxu0 %v4099_v13  ;;  %1512 = vmatprep.subr.bf16.mxu1 %v4105_v14 }
 0x423   : > { %1472 = vmatpush1.bf16.msra.mxu0 %v4111_v15  ;;  %1513 = vmatpush1.bf16.msra.mxu1 %v4117_v16 }
 0x424   : > { %1473 = vmatprep.subr.bf16.mxu0 %v4123_v18  ;;  %1514 = vmatprep.subr.bf16.mxu1 %v3557_v29 }
 0x427   : > { %1474 = vmatpush1.bf16.msra.mxu0 %v3550_v28  ;;  %1515 = vmatpush1.bf16.msra.mxu1 %v3569_v31  ;;  %v1570_v28 = vsel %vm1569_vm10, 1, %v4957_v17  ;;  %v4960_v31 = vld [vmem:[#allocation8_spill] sm:$0xff]  ;;  %vm2521_vm10 = vcmp.eq.s32.totalorder %v3602_v38, 13 }
 0x428   : > { %1475 = vmatprep.subr.bf16.mxu0 %v3564_v30  ;;  %1516 = vmatprep.subr.bf16.mxu1 %v3586_v35 }
 0x429   : > { %1572 = vperm.xlu1 %2987, %v1570_v28   ;;  %v4218_v28 = vld [vmem:[%s4901_s3 + $0x24] ss:$16 sps:$4 sm:$0xff]  }
 0x42b   : > { %1476 = vmatpush1.bf16.msra.mxu0 %v3581_v34  ;;  %1517 = vmatpush1.bf16.msra.mxu1 %v3598_v37 }
 0x42c   : > { %1477 = vmatprep.subr.bf16.mxu0 %v3593_v36  ;;  %1518 = vmatprep.subr.bf16.mxu1 %v3617_v41 }
 0x42f   : > { %1478 = vmatpush1.bf16.msra.mxu0 %v3612_v40  ;;  %1519 = vmatpush1.bf16.msra.mxu1 %v3629_v43  ;;  %v4961_v40 = vld [vmem:[#allocation10_spill] sm:$0xff] }
 0x430   : > { %1479 = vmatprep.subr.bf16.mxu0 %v3624_v42  ;;  %1520 = vmatprep.subr.bf16.mxu1 %v3647_v46 }
 0x433   : > { %1480 = vmatpush1.bf16.msra.mxu0 %v3642_v45  ;;  %1521 = vmatpush1.bf16.msra.mxu1 %v3654_v47 }
 0x434   : > { %1584 = vmatprep.subr.bf16.mxu0 %v4012_v6  ;;  %1625 = vmatprep.subr.bf16.mxu1 %v4018_v9 }
 0x4d6   : > { %v1380_v29 = vpop.f32.mrf.mxu0  ;;  %v1421_v30 = vpop.f32.mrf.mxu1 }
 0x4d7   : > { %v1428_v34 = vadd.f32 %v1380_v29, %v4960_v31  ;;  %v1430_v20 = vadd.f32 %v1421_v30, %v4962_v19  ;;  %v4224_v29 = vld [vmem:[%s4901_s3 + $0x2c] ss:$16 sps:$4 sm:$0xff]   ;;  %v4230_v30 = vld [vmem:[%s4901_s3 + $0x20] ss:$16 sps:$4 sm:$0xff]   ;;  %v4236_v31 = vld [vmem:[%s4901_s3 + $0x28] ss:$16 sps:$4 sm:$0xff]  }
 0x4d8   : > { %v1382_v35 = vpop.f32.mrf.mxu0  ;;  %v1423_v36 = vpop.f32.mrf.mxu1 }
 0x4d9   : > { %v1432_v37 = vmul.f32 0.5, %v1428_v34  ;;  %v1429_v41 = vadd.f32 %v1382_v35, %v4961_v40  ;;  %v1431_v23 = vadd.f32 %v1423_v36, %v4963_v21  ;;  %v4242_v34 = vld [vmem:[%s4901_s3 + $0x4] ss:$16 sps:$4 sm:$0xff]   ;;  %v4248_v35 = vld [vmem:[%s4901_s3 + $0xc] ss:$16 sps:$4 sm:$0xff]   ;;  %v1689_v40 = vsel %vm1688_vm12, 1, %v4957_v17 }
 0x4da   : > { %v1384_v42 = vpop.f32.mrf.mxu0  ;;  %v1425_v43 = vpop.f32.mrf.mxu1  ;;  %v4254_v36 = vld [vmem:[%s4901_s3] ss:$16 sps:$4 sm:$0xff]   ;;  %1691 = vperm.xlu0 %2986, %v1689_v40   ;;  %vm2640_vm12 = vcmp.eq.s32.totalorder %v3602_v38, 14 }
 0x4db   : > { %3076 = vtanh.f32 %v1432_v37  ;;  %v1436_v45 = vmul.f32 0.5, %v1429_v41  ;;  %v1441_v24 = vmul.f32 0.5, %v1431_v23  ;;  %v4260_v37 = vld [vmem:[%s4901_s3 + $0x8] ss:$16 sps:$4 sm:$0xff]   ;;  %v4964_v43 = vld [vmem:[#allocation12_spill] sm:$0xff] }
 0x4dc   : > { %v1385_v46 = vpop.f32.mrf.mxu0  ;;  %v1426_v47 = vpop.f32.mrf.mxu1 }
 0x4dd   : > { %3078 = vtanh.f32 %v1436_v45 }
 0x4de   : > { %3080 = vtanh.f32 %v1430_v20  ;;  %v4965_v20 = vld [vmem:[#allocation14_spill] sm:$0xff] }
 0x4df   : > { %3082 = vtanh.f32 %v1441_v24 }
 0x4e8   : > { %v3077_v25 = vpop.eup %3076 }
 0x4e9   : > { %v1434_v26 = vmul.f32 0.5, %v3077_v25 }
 0x4ea   : > { %v3079_v48 = vpop.eup %3078 }
 0x4eb   : > { %v1435_v33 = vadd.f32 0.5, %v1434_v26  ;;  %v1438_v8 = vmul.f32 0.5, %v3079_v48  ;;  %v3081_v51 = vpop.eup %3080 }
 0x4ec   : > { %v3083_v55 = vpop.eup %3082 }
 0x4ed   : > { %v1439_v27 = vadd.f32 0.5, %v1438_v8  ;;  %v1446_v12 = vmul.f32 %v3081_v51, %v1435_v33  ;;  %v1443_v7 = vmul.f32 0.5, %v3083_v55  ;;  %v4966_v33 = vld [vmem:[#allocation13_spill] sm:$0xff] }
 0x4ef   : > { %v1445_v0 = vmul.f32 %v1439_v27, %v4028_v54  ;;  %v1444_v56 = vadd.f32 0.5, %v1443_v7  ;;  %v4176_v54 = vld [vmem:[%s4901_s3 + $0x6c] ss:$16 sps:$4 sm:$0xff]  }
 0x4f0   : > { %v4967_v27 = vld [vmem:[#allocation15_spill] sm:$0xff] }
 0x4f1   : > { %v4150_v5 = vadd.f32 %v1446_v12, %v1445_v0 }
 0x4f3   : > { %3084 = vtanh.f32 %v4150_v5 }
 0x500   : > { %v3085_v58 = vpop.eup %3084 }
 0x501   : > { %v1449_v63 = vmul.f32 %v3085_v58, %v1444_v56 }
 0x503   : > { %v4154_v2 = vsel %vm1455_vm11, %v1449_v63, %v4032_v44  ;;  %v1464_v50 = vpack.c.bf16 %v1449_v63, %v1449_v63  ;;  %v4206_v44 = vld [vmem:[%s4901_s3 + $0x40] ss:$16 sps:$4 sm:$0xff]  }
 0x505   : > { %1498 = vmatmul.mubr.bf16.vlgmr.msra.gmra.mxu0 %v1464_v50  ;;  %1539 = vmatmul.mubr.bf16.vlgmr.msra.gmra.mxu1 %v1464_v50 }
 0x506   : > { %1585 = vmatpush1.bf16.msra.mxu0 %v4037_v59  ;;  %1626 = vmatpush1.bf16.msra.mxu1 %v4043_v3 }
 0x507   : > { %1586 = vmatprep.subr.bf16.mxu0 %v4049_v53  ;;  %1627 = vmatprep.subr.bf16.mxu1 %v4055_v61 }
 0x508   : > { %1616 = vmatprep.mubr.bf16.mxu0 %v4957_v17  ;;  %1657 = vmatprep.mubr.bf16.mxu1 %v4957_v17 }
 0x50a   : > { %1587 = vmatpush1.bf16.msra.mxu0 %v4063_v10  ;;  %1628 = vmatpush1.bf16.msra.mxu1 %v4069_v32 }
 0x50b   : > { %1588 = vmatprep.subr.bf16.mxu0 %v4075_v49  ;;  %1629 = vmatprep.subr.bf16.mxu1 %v4081_v52 }
 0x50e   : > { %1589 = vmatpush1.bf16.msra.mxu0 %v4087_v62  ;;  %1630 = vmatpush1.bf16.msra.mxu1 %v4093_v11 }
 0x50f   : > { %1590 = vmatprep.subr.bf16.mxu0 %v4099_v13  ;;  %1631 = vmatprep.subr.bf16.mxu1 %v4105_v14 }
 0x512   : > { %1591 = vmatpush1.bf16.msra.mxu0 %v4111_v15  ;;  %1632 = vmatpush1.bf16.msra.mxu1 %v4117_v16 }
 0x513   : > { %1592 = vmatprep.subr.bf16.mxu0 %v4123_v18  ;;  %1633 = vmatprep.subr.bf16.mxu1 %v4176_v54 }
 0x516   : > { %1593 = vmatpush1.bf16.msra.mxu0 %v4182_v1  ;;  %1634 = vmatpush1.bf16.msra.mxu1 %v4188_v57 }
 0x517   : > { %1594 = vmatprep.subr.bf16.mxu0 %v4194_v4  ;;  %1635 = vmatprep.subr.bf16.mxu1 %v4200_v60 }
 0x51a   : > { %1595 = vmatpush1.bf16.msra.mxu0 %v4206_v44  ;;  %1636 = vmatpush1.bf16.msra.mxu1 %v4212_v39 }
 0x51b   : > { %1596 = vmatprep.subr.bf16.mxu0 %v4218_v28  ;;  %1637 = vmatprep.subr.bf16.mxu1 %v4224_v29 }
 0x51e   : > { %1597 = vmatpush1.bf16.msra.mxu0 %v4230_v30  ;;  %1638 = vmatpush1.bf16.msra.mxu1 %v4236_v31 }
 0x51f   : > { %1598 = vmatprep.subr.bf16.mxu0 %v4242_v34  ;;  %1639 = vmatprep.subr.bf16.mxu1 %v4248_v35 }
 0x522   : > { %1599 = vmatpush1.bf16.msra.mxu0 %v4254_v36  ;;  %1640 = vmatpush1.bf16.msra.mxu1 %v4260_v37 }
 0x523   : > { %1703 = vmatprep.subr.bf16.mxu0 %v4012_v6  ;;  %1744 = vmatprep.subr.bf16.mxu1 %v4018_v9 }
 0x5c5   : > { %v1499_v41 = vpop.f32.mrf.mxu0  ;;  %v1540_v42 = vpop.f32.mrf.mxu1 }
 0x5c6   : > { %v1547_v45 = vadd.f32 %v1499_v41, %v4964_v43  ;;  %v1549_v8 = vadd.f32 %v1540_v42, %v4966_v33 }
 0x5c7   : > { %v1501_v46 = vpop.f32.mrf.mxu0  ;;  %v1542_v47 = vpop.f32.mrf.mxu1 }
 0x5c8   : > { %v1551_v19 = vmul.f32 0.5, %v1547_v45  ;;  %v1548_v21 = vadd.f32 %v1501_v46, %v4965_v20  ;;  %v1550_v51 = vadd.f32 %v1542_v47, %v4967_v27  ;;  %v1573_v45 = vpop.permute.xlu1 %1572 }
 0x5c9   : > { %v1503_v23 = vpop.f32.mrf.mxu0  ;;  %v1544_v24 = vpop.f32.mrf.mxu1  ;;  %vm1574_vm13 = vcmp.eq.s32.totalorder %v1573_v45, 1 }
 0x5ca   : > { %3086 = vtanh.f32 %v1551_v19  ;;  %v1555_v25 = vmul.f32 0.5, %v1548_v21  ;;  %v1560_v0 = vmul.f32 0.5, %v1550_v51  ;;  %v4968_v24 = vld [vmem:[#allocation16_spill] sm:$0xff] }
 0x5cb   : > { %v1504_v26 = vpop.f32.mrf.mxu0  ;;  %v1545_v48 = vpop.f32.mrf.mxu1 }
 0x5cc   : > { %3088 = vtanh.f32 %v1555_v25 }
 0x5cd   : > { %3090 = vtanh.f32 %v1549_v8  ;;  %v4969_v8 = vld [vmem:[#allocation18_spill] sm:$0xff] }
 0x5ce   : > { %3092 = vtanh.f32 %v1560_v0 }
 0x5d7   : > { %v3087_v12 = vpop.eup %3086 }
 0x5d8   : > { %v1553_v55 = vmul.f32 0.5, %v3087_v12 }
 0x5d9   : > { %v3089_v7 = vpop.eup %3088 }
 0x5da   : > { %v1554_v22 = vadd.f32 0.5, %v1553_v55  ;;  %v1557_v56 = vmul.f32 0.5, %v3089_v7  ;;  %v3091_v63 = vpop.eup %3090 }
 0x5db   : > { %v3093_v42 = vpop.eup %3092 }
 0x5dc   : > { %v1558_v58 = vadd.f32 0.5, %v1557_v56  ;;  %v1565_v40 = vmul.f32 %v3091_v63, %v1554_v22  ;;  %v1562_v43 = vmul.f32 0.5, %v3093_v42  ;;  %v4970_v22 = vld [vmem:[#allocation17_spill] sm:$0xff] }
 0x5de   : > { %v1564_v50 = vmul.f32 %v1558_v58, %v4150_v5  ;;  %v1563_v46 = vadd.f32 0.5, %v1562_v43  ;;  %v1808_v5 = vsel %vm1807_vm14, 1, %v4957_v17  ;;  %v4971_v58 = vld [vmem:[#allocation19_spill] sm:$0xff]  ;;  %vm2759_vm14 = vcmp.eq.s32.totalorder %v3602_v38, 15 }
 0x5df   : > { %1810 = vperm.xlu1 %2987, %v1808_v5  }
 0x5e0   : > { %v4272_v41 = vadd.f32 %v1565_v40, %v1564_v50 }
 0x5e2   : > { %3094 = vtanh.f32 %v4272_v41 }
 0x5ef   : > { %v3095_v47 = vpop.eup %3094 }
 0x5f0   : > { %v1568_v19 = vmul.f32 %v3095_v47, %v1563_v46 }
 0x5f2   : > { %v4276_v20 = vsel %vm1574_vm13, %v1568_v19, %v4154_v2  ;;  %v1583_v21 = vpack.c.bf16 %v1568_v19, %v1568_v19 }
 0x5f4   : > { %1617 = vmatmul.mubr.bf16.vlgmr.msra.gmra.mxu0 %v1583_v21  ;;  %1658 = vmatmul.mubr.bf16.vlgmr.msra.gmra.mxu1 %v1583_v21 }
 0x5f5   : > { %1704 = vmatpush1.bf16.msra.mxu0 %v4037_v59  ;;  %1745 = vmatpush1.bf16.msra.mxu1 %v4043_v3 }
 0x5f6   : > { %1705 = vmatprep.subr.bf16.mxu0 %v4049_v53  ;;  %1746 = vmatprep.subr.bf16.mxu1 %v4055_v61 }
 0x5f7   : > { %1735 = vmatprep.mubr.bf16.mxu0 %v4957_v17  ;;  %1776 = vmatprep.mubr.bf16.mxu1 %v4957_v17 }
 0x5f9   : > { %1706 = vmatpush1.bf16.msra.mxu0 %v4063_v10  ;;  %1747 = vmatpush1.bf16.msra.mxu1 %v4069_v32 }
 0x5fa   : > { %1707 = vmatprep.subr.bf16.mxu0 %v4075_v49  ;;  %1748 = vmatprep.subr.bf16.mxu1 %v4081_v52 }
 0x5fd   : > { %1708 = vmatpush1.bf16.msra.mxu0 %v4087_v62  ;;  %1749 = vmatpush1.bf16.msra.mxu1 %v4093_v11 }
 0x5fe   : > { %1709 = vmatprep.subr.bf16.mxu0 %v4099_v13  ;;  %1750 = vmatprep.subr.bf16.mxu1 %v4105_v14 }
 0x601   : > { %1710 = vmatpush1.bf16.msra.mxu0 %v4111_v15  ;;  %1751 = vmatpush1.bf16.msra.mxu1 %v4117_v16 }
 0x602   : > { %1711 = vmatprep.subr.bf16.mxu0 %v4123_v18  ;;  %1752 = vmatprep.subr.bf16.mxu1 %v4176_v54 }
 0x605   : > { %1712 = vmatpush1.bf16.msra.mxu0 %v4182_v1  ;;  %1753 = vmatpush1.bf16.msra.mxu1 %v4188_v57 }
 0x606   : > { %1713 = vmatprep.subr.bf16.mxu0 %v4194_v4  ;;  %1754 = vmatprep.subr.bf16.mxu1 %v4200_v60 }
 0x609   : > { %1714 = vmatpush1.bf16.msra.mxu0 %v4206_v44  ;;  %1755 = vmatpush1.bf16.msra.mxu1 %v4212_v39 }
 0x60a   : > { %1715 = vmatprep.subr.bf16.mxu0 %v4218_v28  ;;  %1756 = vmatprep.subr.bf16.mxu1 %v4224_v29 }
 0x60d   : > { %1716 = vmatpush1.bf16.msra.mxu0 %v4230_v30  ;;  %1757 = vmatpush1.bf16.msra.mxu1 %v4236_v31 }
 0x60e   : > { %1717 = vmatprep.subr.bf16.mxu0 %v4242_v34  ;;  %1758 = vmatprep.subr.bf16.mxu1 %v4248_v35 }
 0x611   : > { %1718 = vmatpush1.bf16.msra.mxu0 %v4254_v36  ;;  %1759 = vmatpush1.bf16.msra.mxu1 %v4260_v37 }
 0x612   : > { %1822 = vmatprep.subr.bf16.mxu0 %v4012_v6  ;;  %1863 = vmatprep.subr.bf16.mxu1 %v4018_v9 }
 0x6b4   : > { %v1618_v2 = vpop.f32.mrf.mxu0  ;;  %v1659_v23 = vpop.f32.mrf.mxu1 }
 0x6b5   : > { %v1666_v25 = vadd.f32 %v1618_v2, %v4968_v24  ;;  %v1668_v56 = vadd.f32 %v1659_v23, %v4970_v22 }
 0x6b6   : > { %v1620_v26 = vpop.f32.mrf.mxu0  ;;  %v1661_v48 = vpop.f32.mrf.mxu1 }
 0x6b7   : > { %v1670_v33 = vmul.f32 0.5, %v1666_v25  ;;  %v1667_v27 = vadd.f32 %v1620_v26, %v4969_v8  ;;  %v1669_v63 = vadd.f32 %v1661_v48, %v4971_v58  ;;  %v1692_v25 = vpop.permute.xlu0 %1691 }
 0x6b8   : > { %v1622_v51 = vpop.f32.mrf.mxu0  ;;  %v1663_v0 = vpop.f32.mrf.mxu1  ;;  %vm1693_vm15 = vcmp.eq.s32.totalorder %v1692_v25, 1 }
 0x6b9   : > { %3096 = vtanh.f32 %v1670_v33  ;;  %v1674_v12 = vmul.f32 0.5, %v1667_v27  ;;  %v1679_v50 = vmul.f32 0.5, %v1669_v63  ;;  %v4972_v0 = vld [vmem:[#allocation20_spill] sm:$0xff] }
 0x6ba   : > { %v1623_v55 = vpop.f32.mrf.mxu0  ;;  %v1664_v7 = vpop.f32.mrf.mxu1 }
 0x6bb   : > { %3098 = vtanh.f32 %v1674_v12 }
 0x6bc   : > { %3100 = vtanh.f32 %v1668_v56  ;;  %v4973_v56 = vld [vmem:[#allocation22_spill] sm:$0xff] }
 0x6bd   : > { %3102 = vtanh.f32 %v1679_v50 }
 0x6c6   : > { %v3097_v40 = vpop.eup %3096 }
 0x6c7   : > { %v1672_v42 = vmul.f32 0.5, %v3097_v40 }
 0x6c8   : > { %v3099_v43 = vpop.eup %3098 }
 0x6c9   : > { %v1673_v45 = vadd.f32 0.5, %v1672_v42  ;;  %v1676_v46 = vmul.f32 0.5, %v3099_v43  ;;  %v3101_v19 = vpop.eup %3100 }
 0x6ca   : > { %v3103_v23 = vpop.eup %3102 }
 0x6cb   : > { %v1677_v47 = vadd.f32 0.5, %v1676_v46  ;;  %v1684_v5 = vmul.f32 %v3101_v19, %v1673_v45  ;;  %v1681_v24 = vmul.f32 0.5, %v3103_v23  ;;  %v4974_v45 = vld [vmem:[#allocation21_spill] sm:$0xff] }
 0x6cd   : > { %v1683_v21 = vmul.f32 %v1677_v47, %v4272_v41  ;;  %v1682_v26 = vadd.f32 0.5, %v1681_v24  ;;  %v1927_v41 = vsel %vm1926_vm0, 1, %v4957_v17  ;;  %v4975_v47 = vld [vmem:[#allocation23_spill] sm:$0xff] }
 0x6ce   : > { %1929 = vperm.xlu0 %2986, %v1927_v41  }
 0x6cf   : > { %v4319_v2 = vadd.f32 %v1684_v5, %v1683_v21 }
 0x6d1   : > { %3104 = vtanh.f32 %v4319_v2 }
 0x6de   : > { %v3105_v48 = vpop.eup %3104 }
 0x6df   : > { %v1687_v33 = vmul.f32 %v3105_v48, %v1682_v26 }
 0x6e1   : > { %v4323_v8 = vsel %vm1693_vm15, %v1687_v33, %v4276_v20  ;;  %v1702_v27 = vpack.c.bf16 %v1687_v33, %v1687_v33 }
 0x6e3   : > { %1736 = vmatmul.mubr.bf16.vlgmr.msra.gmra.mxu0 %v1702_v27  ;;  %1777 = vmatmul.mubr.bf16.vlgmr.msra.gmra.mxu1 %v1702_v27 }
 0x6e4   : > { %1823 = vmatpush1.bf16.msra.mxu0 %v4037_v59  ;;  %1864 = vmatpush1.bf16.msra.mxu1 %v4043_v3 }
 0x6e5   : > { %1824 = vmatprep.subr.bf16.mxu0 %v4049_v53  ;;  %1865 = vmatprep.subr.bf16.mxu1 %v4055_v61 }
 0x6e6   : > { %1854 = vmatprep.mubr.bf16.mxu0 %v4957_v17  ;;  %1895 = vmatprep.mubr.bf16.mxu1 %v4957_v17 }
 0x6e8   : > { %1825 = vmatpush1.bf16.msra.mxu0 %v4063_v10  ;;  %1866 = vmatpush1.bf16.msra.mxu1 %v4069_v32 }
 0x6e9   : > { %1826 = vmatprep.subr.bf16.mxu0 %v4075_v49  ;;  %1867 = vmatprep.subr.bf16.mxu1 %v4081_v52 }
 0x6ec   : > { %1827 = vmatpush1.bf16.msra.mxu0 %v4087_v62  ;;  %1868 = vmatpush1.bf16.msra.mxu1 %v4093_v11 }
 0x6ed   : > { %1828 = vmatprep.subr.bf16.mxu0 %v4099_v13  ;;  %1869 = vmatprep.subr.bf16.mxu1 %v4105_v14 }
 0x6f0   : > { %1829 = vmatpush1.bf16.msra.mxu0 %v4111_v15  ;;  %1870 = vmatpush1.bf16.msra.mxu1 %v4117_v16 }
 0x6f1   : > { %1830 = vmatprep.subr.bf16.mxu0 %v4123_v18  ;;  %1871 = vmatprep.subr.bf16.mxu1 %v4176_v54 }
 0x6f4   : > { %1831 = vmatpush1.bf16.msra.mxu0 %v4182_v1  ;;  %1872 = vmatpush1.bf16.msra.mxu1 %v4188_v57 }
 0x6f5   : > { %1832 = vmatprep.subr.bf16.mxu0 %v4194_v4  ;;  %1873 = vmatprep.subr.bf16.mxu1 %v4200_v60 }
 0x6f8   : > { %1833 = vmatpush1.bf16.msra.mxu0 %v4206_v44  ;;  %1874 = vmatpush1.bf16.msra.mxu1 %v4212_v39 }
 0x6f9   : > { %1834 = vmatprep.subr.bf16.mxu0 %v4218_v28  ;;  %1875 = vmatprep.subr.bf16.mxu1 %v4224_v29 }
 0x6fc   : > { %1835 = vmatpush1.bf16.msra.mxu0 %v4230_v30  ;;  %1876 = vmatpush1.bf16.msra.mxu1 %v4236_v31 }
 0x6fd   : > { %1836 = vmatprep.subr.bf16.mxu0 %v4242_v34  ;;  %1877 = vmatprep.subr.bf16.mxu1 %v4248_v35 }
 0x700   : > { %1837 = vmatpush1.bf16.msra.mxu0 %v4254_v36  ;;  %1878 = vmatpush1.bf16.msra.mxu1 %v4260_v37 }
 0x701   : > { %1941 = vmatprep.subr.bf16.mxu0 %v4012_v6  ;;  %1982 = vmatprep.subr.bf16.mxu1 %v4018_v9 }
 0x7a3   : > { %v1737_v20 = vpop.f32.mrf.mxu0  ;;  %v1778_v51 = vpop.f32.mrf.mxu1 }
 0x7a4   : > { %v1785_v12 = vadd.f32 %v1737_v20, %v4972_v0  ;;  %v1787_v46 = vadd.f32 %v1778_v51, %v4974_v45 }
 0x7a5   : > { %v1739_v55 = vpop.f32.mrf.mxu0  ;;  %v1780_v7 = vpop.f32.mrf.mxu1 }
 0x7a6   : > { %v1789_v22 = vmul.f32 0.5, %v1785_v12  ;;  %v1786_v58 = vadd.f32 %v1739_v55, %v4973_v56  ;;  %v1788_v19 = vadd.f32 %v1780_v7, %v4975_v47  ;;  %v1811_v12 = vpop.permute.xlu1 %1810 }
 0x7a7   : > { %v1741_v63 = vpop.f32.mrf.mxu0  ;;  %v1782_v50 = vpop.f32.mrf.mxu1  ;;  %vm1812_vm1 = vcmp.eq.s32.totalorder %v1811_v12, 1 }
 0x7a8   : > { %3106 = vtanh.f32 %v1789_v22  ;;  %v1793_v40 = vmul.f32 0.5, %v1786_v58  ;;  %v1798_v21 = vmul.f32 0.5, %v1788_v19  ;;  %v4976_v50 = vld [vmem:[#allocation24_spill] sm:$0xff] }
 0x7a9   : > { %v1742_v42 = vpop.f32.mrf.mxu0  ;;  %v1783_v43 = vpop.f32.mrf.mxu1 }
 0x7aa   : > { %3108 = vtanh.f32 %v1793_v40 }
 0x7ab   : > { %3110 = vtanh.f32 %v1787_v46  ;;  %v4977_v46 = vld [vmem:[#allocation26_spill] sm:$0xff] }
 0x7ac   : > { %3112 = vtanh.f32 %v1798_v21 }
 0x7b5   : > { %v3107_v5 = vpop.eup %3106 }
 0x7b6   : > { %v1791_v23 = vmul.f32 0.5, %v3107_v5 }
 0x7b7   : > { %v3109_v24 = vpop.eup %3108 }
 0x7b8   : > { %v1792_v25 = vadd.f32 0.5, %v1791_v23  ;;  %v1795_v26 = vmul.f32 0.5, %v3109_v24  ;;  %v3111_v33 = vpop.eup %3110 }
 0x7b9   : > { %v3113_v51 = vpop.eup %3112 }
 0x7ba   : > { %v1796_v48 = vadd.f32 0.5, %v1795_v26  ;;  %v1803_v41 = vmul.f32 %v3111_v33, %v1792_v25  ;;  %v1800_v0 = vmul.f32 0.5, %v3113_v51  ;;  %v4978_v25 = vld [vmem:[#allocation25_spill] sm:$0xff] }
 0x7bc   : > { %v1802_v27 = vmul.f32 %v1796_v48, %v4319_v2  ;;  %v1801_v55 = vadd.f32 0.5, %v1800_v0  ;;  %v2046_v2 = vsel %vm2045_vm2, 1, %v4957_v17  ;;  %v4979_v48 = vld [vmem:[#allocation27_spill] sm:$0xff] }
 0x7bd   : > { %2048 = vperm.xlu1 %2987, %v2046_v2  }
 0x7be   : > { %v4366_v20 = vadd.f32 %v1803_v41, %v1802_v27 }
 0x7c0   : > { %3114 = vtanh.f32 %v4366_v20 }
 0x7cd   : > { %v3115_v7 = vpop.eup %3114 }
 0x7ce   : > { %v1806_v22 = vmul.f32 %v3115_v7, %v1801_v55 }
 0x7d0   : > { %v4370_v56 = vsel %vm1812_vm1, %v1806_v22, %v4323_v8  ;;  %v1821_v58 = vpack.c.bf16 %v1806_v22, %v1806_v22 }
 0x7d2   : > { %1855 = vmatmul.mubr.bf16.vlgmr.msra.gmra.mxu0 %v1821_v58  ;;  %1896 = vmatmul.mubr.bf16.vlgmr.msra.gmra.mxu1 %v1821_v58 }
 0x7d3   : > { %1942 = vmatpush1.bf16.msra.mxu0 %v4037_v59  ;;  %1983 = vmatpush1.bf16.msra.mxu1 %v4043_v3 }
 0x7d4   : > { %1943 = vmatprep.subr.bf16.mxu0 %v4049_v53  ;;  %1984 = vmatprep.subr.bf16.mxu1 %v4055_v61 }
 0x7d5   : > { %1973 = vmatprep.mubr.bf16.mxu0 %v4957_v17  ;;  %2014 = vmatprep.mubr.bf16.mxu1 %v4957_v17 }
 0x7d7   : > { %1944 = vmatpush1.bf16.msra.mxu0 %v4063_v10  ;;  %1985 = vmatpush1.bf16.msra.mxu1 %v4069_v32 }
 0x7d8   : > { %1945 = vmatprep.subr.bf16.mxu0 %v4075_v49  ;;  %1986 = vmatprep.subr.bf16.mxu1 %v4081_v52 }
 0x7db   : > { %1946 = vmatpush1.bf16.msra.mxu0 %v4087_v62  ;;  %1987 = vmatpush1.bf16.msra.mxu1 %v4093_v11 }
 0x7dc   : > { %1947 = vmatprep.subr.bf16.mxu0 %v4099_v13  ;;  %1988 = vmatprep.subr.bf16.mxu1 %v4105_v14 }
 0x7df   : > { %1948 = vmatpush1.bf16.msra.mxu0 %v4111_v15  ;;  %1989 = vmatpush1.bf16.msra.mxu1 %v4117_v16 }
 0x7e0   : > { %1949 = vmatprep.subr.bf16.mxu0 %v4123_v18  ;;  %1990 = vmatprep.subr.bf16.mxu1 %v4176_v54 }
 0x7e3   : > { %1950 = vmatpush1.bf16.msra.mxu0 %v4182_v1  ;;  %1991 = vmatpush1.bf16.msra.mxu1 %v4188_v57 }
 0x7e4   : > { %1951 = vmatprep.subr.bf16.mxu0 %v4194_v4  ;;  %1992 = vmatprep.subr.bf16.mxu1 %v4200_v60 }
 0x7e7   : > { %1952 = vmatpush1.bf16.msra.mxu0 %v4206_v44  ;;  %1993 = vmatpush1.bf16.msra.mxu1 %v4212_v39 }
 0x7e8   : > { %1953 = vmatprep.subr.bf16.mxu0 %v4218_v28  ;;  %1994 = vmatprep.subr.bf16.mxu1 %v4224_v29 }
 0x7eb   : > { %1954 = vmatpush1.bf16.msra.mxu0 %v4230_v30  ;;  %1995 = vmatpush1.bf16.msra.mxu1 %v4236_v31 }
 0x7ec   : > { %1955 = vmatprep.subr.bf16.mxu0 %v4242_v34  ;;  %1996 = vmatprep.subr.bf16.mxu1 %v4248_v35 }
 0x7ef   : > { %1956 = vmatpush1.bf16.msra.mxu0 %v4254_v36  ;;  %1997 = vmatpush1.bf16.msra.mxu1 %v4260_v37 }
 0x7f0   : > { %2060 = vmatprep.subr.bf16.mxu0 %v4012_v6  ;;  %2101 = vmatprep.subr.bf16.mxu1 %v4018_v9 }
 0x892   : > { %v1856_v8 = vpop.f32.mrf.mxu0  ;;  %v1897_v63 = vpop.f32.mrf.mxu1 }
 0x893   : > { %v1904_v40 = vadd.f32 %v1856_v8, %v4976_v50  ;;  %v1906_v26 = vadd.f32 %v1897_v63, %v4978_v25 }
 0x894   : > { %v1858_v42 = vpop.f32.mrf.mxu0  ;;  %v1899_v43 = vpop.f32.mrf.mxu1 }
 0x895   : > { %v1908_v45 = vmul.f32 0.5, %v1904_v40  ;;  %v1905_v47 = vadd.f32 %v1858_v42, %v4977_v46  ;;  %v1907_v33 = vadd.f32 %v1899_v43, %v4979_v48  ;;  %v1930_v40 = vpop.permute.xlu0 %1929 }
 0x896   : > { %v1860_v19 = vpop.f32.mrf.mxu0  ;;  %v1901_v21 = vpop.f32.mrf.mxu1  ;;  %vm1931_vm3 = vcmp.eq.s32.totalorder %v1930_v40, 1 }
 0x897   : > { %3116 = vtanh.f32 %v1908_v45  ;;  %v1912_v5 = vmul.f32 0.5, %v1905_v47  ;;  %v1917_v27 = vmul.f32 0.5, %v1907_v33  ;;  %v4980_v21 = vld [vmem:[#allocation28_spill] sm:$0xff] }
 0x898   : > { %v1861_v23 = vpop.f32.mrf.mxu0  ;;  %v1902_v24 = vpop.f32.mrf.mxu1 }
 0x899   : > { %3118 = vtanh.f32 %v1912_v5 }
 0x89a   : > { %3120 = vtanh.f32 %v1906_v26  ;;  %v4981_v26 = vld [vmem:[#allocation30_spill] sm:$0xff] }
 0x89b   : > { %3122 = vtanh.f32 %v1917_v27 }
 0x8a4   : > { %v3117_v41 = vpop.eup %3116 }
 0x8a5   : > { %v1910_v51 = vmul.f32 0.5, %v3117_v41 }
 0x8a6   : > { %v3119_v0 = vpop.eup %3118 }
 0x8a7   : > { %v1911_v12 = vadd.f32 0.5, %v1910_v51  ;;  %v1914_v55 = vmul.f32 0.5, %v3119_v0  ;;  %v3121_v22 = vpop.eup %3120  ;;  %v4982_v51 = vld [vmem:[#allocation29_spill] sm:$0xff] }
 0x8a8   : > { %v3123_v63 = vpop.eup %3122 }
 0x8a9   : > { %v1915_v7 = vadd.f32 0.5, %v1914_v55  ;;  %v1922_v2 = vmul.f32 %v3121_v22, %v1911_v12  ;;  %v1919_v50 = vmul.f32 0.5, %v3123_v63  ;;  %v4983_v12 = vld [vmem:[#allocation31_spill] sm:$0xff] }
 0x8ab   : > { %v1921_v58 = vmul.f32 %v1915_v7, %v4366_v20  ;;  %v1920_v42 = vadd.f32 0.5, %v1919_v50  ;;  %v2165_v20 = vsel %vm2164_vm4, 1, %v4957_v17 }
 0x8ac   : > { %2167 = vperm.xlu0 %2986, %v2165_v20  }
 0x8ad   : > { %v4413_v8 = vadd.f32 %v1922_v2, %v1921_v58 }
 0x8af   : > { %3124 = vtanh.f32 %v4413_v8 }
 0x8bc   : > { %v3125_v43 = vpop.eup %3124 }
 0x8bd   : > { %v1925_v45 = vmul.f32 %v3125_v43, %v1920_v42 }
 0x8bf   : > { %v4417_v46 = vsel %vm1931_vm3, %v1925_v45, %v4370_v56  ;;  %v1940_v47 = vpack.c.bf16 %v1925_v45, %v1925_v45 }
 0x8c1   : > { %1974 = vmatmul.mubr.bf16.vlgmr.msra.gmra.mxu0 %v1940_v47  ;;  %2015 = vmatmul.mubr.bf16.vlgmr.msra.gmra.mxu1 %v1940_v47 }
 0x8c2   : > { %2061 = vmatpush1.bf16.msra.mxu0 %v4037_v59  ;;  %2102 = vmatpush1.bf16.msra.mxu1 %v4043_v3 }
 0x8c3   : > { %2062 = vmatprep.subr.bf16.mxu0 %v4049_v53  ;;  %2103 = vmatprep.subr.bf16.mxu1 %v4055_v61 }
 0x8c4   : > { %2092 = vmatprep.mubr.bf16.mxu0 %v4957_v17  ;;  %2133 = vmatprep.mubr.bf16.mxu1 %v4957_v17 }
 0x8c6   : > { %2063 = vmatpush1.bf16.msra.mxu0 %v4063_v10  ;;  %2104 = vmatpush1.bf16.msra.mxu1 %v4069_v32 }
 0x8c7   : > { %2064 = vmatprep.subr.bf16.mxu0 %v4075_v49  ;;  %2105 = vmatprep.subr.bf16.mxu1 %v4081_v52 }
 0x8ca   : > { %2065 = vmatpush1.bf16.msra.mxu0 %v4087_v62  ;;  %2106 = vmatpush1.bf16.msra.mxu1 %v4093_v11 }
 0x8cb   : > { %2066 = vmatprep.subr.bf16.mxu0 %v4099_v13  ;;  %2107 = vmatprep.subr.bf16.mxu1 %v4105_v14 }
 0x8ce   : > { %2067 = vmatpush1.bf16.msra.mxu0 %v4111_v15  ;;  %2108 = vmatpush1.bf16.msra.mxu1 %v4117_v16 }
 0x8cf   : > { %2068 = vmatprep.subr.bf16.mxu0 %v4123_v18  ;;  %2109 = vmatprep.subr.bf16.mxu1 %v4176_v54 }
 0x8d2   : > { %2069 = vmatpush1.bf16.msra.mxu0 %v4182_v1  ;;  %2110 = vmatpush1.bf16.msra.mxu1 %v4188_v57 }
 0x8d3   : > { %2070 = vmatprep.subr.bf16.mxu0 %v4194_v4  ;;  %2111 = vmatprep.subr.bf16.mxu1 %v4200_v60 }
 0x8d6   : > { %2071 = vmatpush1.bf16.msra.mxu0 %v4206_v44  ;;  %2112 = vmatpush1.bf16.msra.mxu1 %v4212_v39 }
 0x8d7   : > { %2072 = vmatprep.subr.bf16.mxu0 %v4218_v28  ;;  %2113 = vmatprep.subr.bf16.mxu1 %v4224_v29 }
 0x8da   : > { %2073 = vmatpush1.bf16.msra.mxu0 %v4230_v30  ;;  %2114 = vmatpush1.bf16.msra.mxu1 %v4236_v31 }
 0x8db   : > { %2074 = vmatprep.subr.bf16.mxu0 %v4242_v34  ;;  %2115 = vmatprep.subr.bf16.mxu1 %v4248_v35 }
 0x8de   : > { %2075 = vmatpush1.bf16.msra.mxu0 %v4254_v36  ;;  %2116 = vmatpush1.bf16.msra.mxu1 %v4260_v37 }
 0x8df   : > { %2179 = vmatprep.subr.bf16.mxu0 %v4012_v6  ;;  %2220 = vmatprep.subr.bf16.mxu1 %v4018_v9 }
 0x981   : > { %v1975_v56 = vpop.f32.mrf.mxu0  ;;  %v2016_v19 = vpop.f32.mrf.mxu1 }
 0x982   : > { %v2023_v5 = vadd.f32 %v1975_v56, %v4980_v21  ;;  %v2025_v0 = vadd.f32 %v2016_v19, %v4982_v51  ;;  %v2049_v19 = vpop.permute.xlu1 %2048 }
 0x983   : > { %v1977_v23 = vpop.f32.mrf.mxu0  ;;  %v2018_v24 = vpop.f32.mrf.mxu1  ;;  %vm2050_vm5 = vcmp.eq.s32.totalorder %v2049_v19, 1  ;;  %v4532_v19 = vld [vmem:[%s4901_s3 + $0xe8] ss:$16 sps:$4 sm:$0xff]  }
 0x984   : > { %v2027_v25 = vmul.f32 0.5, %v2023_v5  ;;  %v2024_v48 = vadd.f32 %v1977_v23, %v4981_v26  ;;  %v2026_v55 = vadd.f32 %v2018_v24, %v4983_v12  ;;  %v4986_v26 = vld [vmem:[#allocation33_spill] sm:$0xff] }
 0x985   : > { %v1979_v33 = vpop.f32.mrf.mxu0  ;;  %v2020_v27 = vpop.f32.mrf.mxu1 }
 0x986   : > { %3126 = vtanh.f32 %v2027_v25  ;;  %v2031_v6 = vmul.f32 0.5, %v2024_v48  ;;  %v2036_v7 = vmul.f32 0.5, %v2026_v55  ;;  %v4987_v33 = vld [vmem:[#allocation35_spill] sm:$0xff] }
 0x987   : > { %v1980_v41 = vpop.f32.mrf.mxu0  ;;  %v2021_v9 = vpop.f32.mrf.mxu1 }
 0x988   : > { %3128 = vtanh.f32 %v2031_v6 }
 0x989   : > { %3130 = vtanh.f32 %v2025_v0 }
 0x98a   : > { %3132 = vtanh.f32 %v2036_v7 }
 0x993   : > { %v3127_v22 = vpop.eup %3126 }
 0x994   : > { %v2029_v58 = vmul.f32 0.5, %v3127_v22 }
 0x995   : > { %v3129_v2 = vpop.eup %3128 }
 0x996   : > { %v2030_v63 = vadd.f32 0.5, %v2029_v58  ;;  %v2033_v50 = vmul.f32 0.5, %v3129_v2  ;;  %v3131_v42 = vpop.eup %3130 }
 0x997   : > { %v3133_v20 = vpop.eup %3132 }
 0x998   : > { %v2034_v40 = vadd.f32 0.5, %v2033_v50  ;;  %v2041_v45 = vmul.f32 %v3131_v42, %v2030_v63  ;;  %v2038_v56 = vmul.f32 0.5, %v3133_v20 }
 0x99a   : > { %v2040_v43 = vmul.f32 %v2034_v40, %v4413_v8  ;;  %v2039_v21 = vadd.f32 0.5, %v2038_v56  ;;  %v2168_v40 = vpop.permute.xlu0 %2167 }
 0x99b   : > { %vm2169_vm7 = vcmp.eq.s32.totalorder %v2168_v40, 1  ;;  %v4671_v40 = vld [vmem:[%s4901_s3 + $0x60] ss:$16 sps:$4 sm:$0xff]  }
 0x99c   : > { %v4460_v47 = vadd.f32 %v2041_v45, %v2040_v43 }
 0x99e   : > { %3134 = vtanh.f32 %v4460_v47 }
 0x9ab   : > { %v3135_v5 = vpop.eup %3134 }
 0x9ac   : > { %v2044_v23 = vmul.f32 %v3135_v5, %v2039_v21  ;;  %v4538_v21 = vld [vmem:[%s4901_s3 + $0xc4] ss:$16 sps:$4 sm:$0xff]   ;;  %v4544_v5 = vld [vmem:[%s4901_s3 + $0xcc] ss:$16 sps:$4 sm:$0xff]  }
 0x9ae   : > { %v4464_v24 = vsel %vm2050_vm5, %v2044_v23, %v4417_v46  ;;  %v2059_v25 = vpack.c.bf16 %v2044_v23, %v2044_v23  ;;  %v4552_v23 = vld [vmem:[%s4901_s3 + $0xc0] ss:$16 sps:$4 sm:$0xff]  }
 0x9b0   : > { %2093 = vmatmul.mubr.bf16.vlgmr.msra.gmra.mxu0 %v2059_v25  ;;  %2134 = vmatmul.mubr.bf16.vlgmr.msra.gmra.mxu1 %v2059_v25  ;;  %v4564_v25 = vld [vmem:[%s4901_s3 + $0xa4] ss:$16 sps:$4 sm:$0xff]  }
 0x9b1   : > { %2180 = vmatpush1.bf16.msra.mxu0 %v4037_v59  ;;  %2221 = vmatpush1.bf16.msra.mxu1 %v4043_v3  ;;  %v4501_v59 = vld [vmem:[%s4901_s3 + $0xe4] ss:$16 sps:$4 sm:$0xff]   ;;  %v4507_v3 = vld [vmem:[%s4901_s3 + $0xec] ss:$16 sps:$4 sm:$0xff]  }
 0x9b2   : > { %2181 = vmatprep.subr.bf16.mxu0 %v4049_v53  ;;  %2222 = vmatprep.subr.bf16.mxu1 %v4055_v61  ;;  %v2284_v53 = vsel %vm2283_vm6, 1, %v4957_v17 }
 0x9b3   : > { %2211 = vmatprep.mubr.bf16.mxu0 %v4957_v17  ;;  %2252 = vmatprep.mubr.bf16.mxu1 %v4957_v17 }
 0x9b4   : > { %2286 = vperm.xlu1 %2987, %v2284_v53   ;;  %v4570_v53 = vld [vmem:[%s4901_s3 + $0xac] ss:$16 sps:$4 sm:$0xff]  }
 0x9b5   : > { %2182 = vmatpush1.bf16.msra.mxu0 %v4063_v10  ;;  %2223 = vmatpush1.bf16.msra.mxu1 %v4069_v32  ;;  %v4984_v32 = vld [vmem:[#allocation32_spill] sm:$0xff] }
 0x9b6   : > { %2183 = vmatprep.subr.bf16.mxu0 %v4075_v49  ;;  %2224 = vmatprep.subr.bf16.mxu1 %v4081_v52 }
 0x9b9   : > { %2184 = vmatpush1.bf16.msra.mxu0 %v4087_v62  ;;  %2225 = vmatpush1.bf16.msra.mxu1 %v4093_v11 }
 0x9ba   : > { %2185 = vmatprep.subr.bf16.mxu0 %v4099_v13  ;;  %2226 = vmatprep.subr.bf16.mxu1 %v4105_v14  ;;  %v4985_v13 = vld [vmem:[#allocation34_spill] sm:$0xff] }
 0x9bd   : > { %2186 = vmatpush1.bf16.msra.mxu0 %v4111_v15  ;;  %2227 = vmatpush1.bf16.msra.mxu1 %v4117_v16 }
 0x9be   : > { %2187 = vmatprep.subr.bf16.mxu0 %v4123_v18  ;;  %2228 = vmatprep.subr.bf16.mxu1 %v4176_v54 }
 0x9c1   : > { %2188 = vmatpush1.bf16.msra.mxu0 %v4182_v1  ;;  %2229 = vmatpush1.bf16.msra.mxu1 %v4188_v57 }
 0x9c2   : > { %2189 = vmatprep.subr.bf16.mxu0 %v4194_v4  ;;  %2230 = vmatprep.subr.bf16.mxu1 %v4200_v60 }
 0x9c5   : > { %2190 = vmatpush1.bf16.msra.mxu0 %v4206_v44  ;;  %2231 = vmatpush1.bf16.msra.mxu1 %v4212_v39 }
 0x9c6   : > { %2191 = vmatprep.subr.bf16.mxu0 %v4218_v28  ;;  %2232 = vmatprep.subr.bf16.mxu1 %v4224_v29 }
 0x9c9   : > { %2192 = vmatpush1.bf16.msra.mxu0 %v4230_v30  ;;  %2233 = vmatpush1.bf16.msra.mxu1 %v4236_v31 }
 0x9ca   : > { %2193 = vmatprep.subr.bf16.mxu0 %v4242_v34  ;;  %2234 = vmatprep.subr.bf16.mxu1 %v4248_v35 }
 0x9cd   : > { %2194 = vmatpush1.bf16.msra.mxu0 %v4254_v36  ;;  %2235 = vmatpush1.bf16.msra.mxu1 %v4260_v37 }
 0x9ce   : > { %2298 = vmatprep.subr.bf16.mxu0 %v4501_v59  ;;  %2339 = vmatprep.subr.bf16.mxu1 %v4507_v3 }
 0xa70   : > { %v2094_v61 = vpop.f32.mrf.mxu0  ;;  %v2135_v10 = vpop.f32.mrf.mxu1 }
 0xa71   : > { %v2142_v49 = vadd.f32 %v2094_v61, %v4984_v32  ;;  %v2144_v48 = vadd.f32 %v2135_v10, %v4986_v26  ;;  %v4576_v61 = vld [vmem:[%s4901_s3 + $0xa0] ss:$16 sps:$4 sm:$0xff]   ;;  %v4582_v10 = vld [vmem:[%s4901_s3 + $0xa8] ss:$16 sps:$4 sm:$0xff]   ;;  %v4588_v32 = vld [vmem:[%s4901_s3 + $0x84] ss:$16 sps:$4 sm:$0xff]  }
 0xa72   : > { %v2096_v52 = vpop.f32.mrf.mxu0  ;;  %v2137_v62 = vpop.f32.mrf.mxu1 }
 0xa73   : > { %v2146_v11 = vmul.f32 0.5, %v2142_v49  ;;  %v2143_v14 = vadd.f32 %v2096_v52, %v4985_v13  ;;  %v2145_v27 = vadd.f32 %v2137_v62, %v4987_v33  ;;  %v4594_v49 = vld [vmem:[%s4901_s3 + $0x8c] ss:$16 sps:$4 sm:$0xff]   ;;  %v4600_v52 = vld [vmem:[%s4901_s3 + $0x80] ss:$16 sps:$4 sm:$0xff]  }
 0xa74   : > { %v2098_v15 = vpop.f32.mrf.mxu0  ;;  %v2139_v16 = vpop.f32.mrf.mxu1  ;;  %v4606_v62 = vld [vmem:[%s4901_s3 + $0x88] ss:$16 sps:$4 sm:$0xff]  }
 0xa75   : > { %3136 = vtanh.f32 %v2146_v11  ;;  %v2150_v18 = vmul.f32 0.5, %v2143_v14  ;;  %v2155_v6 = vmul.f32 0.5, %v2145_v27  ;;  %v4612_v11 = vld [vmem:[%s4901_s3 + $0x64] ss:$16 sps:$4 sm:$0xff]   ;;  %v4990_v13 = vld [vmem:[#allocation37_spill] sm:$0xff]  ;;  %v4991_v15 = vld [vmem:[#allocation39_spill] sm:$0xff] }
 0xa76   : > { %v2099_v8 = vpop.f32.mrf.mxu0  ;;  %v2140_v46 = vpop.f32.mrf.mxu1 }
 0xa77   : > { %3138 = vtanh.f32 %v2150_v18 }
 0xa78   : > { %3140 = vtanh.f32 %v2144_v48 }
 0xa79   : > { %3142 = vtanh.f32 %v2155_v6 }
 0xa82   : > { %v3137_v41 = vpop.eup %3136 }
 0xa83   : > { %v2148_v9 = vmul.f32 0.5, %v3137_v41 }
 0xa84   : > { %v3139_v51 = vpop.eup %3138 }
 0xa85   : > { %v2149_v0 = vadd.f32 0.5, %v2148_v9  ;;  %v2152_v12 = vmul.f32 0.5, %v3139_v51  ;;  %v3141_v7 = vpop.eup %3140 }
 0xa86   : > { %v3143_v63 = vpop.eup %3142 }
 0xa87   : > { %v2153_v55 = vadd.f32 0.5, %v2152_v12  ;;  %v2160_v58 = vmul.f32 %v3141_v7, %v2149_v0  ;;  %v2157_v50 = vmul.f32 0.5, %v3143_v63 }
 0xa89   : > { %v2159_v22 = vmul.f32 %v2153_v55, %v4460_v47  ;;  %v2158_v42 = vadd.f32 0.5, %v2157_v50  ;;  %v4526_v47 = vld [vmem:[%s4901_s3 + $0xe0] ss:$16 sps:$4 sm:$0xff]   ;;  %v2287_v55 = vpop.permute.xlu1 %2286 }
 0xa8a   : > { %vm2288_vm9 = vcmp.eq.s32.totalorder %v2287_v55, 1 }
 0xa8b   : > { %v4517_v2 = vadd.f32 %v2160_v58, %v2159_v22 }
 0xa8d   : > { %3144 = vtanh.f32 %v4517_v2 }
 0xa9a   : > { %v3145_v43 = vpop.eup %3144 }
 0xa9b   : > { %v2163_v45 = vmul.f32 %v3145_v43, %v2158_v42  ;;  %v4677_v42 = vld [vmem:[%s4901_s3 + $0x68] ss:$16 sps:$4 sm:$0xff]   ;;  %v4683_v43 = vld [vmem:[%s4901_s3 + $0x44] ss:$16 sps:$4 sm:$0xff]  }
 0xa9d   : > { %v4521_v20 = vsel %vm2169_vm7, %v2163_v45, %v4464_v24  ;;  %v2178_v56 = vpack.c.bf16 %v2163_v45, %v2163_v45  ;;  %v4558_v24 = vld [vmem:[%s4901_s3 + $0xc8] ss:$16 sps:$4 sm:$0xff]   ;;  %v4689_v45 = vld [vmem:[%s4901_s3 + $0x4c] ss:$16 sps:$4 sm:$0xff]  }
 0xa9f   : > { %2212 = vmatmul.mubr.bf16.vlgmr.msra.gmra.mxu0 %v2178_v56  ;;  %2253 = vmatmul.mubr.bf16.vlgmr.msra.gmra.mxu1 %v2178_v56  ;;  %v4701_v56 = vld [vmem:[%s4901_s3 + $0x48] ss:$16 sps:$4 sm:$0xff]  }
 0xaa0   : > { %2299 = vmatpush1.bf16.msra.mxu0 %v4526_v47  ;;  %2340 = vmatpush1.bf16.msra.mxu1 %v4532_v19 }
 0xaa1   : > { %2300 = vmatprep.subr.bf16.mxu0 %v4538_v21  ;;  %2341 = vmatprep.subr.bf16.mxu1 %v4544_v5 }
 0xaa2   : > { %2330 = vmatprep.mubr.bf16.mxu0 %v4957_v17  ;;  %2371 = vmatprep.mubr.bf16.mxu1 %v4957_v17 }
 0xaa4   : > { %2301 = vmatpush1.bf16.msra.mxu0 %v4552_v23  ;;  %2342 = vmatpush1.bf16.msra.mxu1 %v4558_v24 }
 0xaa5   : > { %2302 = vmatprep.subr.bf16.mxu0 %v4564_v25  ;;  %2343 = vmatprep.subr.bf16.mxu1 %v4570_v53 }
 0xaa8   : > { %2303 = vmatpush1.bf16.msra.mxu0 %v4576_v61  ;;  %2344 = vmatpush1.bf16.msra.mxu1 %v4582_v10 }
 0xaa9   : > { %2304 = vmatprep.subr.bf16.mxu0 %v4588_v32  ;;  %2345 = vmatprep.subr.bf16.mxu1 %v4594_v49 }
 0xaac   : > { %2305 = vmatpush1.bf16.msra.mxu0 %v4600_v52  ;;  %2346 = vmatpush1.bf16.msra.mxu1 %v4606_v62 }
 0xaad   : > { %2306 = vmatprep.subr.bf16.mxu0 %v4612_v11  ;;  %2347 = vmatprep.subr.bf16.mxu1 %v4176_v54  ;;  %v2403_v54 = vsel %vm2402_vm8, 1, %v4957_v17 }
 0xaae   : > { %2405 = vperm.xlu0 %2986, %v2403_v54   ;;  %v4707_v54 = vld [vmem:[%s4901_s3 + $0x24] ss:$16 sps:$4 sm:$0xff]  }
 0xab0   : > { %2307 = vmatpush1.bf16.msra.mxu0 %v4182_v1  ;;  %2348 = vmatpush1.bf16.msra.mxu1 %v4188_v57 }
 0xab1   : > { %2308 = vmatprep.subr.bf16.mxu0 %v4194_v4  ;;  %2349 = vmatprep.subr.bf16.mxu1 %v4200_v60  ;;  %v4988_v4 = vld [vmem:[#allocation36_spill] sm:$0xff] }
 0xab4   : > { %2309 = vmatpush1.bf16.msra.mxu0 %v4206_v44  ;;  %2350 = vmatpush1.bf16.msra.mxu1 %v4212_v39 }
 0xab5   : > { %2310 = vmatprep.subr.bf16.mxu0 %v4218_v28  ;;  %2351 = vmatprep.subr.bf16.mxu1 %v4224_v29  ;;  %v4989_v29 = vld [vmem:[#allocation38_spill] sm:$0xff] }
 0xab8   : > { %2311 = vmatpush1.bf16.msra.mxu0 %v4230_v30  ;;  %2352 = vmatpush1.bf16.msra.mxu1 %v4236_v31 }
 0xab9   : > { %2312 = vmatprep.subr.bf16.mxu0 %v4242_v34  ;;  %2353 = vmatprep.subr.bf16.mxu1 %v4248_v35 }
 0xabc   : > { %2313 = vmatpush1.bf16.msra.mxu0 %v4254_v36  ;;  %2354 = vmatpush1.bf16.msra.mxu1 %v4260_v37 }
 0xabd   : > { %2417 = vmatprep.subr.bf16.mxu0 %v4501_v59  ;;  %2458 = vmatprep.subr.bf16.mxu1 %v4507_v3 }
 0xb5f   : > { %v2213_v1 = vpop.f32.mrf.mxu0  ;;  %v2254_v57 = vpop.f32.mrf.mxu1 }
 0xb60   : > { %v2261_v60 = vadd.f32 %v2213_v1, %v4988_v4  ;;  %v2263_v14 = vadd.f32 %v2254_v57, %v4990_v13  ;;  %v4713_v1 = vld [vmem:[%s4901_s3 + $0x2c] ss:$16 sps:$4 sm:$0xff]   ;;  %v4719_v57 = vld [vmem:[%s4901_s3 + $0x20] ss:$16 sps:$4 sm:$0xff]   ;;  %v4725_v4 = vld [vmem:[%s4901_s3 + $0x28] ss:$16 sps:$4 sm:$0xff]  }
 0xb61   : > { %v2215_v44 = vpop.f32.mrf.mxu0  ;;  %v2256_v39 = vpop.f32.mrf.mxu1 }
 0xb62   : > { %v2265_v28 = vmul.f32 0.5, %v2261_v60  ;;  %v2262_v30 = vadd.f32 %v2215_v44, %v4989_v29  ;;  %v2264_v16 = vadd.f32 %v2256_v39, %v4991_v15  ;;  %v4731_v60 = vld [vmem:[%s4901_s3 + $0x4] ss:$16 sps:$4 sm:$0xff]   ;;  %v4737_v44 = vld [vmem:[%s4901_s3 + $0xc] ss:$16 sps:$4 sm:$0xff]   ;;  %v2522_v29 = vsel %vm2521_vm10, 1, %v4957_v17 }
 0xb63   : > { %v2217_v31 = vpop.f32.mrf.mxu0  ;;  %v2258_v34 = vpop.f32.mrf.mxu1  ;;  %v4743_v39 = vld [vmem:[%s4901_s3] ss:$16 sps:$4 sm:$0xff]   ;;  %2524 = vperm.xlu1 %2987, %v2522_v29  }
 0xb64   : > { %3146 = vtanh.f32 %v2265_v28  ;;  %v2269_v35 = vmul.f32 0.5, %v2262_v30  ;;  %v2274_v18 = vmul.f32 0.5, %v2264_v16  ;;  %v4749_v28 = vld [vmem:[%s4901_s3 + $0x8] ss:$16 sps:$4 sm:$0xff]   ;;  %v4992_v34 = vld [vmem:[#allocation40_spill] sm:$0xff] }
 0xb65   : > { %v2218_v36 = vpop.f32.mrf.mxu0  ;;  %v2259_v37 = vpop.f32.mrf.mxu1 }
 0xb66   : > { %3148 = vtanh.f32 %v2269_v35 }
 0xb67   : > { %3150 = vtanh.f32 %v2263_v14  ;;  %v4993_v14 = vld [vmem:[#allocation42_spill] sm:$0xff] }
 0xb68   : > { %3152 = vtanh.f32 %v2274_v18 }
 0xb71   : > { %v3147_v8 = vpop.eup %3146 }
 0xb72   : > { %v2267_v46 = vmul.f32 0.5, %v3147_v8 }
 0xb73   : > { %v3149_v26 = vpop.eup %3148 }
 0xb74   : > { %v2268_v48 = vadd.f32 0.5, %v2267_v46  ;;  %v2271_v33 = vmul.f32 0.5, %v3149_v26  ;;  %v3151_v6 = vpop.eup %3150 }
 0xb75   : > { %v3153_v0 = vpop.eup %3152 }
 0xb76   : > { %v2272_v27 = vadd.f32 0.5, %v2271_v33  ;;  %v2279_v9 = vmul.f32 %v3151_v6, %v2268_v48  ;;  %v2276_v12 = vmul.f32 0.5, %v3153_v0  ;;  %v4994_v48 = vld [vmem:[#allocation41_spill] sm:$0xff] }
 0xb78   : > { %v2278_v41 = vmul.f32 %v2272_v27, %v4517_v2  ;;  %v2277_v7 = vadd.f32 0.5, %v2276_v12  ;;  %v4665_v2 = vld [vmem:[%s4901_s3 + $0x6c] ss:$16 sps:$4 sm:$0xff]  }
 0xb79   : > { %v4995_v27 = vld [vmem:[#allocation43_spill] sm:$0xff] }
 0xb7a   : > { %v4639_v51 = vadd.f32 %v2279_v9, %v2278_v41 }
 0xb7c   : > { %3154 = vtanh.f32 %v4639_v51 }
 0xb89   : > { %v3155_v22 = vpop.eup %3154 }
 0xb8a   : > { %v2282_v58 = vmul.f32 %v3155_v22, %v2277_v7 }
 0xb8c   : > { %v4643_v63 = vsel %vm2288_vm9, %v2282_v58, %v4521_v20  ;;  %v2297_v50 = vpack.c.bf16 %v2282_v58, %v2282_v58  ;;  %v4695_v20 = vld [vmem:[%s4901_s3 + $0x40] ss:$16 sps:$4 sm:$0xff]  }
 0xb8e   : > { %2331 = vmatmul.mubr.bf16.vlgmr.msra.gmra.mxu0 %v2297_v50  ;;  %2372 = vmatmul.mubr.bf16.vlgmr.msra.gmra.mxu1 %v2297_v50 }
 0xb8f   : > { %2418 = vmatpush1.bf16.msra.mxu0 %v4526_v47  ;;  %2459 = vmatpush1.bf16.msra.mxu1 %v4532_v19 }
 0xb90   : > { %2419 = vmatprep.subr.bf16.mxu0 %v4538_v21  ;;  %2460 = vmatprep.subr.bf16.mxu1 %v4544_v5 }
 0xb91   : > { %2449 = vmatprep.mubr.bf16.mxu0 %v4957_v17  ;;  %2490 = vmatprep.mubr.bf16.mxu1 %v4957_v17 }
 0xb93   : > { %2420 = vmatpush1.bf16.msra.mxu0 %v4552_v23  ;;  %2461 = vmatpush1.bf16.msra.mxu1 %v4558_v24 }
 0xb94   : > { %2421 = vmatprep.subr.bf16.mxu0 %v4564_v25  ;;  %2462 = vmatprep.subr.bf16.mxu1 %v4570_v53 }
 0xb97   : > { %2422 = vmatpush1.bf16.msra.mxu0 %v4576_v61  ;;  %2463 = vmatpush1.bf16.msra.mxu1 %v4582_v10 }
 0xb98   : > { %2423 = vmatprep.subr.bf16.mxu0 %v4588_v32  ;;  %2464 = vmatprep.subr.bf16.mxu1 %v4594_v49 }
 0xb9b   : > { %2424 = vmatpush1.bf16.msra.mxu0 %v4600_v52  ;;  %2465 = vmatpush1.bf16.msra.mxu1 %v4606_v62 }
 0xb9c   : > { %2425 = vmatprep.subr.bf16.mxu0 %v4612_v11  ;;  %2466 = vmatprep.subr.bf16.mxu1 %v4665_v2 }
 0xb9f   : > { %2426 = vmatpush1.bf16.msra.mxu0 %v4671_v40  ;;  %2467 = vmatpush1.bf16.msra.mxu1 %v4677_v42 }
 0xba0   : > { %2427 = vmatprep.subr.bf16.mxu0 %v4683_v43  ;;  %2468 = vmatprep.subr.bf16.mxu1 %v4689_v45 }
 0xba3   : > { %2428 = vmatpush1.bf16.msra.mxu0 %v4695_v20  ;;  %2469 = vmatpush1.bf16.msra.mxu1 %v4701_v56 }
 0xba4   : > { %2429 = vmatprep.subr.bf16.mxu0 %v4707_v54  ;;  %2470 = vmatprep.subr.bf16.mxu1 %v4713_v1 }
 0xba7   : > { %2430 = vmatpush1.bf16.msra.mxu0 %v4719_v57  ;;  %2471 = vmatpush1.bf16.msra.mxu1 %v4725_v4 }
 0xba8   : > { %2431 = vmatprep.subr.bf16.mxu0 %v4731_v60  ;;  %2472 = vmatprep.subr.bf16.mxu1 %v4737_v44 }
 0xbab   : > { %2432 = vmatpush1.bf16.msra.mxu0 %v4743_v39  ;;  %2473 = vmatpush1.bf16.msra.mxu1 %v4749_v28 }
 0xbac   : > { %2536 = vmatprep.subr.bf16.mxu0 %v4501_v59  ;;  %2577 = vmatprep.subr.bf16.mxu1 %v4507_v3 }
 0xc4e   : > { %v2332_v30 = vpop.f32.mrf.mxu0  ;;  %v2373_v31 = vpop.f32.mrf.mxu1 }
 0xc4f   : > { %v2380_v35 = vadd.f32 %v2332_v30, %v4992_v34  ;;  %v2382_v33 = vadd.f32 %v2373_v31, %v4994_v48 }
 0xc50   : > { %v2334_v36 = vpop.f32.mrf.mxu0  ;;  %v2375_v37 = vpop.f32.mrf.mxu1 }
 0xc51   : > { %v2384_v13 = vmul.f32 0.5, %v2380_v35  ;;  %v2381_v15 = vadd.f32 %v2334_v36, %v4993_v14  ;;  %v2383_v6 = vadd.f32 %v2375_v37, %v4995_v27  ;;  %v2406_v35 = vpop.permute.xlu0 %2405 }
 0xc52   : > { %v2336_v16 = vpop.f32.mrf.mxu0  ;;  %v2377_v18 = vpop.f32.mrf.mxu1  ;;  %vm2407_vm11 = vcmp.eq.s32.totalorder %v2406_v35, 1 }
 0xc53   : > { %3156 = vtanh.f32 %v2384_v13  ;;  %v2388_v8 = vmul.f32 0.5, %v2381_v15  ;;  %v2393_v41 = vmul.f32 0.5, %v2383_v6  ;;  %v4996_v18 = vld [vmem:[#allocation44_spill] sm:$0xff] }
 0xc54   : > { %v2337_v46 = vpop.f32.mrf.mxu0  ;;  %v2378_v26 = vpop.f32.mrf.mxu1 }
 0xc55   : > { %3158 = vtanh.f32 %v2388_v8 }
 0xc56   : > { %3160 = vtanh.f32 %v2382_v33  ;;  %v4997_v33 = vld [vmem:[#allocation46_spill] sm:$0xff] }
 0xc57   : > { %3162 = vtanh.f32 %v2393_v41 }
 0xc60   : > { %v3157_v9 = vpop.eup %3156 }
 0xc61   : > { %v2386_v0 = vmul.f32 0.5, %v3157_v9 }
 0xc62   : > { %v3159_v12 = vpop.eup %3158 }
 0xc63   : > { %v2387_v55 = vadd.f32 0.5, %v2386_v0  ;;  %v2390_v7 = vmul.f32 0.5, %v3159_v12  ;;  %v3161_v58 = vpop.eup %3160  ;;  %v4998_v0 = vld [vmem:[#allocation45_spill] sm:$0xff] }
 0xc64   : > { %v3163_v31 = vpop.eup %3162 }
 0xc65   : > { %v2391_v22 = vadd.f32 0.5, %v2390_v7  ;;  %v2398_v29 = vmul.f32 %v3161_v58, %v2387_v55  ;;  %v2395_v34 = vmul.f32 0.5, %v3163_v31  ;;  %v4999_v55 = vld [vmem:[#allocation47_spill] sm:$0xff] }
 0xc67   : > { %v2397_v50 = vmul.f32 %v2391_v22, %v4639_v51  ;;  %v2396_v36 = vadd.f32 0.5, %v2395_v34  ;;  %v2641_v51 = vsel %vm2640_vm12, 1, %v4957_v17 }
 0xc68   : > { %2643 = vperm.xlu0 %2986, %v2641_v51  }
 0xc69   : > { %v4761_v30 = vadd.f32 %v2398_v29, %v2397_v50 }
 0xc6b   : > { %3164 = vtanh.f32 %v4761_v30 }
 0xc78   : > { %v3165_v37 = vpop.eup %3164 }
 0xc79   : > { %v2401_v13 = vmul.f32 %v3165_v37, %v2396_v36 }
 0xc7b   : > { %v4765_v14 = vsel %vm2407_vm11, %v2401_v13, %v4643_v63  ;;  %v2416_v15 = vpack.c.bf16 %v2401_v13, %v2401_v13 }
 0xc7d   : > { %2450 = vmatmul.mubr.bf16.vlgmr.msra.gmra.mxu0 %v2416_v15  ;;  %2491 = vmatmul.mubr.bf16.vlgmr.msra.gmra.mxu1 %v2416_v15 }
 0xc7e   : > { %2537 = vmatpush1.bf16.msra.mxu0 %v4526_v47  ;;  %2578 = vmatpush1.bf16.msra.mxu1 %v4532_v19 }
 0xc7f   : > { %2538 = vmatprep.subr.bf16.mxu0 %v4538_v21  ;;  %2579 = vmatprep.subr.bf16.mxu1 %v4544_v5 }
 0xc80   : > { %2568 = vmatprep.mubr.bf16.mxu0 %v4957_v17  ;;  %2609 = vmatprep.mubr.bf16.mxu1 %v4957_v17 }
 0xc82   : > { %2539 = vmatpush1.bf16.msra.mxu0 %v4552_v23  ;;  %2580 = vmatpush1.bf16.msra.mxu1 %v4558_v24 }
 0xc83   : > { %2540 = vmatprep.subr.bf16.mxu0 %v4564_v25  ;;  %2581 = vmatprep.subr.bf16.mxu1 %v4570_v53 }
 0xc86   : > { %2541 = vmatpush1.bf16.msra.mxu0 %v4576_v61  ;;  %2582 = vmatpush1.bf16.msra.mxu1 %v4582_v10 }
 0xc87   : > { %2542 = vmatprep.subr.bf16.mxu0 %v4588_v32  ;;  %2583 = vmatprep.subr.bf16.mxu1 %v4594_v49 }
 0xc8a   : > { %2543 = vmatpush1.bf16.msra.mxu0 %v4600_v52  ;;  %2584 = vmatpush1.bf16.msra.mxu1 %v4606_v62 }
 0xc8b   : > { %2544 = vmatprep.subr.bf16.mxu0 %v4612_v11  ;;  %2585 = vmatprep.subr.bf16.mxu1 %v4665_v2 }
 0xc8e   : > { %2545 = vmatpush1.bf16.msra.mxu0 %v4671_v40  ;;  %2586 = vmatpush1.bf16.msra.mxu1 %v4677_v42 }
 0xc8f   : > { %2546 = vmatprep.subr.bf16.mxu0 %v4683_v43  ;;  %2587 = vmatprep.subr.bf16.mxu1 %v4689_v45 }
 0xc92   : > { %2547 = vmatpush1.bf16.msra.mxu0 %v4695_v20  ;;  %2588 = vmatpush1.bf16.msra.mxu1 %v4701_v56 }
 0xc93   : > { %2548 = vmatprep.subr.bf16.mxu0 %v4707_v54  ;;  %2589 = vmatprep.subr.bf16.mxu1 %v4713_v1 }
 0xc96   : > { %2549 = vmatpush1.bf16.msra.mxu0 %v4719_v57  ;;  %2590 = vmatpush1.bf16.msra.mxu1 %v4725_v4 }
 0xc97   : > { %2550 = vmatprep.subr.bf16.mxu0 %v4731_v60  ;;  %2591 = vmatprep.subr.bf16.mxu1 %v4737_v44 }
 0xc9a   : > { %2551 = vmatpush1.bf16.msra.mxu0 %v4743_v39  ;;  %2592 = vmatpush1.bf16.msra.mxu1 %v4749_v28 }
 0xc9b   : > { %2655 = vmatprep.subr.bf16.mxu0 %v4501_v59  ;;  %2696 = vmatprep.subr.bf16.mxu1 %v4507_v3 }
 0xd3d   : > { %v2451_v63 = vpop.f32.mrf.mxu0  ;;  %v2492_v16 = vpop.f32.mrf.mxu1 }
 0xd3e   : > { %v2499_v8 = vadd.f32 %v2451_v63, %v4996_v18  ;;  %v2501_v12 = vadd.f32 %v2492_v16, %v4998_v0  ;;  %v2525_v16 = vpop.permute.xlu1 %2524 }
 0xd3f   : > { %v2453_v46 = vpop.f32.mrf.mxu0  ;;  %v2494_v26 = vpop.f32.mrf.mxu1  ;;  %vm2526_vm13 = vcmp.eq.s32.totalorder %v2525_v16, 1 }
 0xd40   : > { %v2503_v48 = vmul.f32 0.5, %v2499_v8  ;;  %v2500_v27 = vadd.f32 %v2453_v46, %v4997_v33  ;;  %v2502_v7 = vadd.f32 %v2494_v26, %v4999_v55 }
 0xd41   : > { %v2455_v6 = vpop.f32.mrf.mxu0  ;;  %v2496_v41 = vpop.f32.mrf.mxu1 }
 0xd42   : > { %3166 = vtanh.f32 %v2503_v48  ;;  %v2507_v59 = vmul.f32 0.5, %v2500_v27  ;;  %v2512_v22 = vmul.f32 0.5, %v2502_v7 }
 0xd43   : > { %v2456_v9 = vpop.f32.mrf.mxu0  ;;  %v2497_v3 = vpop.f32.mrf.mxu1 }
 0xd44   : > { %3168 = vtanh.f32 %v2507_v59  ;;  %v5004_v3 = vld [vmem:[#allocation52_spill] sm:$0xff] }
 0xd45   : > { %3170 = vtanh.f32 %v2501_v12 }
 0xd46   : > { %3172 = vtanh.f32 %v2512_v22  ;;  %v5005_v22 = vld [vmem:[#allocation54_spill] sm:$0xff] }
 0xd4f   : > { %v3167_v58 = vpop.eup %3166 }
 0xd50   : > { %v2505_v50 = vmul.f32 0.5, %v3167_v58 }
 0xd51   : > { %v3169_v29 = vpop.eup %3168 }
 0xd52   : > { %v2506_v31 = vadd.f32 0.5, %v2505_v50  ;;  %v2509_v34 = vmul.f32 0.5, %v3169_v29  ;;  %v3171_v36 = vpop.eup %3170 }
 0xd53   : > { %v3173_v51 = vpop.eup %3172 }
 0xd54   : > { %v2510_v35 = vadd.f32 0.5, %v2509_v34  ;;  %v2517_v13 = vmul.f32 %v3171_v36, %v2506_v31  ;;  %v2514_v63 = vmul.f32 0.5, %v3173_v51  ;;  %v5006_v36 = vld [vmem:[#allocation53_spill] sm:$0xff] }
 0xd56   : > { %v2516_v37 = vmul.f32 %v2510_v35, %v4761_v30  ;;  %v2515_v18 = vadd.f32 0.5, %v2514_v63  ;;  %v2644_v30 = vpop.permute.xlu0 %2643 }
 0xd57   : > { %vm2645_vm15 = vcmp.eq.s32.totalorder %v2644_v30, 1 }
 0xd58   : > { %v4808_v15 = vadd.f32 %v2517_v13, %v2516_v37  ;;  %v5007_v13 = vld [vmem:[#allocation55_spill] sm:$0xff] }
 0xd5a   : > { %3174 = vtanh.f32 %v4808_v15 }
 0xd67   : > { %v3175_v8 = vpop.eup %3174 }
 0xd68   : > { %v2520_v46 = vmul.f32 %v3175_v8, %v2515_v18 }
 0xd6a   : > { %v4812_v26 = vsel %vm2526_vm13, %v2520_v46, %v4765_v14  ;;  %v2535_v48 = vpack.c.bf16 %v2520_v46, %v2520_v46 }
 0xd6c   : > { %2569 = vmatmul.mubr.bf16.vlgmr.msra.gmra.mxu0 %v2535_v48  ;;  %2610 = vmatmul.mubr.bf16.vlgmr.msra.gmra.mxu1 %v2535_v48 }
 0xd6d   : > { %2656 = vmatpush1.bf16.msra.mxu0 %v4526_v47  ;;  %2697 = vmatpush1.bf16.msra.mxu1 %v4532_v19  ;;  %v2760_v47 = vsel %vm2759_vm14, 1, %v4957_v17 }
 0xd6e   : > { %2657 = vmatprep.subr.bf16.mxu0 %v4538_v21  ;;  %2698 = vmatprep.subr.bf16.mxu1 %v4544_v5  ;;  %v5000_v5 = vld [vmem:[#allocation48_spill] sm:$0xff] }
 0xd6f   : > { %2687 = vmatprep.mubr.bf16.mxu0 %v4957_v17  ;;  %2728 = vmatprep.mubr.bf16.mxu1 %v4957_v17  ;;  %v5003_v17 = vld [vmem:[#allocation51_spill] sm:$0xff] }
 0xd70   : > { %2762 = vperm.xlu1 %2987, %v2760_v47  }
 0xd71   : > { %2658 = vmatpush1.bf16.msra.mxu0 %v4552_v23  ;;  %2699 = vmatpush1.bf16.msra.mxu1 %v4558_v24 }
 0xd72   : > { %2659 = vmatprep.subr.bf16.mxu0 %v4564_v25  ;;  %2700 = vmatprep.subr.bf16.mxu1 %v4570_v53 }
 0xd75   : > { %2660 = vmatpush1.bf16.msra.mxu0 %v4576_v61  ;;  %2701 = vmatpush1.bf16.msra.mxu1 %v4582_v10  ;;  %v5001_v61 = vld [vmem:[#allocation50_spill] sm:$0xff] }
 0xd76   : > { %2661 = vmatprep.subr.bf16.mxu0 %v4588_v32  ;;  %2702 = vmatprep.subr.bf16.mxu1 %v4594_v49 }
 0xd79   : > { %2662 = vmatpush1.bf16.msra.mxu0 %v4600_v52  ;;  %2703 = vmatpush1.bf16.msra.mxu1 %v4606_v62 }
 0xd7a   : > { %2663 = vmatprep.subr.bf16.mxu0 %v4612_v11  ;;  %2704 = vmatprep.subr.bf16.mxu1 %v4665_v2  ;;  %v5002_v2 = vld [vmem:[#allocation49_spill] sm:$0xff] }
 0xd7d   : > { %2664 = vmatpush1.bf16.msra.mxu0 %v4671_v40  ;;  %2705 = vmatpush1.bf16.msra.mxu1 %v4677_v42 }
 0xd7e   : > { %2665 = vmatprep.subr.bf16.mxu0 %v4683_v43  ;;  %2706 = vmatprep.subr.bf16.mxu1 %v4689_v45 }
 0xd81   : > { %2666 = vmatpush1.bf16.msra.mxu0 %v4695_v20  ;;  %2707 = vmatpush1.bf16.msra.mxu1 %v4701_v56 }
 0xd82   : > { %2667 = vmatprep.subr.bf16.mxu0 %v4707_v54  ;;  %2708 = vmatprep.subr.bf16.mxu1 %v4713_v1 }
 0xd85   : > { %2668 = vmatpush1.bf16.msra.mxu0 %v4719_v57  ;;  %2709 = vmatpush1.bf16.msra.mxu1 %v4725_v4 }
 0xd86   : > { %2669 = vmatprep.subr.bf16.mxu0 %v4731_v60  ;;  %2710 = vmatprep.subr.bf16.mxu1 %v4737_v44 }
 0xd89   : > { %2670 = vmatpush1.bf16.msra.mxu0 %v4743_v39  ;;  %2711 = vmatpush1.bf16.msra.mxu1 %v4749_v28 }
 0xe2c   : > { %v2570_v19 = vpop.f32.mrf.mxu0  ;;  %v2611_v21 = vpop.f32.mrf.mxu1 }
 0xe2d   : > { %v2618_v23 = vadd.f32 %v2570_v19, %v5000_v5  ;;  %v2620_v38 = vadd.f32 %v2611_v21, %v5002_v2 }
 0xe2e   : > { %v2572_v24 = vpop.f32.mrf.mxu0  ;;  %v2613_v25 = vpop.f32.mrf.mxu1 }
 0xe2f   : > { %v2622_v53 = vmul.f32 0.5, %v2618_v23  ;;  %v2619_v10 = vadd.f32 %v2572_v24, %v5001_v61  ;;  %v2621_v40 = vadd.f32 %v2613_v25, %v5003_v17  ;;  %v2763_v25 = vpop.permute.xlu1 %2762 }
 0xe30   : > { %v2574_v32 = vpop.f32.mrf.mxu0  ;;  %v2615_v49 = vpop.f32.mrf.mxu1  ;;  %vm2764_vm0 = vcmp.eq.s32.totalorder %v2763_v25, 1 }
 0xe31   : > { %3176 = vtanh.f32 %v2622_v53  ;;  %v2626_v52 = vmul.f32 0.5, %v2619_v10  ;;  %v2631_v42 = vmul.f32 0.5, %v2621_v40 }
 0xe32   : > { %v2575_v62 = vpop.f32.mrf.mxu0  ;;  %v2616_v11 = vpop.f32.mrf.mxu1 }
 0xe33   : > { %3178 = vtanh.f32 %v2626_v52 }
 0xe34   : > { %3180 = vtanh.f32 %v2620_v38 }
 0xe35   : > { %3182 = vtanh.f32 %v2631_v42 }
 0xe3e   : > { %v3177_v43 = vpop.eup %3176 }
 0xe3f   : > { %v2624_v45 = vmul.f32 0.5, %v3177_v43 }
 0xe40   : > { %v3179_v20 = vpop.eup %3178 }
 0xe41   : > { %v2625_v56 = vadd.f32 0.5, %v2624_v45  ;;  %v2628_v54 = vmul.f32 0.5, %v3179_v20  ;;  %v3181_v57 = vpop.eup %3180 }
 0xe42   : > { %v3183_v39 = vpop.eup %3182 }
 0xe43   : > { %v2629_v1 = vadd.f32 0.5, %v2628_v54  ;;  %v2636_v60 = vmul.f32 %v3181_v57, %v2625_v56  ;;  %v2633_v28 = vmul.f32 0.5, %v3183_v39 }
 0xe45   : > { %v2635_v4 = vmul.f32 %v2629_v1, %v4808_v15  ;;  %v2634_v14 = vadd.f32 0.5, %v2633_v28 }
 0xe47   : > { %v2637_v44 = vadd.f32 %v2636_v60, %v2635_v4 }
 0xe49   : > { %3184 = vtanh.f32 %v2637_v44 }
 0xe56   : > { %v3185_v33 = vpop.eup %3184 }
 0xe57   : > { %v2639_v27 = vmul.f32 %v3185_v33, %v2634_v14 }
 0xe59   : > { %v2646_v6 = vsel %vm2645_vm15, %v2639_v27, %v4812_v26  ;;  %v2654_v41 = vpack.c.bf16 %v2639_v27, %v2639_v27 }
 0xe5b   : > { %2688 = vmatmul.mubr.bf16.vlgmr.msra.gmra.mxu0 %v2654_v41  ;;  %2729 = vmatmul.mubr.bf16.vlgmr.msra.gmra.mxu1 %v2654_v41 }
 0xf1b   : > { %v2689_v59 = vpop.f32.mrf.mxu0  ;;  %v2730_v9 = vpop.f32.mrf.mxu1 }
 0xf1c   : > { %v2737_v0 = vadd.f32 %v2689_v59, %v5004_v3  ;;  %v2739_v37 = vadd.f32 %v2730_v9, %v5006_v36 }
 0xf1d   : > { %v2691_v12 = vpop.f32.mrf.mxu0  ;;  %v2732_v55 = vpop.f32.mrf.mxu1 }
 0xf1e   : > { %v2741_v7 = vmul.f32 0.5, %v2737_v0  ;;  %v2738_v58 = vadd.f32 %v2691_v12, %v5005_v22  ;;  %v2740_v15 = vadd.f32 %v2732_v55, %v5007_v13 }
 0xf1f   : > { %v2693_v50 = vpop.f32.mrf.mxu0  ;;  %v2734_v29 = vpop.f32.mrf.mxu1 }
 0xf20   : > { %3186 = vtanh.f32 %v2741_v7  ;;  %v2745_v31 = vmul.f32 0.5, %v2738_v58  ;;  %v2750_v51 = vmul.f32 0.5, %v2740_v15 }
 0xf21   : > { %v2694_v34 = vpop.f32.mrf.mxu0  ;;  %v2735_v35 = vpop.f32.mrf.mxu1 }
 0xf22   : > { %3188 = vtanh.f32 %v2745_v31 }
 0xf23   : > { %3190 = vtanh.f32 %v2739_v37 }
 0xf24   : > { %3192 = vtanh.f32 %v2750_v51 }
 0xf2d   : > { %v3187_v63 = vpop.eup %3186 }
 0xf2e   : > { %v2743_v16 = vmul.f32 0.5, %v3187_v63 }
 0xf2f   : > { %v3189_v18 = vpop.eup %3188 }
 0xf30   : > { %v2744_v8 = vadd.f32 0.5, %v2743_v16  ;;  %v2747_v46 = vmul.f32 0.5, %v3189_v18  ;;  %v3191_v48 = vpop.eup %3190 }
 0xf31   : > { %v3193_v5 = vpop.eup %3192 }
 0xf32   : > { %v2748_v26 = vadd.f32 0.5, %v2747_v46  ;;  %v2755_v19 = vmul.f32 %v3191_v48, %v2744_v8  ;;  %v2752_v23 = vmul.f32 0.5, %v3193_v5 }
 0xf34   : > { %v2754_v47 = vmul.f32 %v2748_v26, %v2637_v44  ;;  %v2753_v24 = vadd.f32 0.5, %v2752_v23 }
 0xf36   : > { %v2756_v21 = vadd.f32 %v2755_v19, %v2754_v47 }
 0xf38   : > { %3194 = vtanh.f32 %v2756_v21 }
 0xf45   : > { %v3195_v53 = vpop.eup %3194 }
 0xf46   : > { %v2758_v61 = vmul.f32 %v3195_v53, %v2753_v24 }
 0xf48   : > { %v2765_v10 = vsel %vm2764_vm0, %v2758_v61, %v2646_v6 }
 0xf49   : > { %2766 = vst [vmem:[%s203_s14] sm:$0xff] %v2765_v10 }
 0xf4a   : > { %3273 = shalt.err (!%p3270_p3)
}
 0xf4b   : > { %s3274_s5 = scalar_lea.hbm %s4863_s11, 128  ;;  %s3278_s8 = scalar_lea.hbm %s4902_s4, 256 }
 0xf4c   : > { %p3275_p4 = scmp.ne.s32.totalorder %s4863_s11, %s3274_s5  ;;  %p3279_p9 = scmp.lt.s32.totalorder %s4863_s11, %s4902_s4 }
 0xf4d   : > { %p3280_p10 = scmp.lt.s32.totalorder %s3278_s8, %s3274_s5 }
 0xf4e   : > { %p3276_p7 = pnand %p3275_p4, %p3388_p5 }
 0xf4f   : > { %p3281_p11 = por %p3280_p10, %p3279_p9 }
 0xf50   : > { %p3277_p8 = pneg %p3276_p7 }
 0xf52   : > { %p3282_p12 = pnand %p3281_p11, %p3277_p8 }
 0xf54   : > { %3285 = shalt.err (!%p3282_p12)
}
 0xf55   : > { %2945 = dma.vmem_to_hbm [thread:$0]  (%p3388_p5), %s2782_s20, 128, %s4863_s11, %s2768_s28  }
 0xf56 PF: > { %p2951_p13 = scmp.ge.s32.totalorder %s3320_s18, 2  ;;  %s2793_s12 = sand.u32 1, %s3308_s15  }
 0xf57   : > { %s2794_s13 = scalar_lea.sflag [#allocation4], %s2793_s12 }
 0xf58   : > { %p2948_p0 = pnand %p2951_p13, %p3392_p6 }
 0xf5a   : > { %p2949_p1 = pneg %p2948_p0 }
 0xf5c   : > { %3303 = dma.done.wait (%p2949_p1), %s2794_s13, 128  }
 0xf5d   : > { %3305 = vsyncadd (%p2949_p1), %s2794_s13, 4294967168  ;;  %p14_p2 = scmp.ge.s32.totalorder %s3375_s21, 4   ;;  %s5008_s15 = smov %s3312_s16 }
 0xf5e   : > { %s5009_s16 = smov %s3316_s17  ;;  %s5010_s17 = smov %s3386_s24 }
 0xf5f   : > { %s5011_s18 = smov %s3375_s21  ;;  %16 = sbr.rel (!%p14_p2) target bundleno = 3 (0x3), region = 90 }
 0xf64   :  { %2799 = vsyncpa [#allocation4], 1 }
 0xf65   :  { %2801 = vsyncpa [#allocation4 + $0x1], 1 }

</bundles_post_ra>
